<compile_context>
chip_gen: v7x
topology: tpu7x:2x2x1
jax: 0.10.0
libtpu: 0.0.40
codegen_flags: <defaults>
</compile_context>

<pallas_src>
import numpy as np
import jax
import jax.numpy as jnp
from jax.experimental import pallas as pl
from jax.experimental.pallas import tpu as pltpu


# ---------------------------------------------------------------------------
# Bilinear interpolation matrix (PyTorch F.interpolate, mode='bilinear',
# align_corners=False), built host-side as a compile-time constant.
# ---------------------------------------------------------------------------
def _interp_matrix_np(out_size, in_size):
    """A[out, in] such that out_row = A @ in_row (align_corners=False)."""
    scale = in_size / out_size
    i = np.arange(out_size, dtype=np.float64)
    src = np.maximum((i + 0.5) * scale - 0.5, 0.0)          # PyTorch clamps <0 to 0
    x0 = np.clip(np.floor(src).astype(np.int64), 0, in_size - 1)
    x1 = np.minimum(x0 + 1, in_size - 1)
    w1 = (src - x0).astype(np.float32)
    w0 = (1.0 - w1).astype(np.float32)
    A = np.zeros((out_size, in_size), dtype=np.float32)
    rows = np.arange(out_size)
    A[rows, x0] += w0
    A[rows, x1] += w1                                        # x1==x0 at the edge: weights sum to 1
    return A


# ---------------------------------------------------------------------------
# EncoderWrapper.forward
# ---------------------------------------------------------------------------
def encoder_wrapper_forward(images, messages, params, H):
    n, c, h, w = images.shape
    wcc, bias, wcl = params
    nc = n * c
    hi = jax.lax.Precision.HIGHEST
    f32 = jnp.float32

    # per-plane additive term (bias + message projection), shape (N*C,)
    addend = (jnp.broadcast_to(bias.reshape(1, c), (n, c))
              + jnp.dot(messages, wcl.T, precision=hi)).reshape(nc)

    # ---------------- fused resize -> encode -> resize kernel ----------------
    # Layout: planes stacked along rows; plane r = n*C + c occupies rows
    # [r*h, (r+1)*h) of the (N*C*h, w) input / output.  All matmuls are plain
    # 2-D MXU dots; the (C,C) channel mix is done on the VPU with SMEM scalars.
    def fused_kernel(x_ref, awi_t_ref, ahi_ref, aho_ref, awo_t_ref,
                     wcc_ref, add_ref, o_ref):
        # resize W for all planes at once: (NC*h, w) @ (w, H) -> (NC*h, H)
        t_all = jnp.dot(x_ref[...].astype(f32), awi_t_ref[...],
                        precision=hi, preferred_element_type=f32)
        ahi = ahi_ref[...]        # (H, h)
        aho = aho_ref[...]        # (h, H)
        awo_t = awo_t_ref[...]    # (H, w)
        for ni in range(n):                                   # static loop over images
            # resize H per plane -> encoder-native (H, H) planes of image ni
            xr = []
            for ci in range(c):
                r = ni * c + ci
                t_pl = t_all[r * h:(r + 1) * h, :]            # (h, H)
                xr.append(jnp.dot(ahi, t_pl, precision=hi,
                                  preferred_element_type=f32))  # (H, H)
            # synthetic encoder: 1x1 channel conv (VPU) + bias/msg + tanh residual
            for di in range(c):
                r = ni * c + di
                z = wcc_ref[di, 0] * xr[0]
                for ci in range(1, c):
                    z = z + wcc_ref[di, ci] * xr[ci]
                enc = xr[di] + jnp.tanh(z + add_ref[r])       # (H, H)
                # resize back to (h, w): contract H (rows), then W (lanes)
                t_out = jnp.dot(aho, enc, precision=hi,
                                preferred_element_type=f32)   # (h, H)
                out_pl = jnp.dot(t_out, awo_t, precision=hi,
                                 preferred_element_type=f32)  # (h, w)
                o_ref[r * h:(r + 1) * h, :] = out_pl.astype(o_ref.dtype)

    # ---------------- encoder-only kernel (equal-size path) -----------------
    def encoder_kernel(x_ref, wcc_ref, add_ref, o_ref):
        # x_ref / o_ref: (N*C, H*H) -- H*H = 256 lanes -> fully unmasked stores
        x = x_ref[...].astype(f32)
        for ni in range(n):
            base = ni * c
            for di in range(c):
                z = wcc_ref[di, 0] * x[base:base + 1, :]
                for ci in range(1, c):
                    z = z + wcc_ref[di, ci] * x[base + ci:base + ci + 1, :]
                enc = x[base + di:base + di + 1, :] + jnp.tanh(z + add_ref[base + di])
                o_ref[base + di:base + di + 1, :] = enc.astype(o_ref.dtype)

    smem_spec = pl.BlockSpec(memory_space=pltpu.MemorySpace.SMEM)

    if (h, w) != (H, H):
        # host-side (numpy) separable interpolation matrices -- ~6 KiB total
        ah_in = jnp.asarray(_interp_matrix_np(H, h))          # (H, h)
        aw_in_t = jnp.asarray(_interp_matrix_np(H, w).T)      # (w, H)
        ah_out = jnp.asarray(_interp_matrix_np(h, H))         # (h, H)
        aw_out_t = jnp.asarray(_interp_matrix_np(w, H).T)     # (H, w)
        x2 = images.reshape(nc * h, w)

        out = pl.pallas_call(
            fused_kernel,
            out_shape=jax.ShapeDtypeStruct((nc * h, w), images.dtype),
            in_specs=[
                pl.BlockSpec((nc * h, w), lambda: (0, 0)),
                pl.BlockSpec((w, H), lambda: (0, 0)),
                pl.BlockSpec((H, h), lambda: (0, 0)),
                pl.BlockSpec((h, H), lambda: (0, 0)),
                pl.BlockSpec((H, w), lambda: (0, 0)),
                smem_spec,   # wcc (C, C)
                smem_spec,   # addend (N*C,)
            ],
            out_specs=pl.BlockSpec((nc * h, w), lambda: (0, 0)),
        )(x2, aw_in_t, ah_in, ah_out, aw_out_t, wcc, addend)
        return out.reshape(n, c, h, w)
    else:
        x2 = images.reshape(nc, h * w)
        out = pl.pallas_call(
            encoder_kernel,
            out_shape=jax.ShapeDtypeStruct((nc, h * w), images.dtype),
            in_specs=[
                pl.BlockSpec((nc, h * w), lambda: (0, 0)),
                smem_spec,   # wcc
                smem_spec,   # addend
            ],
            out_specs=pl.BlockSpec((nc, h * w), lambda: (0, 0)),
        )(x2, wcc, addend)
        return out.reshape(n, c, h, w)


# ---------------------------------------------------------------------------
# Pure-JAX reference (same synthetic encoder) for a tolerance check.
# ---------------------------------------------------------------------------
def _reference_forward(images, messages, params, H):
    wcc, bias, wcl = params
    n, c, h, w = images.shape
    hi = jax.lax.Precision.HIGHEST

    def resize(x, oh, ow):
        ah = jnp.asarray(_interp_matrix_np(oh, x.shape[2]))
        aw = jnp.asarray(_interp_matrix_np(ow, x.shape[3]))
        return jnp.einsum('oi,ncij,pj->ncop', ah, x, aw, precision=hi)

    def encode(x, m):
        y = jnp.einsum('dc,nchw->ndhw', wcc, x, precision=hi)
        mp = jnp.dot(m, wcl.T, precision=hi)[:, :, None, None]
        return x + jnp.tanh(y + bias[None, :, :, None] + mp)

    if (h, w) != (H, H):
        return resize(encode(resize(images, H, H), messages), h, w)
    return encode(images, messages)


if __name__ == "__main__":
    H = 16                       # encoder's native size (self.size)
    N, C, Himg, Wimg, L = 2, 3, 24, 24, 8

    key = jax.random.PRNGKey(0)
    k1, k2, k3, k4, k5 = jax.random.split(key, 5)
    images = jax.random.uniform(k1, (N, C, Himg, Wimg), jnp.float32)
    messages = jax.random.bernoulli(k2, 0.5, (N, L)).astype(jnp.float32)

    # deterministic synthetic encoder parameters
    wcc = 0.2 * jax.random.normal(k3, (C, C), jnp.float32)
    bias = 0.05 * jax.random.normal(k4, (C, 1), jnp.float32)
    wcl = 0.1 * jax.random.normal(k5, (C, L), jnp.float32)
    params = (wcc, bias, wcl)

    # mismatched-size path: resize -> encode -> resize back, one fused kernel
    out = jax.block_until_ready(encoder_wrapper_forward(images, messages, params, H))
    assert out.shape == images.shape and out.dtype == images.dtype
    ref = _reference_forward(images, messages, params, H)
    err = float(jnp.max(jnp.abs(out - ref)))
    assert jnp.allclose(out, ref, atol=1e-3, rtol=1e-3), f"max abs err {err}"

    # equal-size path: encoder only
    images_eq = jax.random.uniform(k1, (N, C, H, H), jnp.float32)
    out_eq = jax.block_until_ready(encoder_wrapper_forward(images_eq, messages, params, H))
    assert out_eq.shape == images_eq.shape and out_eq.dtype == images_eq.dtype
    ref_eq = _reference_forward(images_eq, messages, params, H)
    err_eq = float(jnp.max(jnp.abs(out_eq - ref_eq)))
    assert jnp.allclose(out_eq, ref_eq, atol=1e-3, rtol=1e-3), f"max abs err {err_eq}"

    print("KERNEL_OK")
</pallas_src>

<mosaic_0001>
module attributes {stable_mosaic.version = 11 : i64} {
  func.func @fused_kernel(%arg0: memref<144x24xf32, #tpu.memory_space<vmem>>, %arg1: memref<24x16xf32, #tpu.memory_space<vmem>>, %arg2: memref<16x24xf32, #tpu.memory_space<vmem>>, %arg3: memref<24x16xf32, #tpu.memory_space<vmem>>, %arg4: memref<16x24xf32, #tpu.memory_space<vmem>>, %arg5: memref<3x3xf32, #tpu.memory_space<smem>>, %arg6: memref<6xf32, #tpu.memory_space<smem>>, %arg7: memref<144x24xf32, #tpu.memory_space<vmem>>) attributes {dimension_semantics = [], scalar_prefetch = 0 : i64, scratch_operands = 0 : i64, tpu.core_type = #tpu.core_type<tc>} {
    %c0 = arith.constant 0 : index
    %c0_0 = arith.constant 0 : index
    %0 = vector.load %arg0[%c0, %c0_0] : memref<144x24xf32, #tpu.memory_space<vmem>>, vector<144x24xf32>
    %c0_1 = arith.constant 0 : index
    %c0_2 = arith.constant 0 : index
    %1 = vector.load %arg1[%c0_1, %c0_2] : memref<24x16xf32, #tpu.memory_space<vmem>>, vector<24x16xf32>
    %cst = arith.constant dense<0.000000e+00> : vector<144x16xf32>
    %2 = tpu.matmul %0, %1, %cst {dimension_numbers = #tpu.dot_dimension_numbers<[1], [0], [0], [1], [0, 0, 1, 1], [], []>, precision = #tpu.contract_precision<fp32>} : vector<144x24xf32>, vector<24x16xf32>, vector<144x16xf32> -> vector<144x16xf32>
    %c0_3 = arith.constant 0 : index
    %c0_4 = arith.constant 0 : index
    %3 = vector.load %arg2[%c0_3, %c0_4] : memref<16x24xf32, #tpu.memory_space<vmem>>, vector<16x24xf32>
    %c0_5 = arith.constant 0 : index
    %c0_6 = arith.constant 0 : index
    %4 = vector.load %arg3[%c0_5, %c0_6] : memref<24x16xf32, #tpu.memory_space<vmem>>, vector<24x16xf32>
    %c0_7 = arith.constant 0 : index
    %c0_8 = arith.constant 0 : index
    %5 = vector.load %arg4[%c0_7, %c0_8] : memref<16x24xf32, #tpu.memory_space<vmem>>, vector<16x24xf32>
    %6 = vector.extract_strided_slice %2 {offsets = [0, 0], sizes = [24, 16], strides = [1, 1]} : vector<144x16xf32> to vector<24x16xf32>
    %cst_9 = arith.constant dense<0.000000e+00> : vector<16x16xf32>
    %7 = tpu.matmul %3, %6, %cst_9 {dimension_numbers = #tpu.dot_dimension_numbers<[1], [0], [0], [1], [0, 0, 1, 1], [], []>, precision = #tpu.contract_precision<fp32>} : vector<16x24xf32>, vector<24x16xf32>, vector<16x16xf32> -> vector<16x16xf32>
    %8 = vector.extract_strided_slice %2 {offsets = [24, 0], sizes = [24, 16], strides = [1, 1]} : vector<144x16xf32> to vector<24x16xf32>
    %cst_10 = arith.constant dense<0.000000e+00> : vector<16x16xf32>
    %9 = tpu.matmul %3, %8, %cst_10 {dimension_numbers = #tpu.dot_dimension_numbers<[1], [0], [0], [1], [0, 0, 1, 1], [], []>, precision = #tpu.contract_precision<fp32>} : vector<16x24xf32>, vector<24x16xf32>, vector<16x16xf32> -> vector<16x16xf32>
    %10 = vector.extract_strided_slice %2 {offsets = [48, 0], sizes = [24, 16], strides = [1, 1]} : vector<144x16xf32> to vector<24x16xf32>
    %cst_11 = arith.constant dense<0.000000e+00> : vector<16x16xf32>
    %11 = tpu.matmul %3, %10, %cst_11 {dimension_numbers = #tpu.dot_dimension_numbers<[1], [0], [0], [1], [0, 0, 1, 1], [], []>, precision = #tpu.contract_precision<fp32>} : vector<16x24xf32>, vector<24x16xf32>, vector<16x16xf32> -> vector<16x16xf32>
    %c0_12 = arith.constant 0 : index
    %c0_13 = arith.constant 0 : index
    %12 = memref.load %arg5[%c0_12, %c0_13] : memref<3x3xf32, #tpu.memory_space<smem>>
    %13 = vector.broadcast %12 : f32 to vector<16x16xf32>
    %14 = arith.mulf %13, %7 : vector<16x16xf32>
    %c0_14 = arith.constant 0 : index
    %c1 = arith.constant 1 : index
    %15 = memref.load %arg5[%c0_14, %c1] : memref<3x3xf32, #tpu.memory_space<smem>>
    %16 = vector.broadcast %15 : f32 to vector<16x16xf32>
    %17 = arith.mulf %16, %9 : vector<16x16xf32>
    %18 = arith.addf %14, %17 : vector<16x16xf32>
    %c0_15 = arith.constant 0 : index
    %c2 = arith.constant 2 : index
    %19 = memref.load %arg5[%c0_15, %c2] : memref<3x3xf32, #tpu.memory_space<smem>>
    %20 = vector.broadcast %19 : f32 to vector<16x16xf32>
    %21 = arith.mulf %20, %11 : vector<16x16xf32>
    %22 = arith.addf %18, %21 : vector<16x16xf32>
    %c0_16 = arith.constant 0 : index
    %23 = memref.load %arg6[%c0_16] : memref<6xf32, #tpu.memory_space<smem>>
    %24 = vector.broadcast %23 : f32 to vector<16x16xf32>
    %25 = arith.addf %22, %24 : vector<16x16xf32>
    %26 = math.tanh %25 : vector<16x16xf32>
    %27 = arith.addf %7, %26 : vector<16x16xf32>
    %cst_17 = arith.constant dense<0.000000e+00> : vector<24x16xf32>
    %28 = tpu.matmul %4, %27, %cst_17 {dimension_numbers = #tpu.dot_dimension_numbers<[1], [0], [0], [1], [0, 0, 1, 1], [], []>, precision = #tpu.contract_precision<fp32>} : vector<24x16xf32>, vector<16x16xf32>, vector<24x16xf32> -> vector<24x16xf32>
    %cst_18 = arith.constant dense<0.000000e+00> : vector<24x24xf32>
    %29 = tpu.matmul %28, %5, %cst_18 {dimension_numbers = #tpu.dot_dimension_numbers<[1], [0], [0], [1], [0, 0, 1, 1], [], []>, precision = #tpu.contract_precision<fp32>} : vector<24x16xf32>, vector<16x24xf32>, vector<24x24xf32> -> vector<24x24xf32>
    %c0_19 = arith.constant 0 : index
    %c0_20 = arith.constant 0 : index
    %30 = vector.load %arg7[%c0_19, %c0_20] : memref<144x24xf32, #tpu.memory_space<vmem>>, vector<24x24xf32>
    tpu.vector_store %arg7[%c0_19, %c0_20], %29 {strides = array<i32>} : memref<144x24xf32, #tpu.memory_space<vmem>>, vector<24x24xf32>,
    %c1_21 = arith.constant 1 : index
    %c0_22 = arith.constant 0 : index
    %31 = memref.load %arg5[%c1_21, %c0_22] : memref<3x3xf32, #tpu.memory_space<smem>>
    %32 = vector.broadcast %31 : f32 to vector<16x16xf32>
    %33 = arith.mulf %32, %7 : vector<16x16xf32>
    %c1_23 = arith.constant 1 : index
    %c1_24 = arith.constant 1 : index
    %34 = memref.load %arg5[%c1_23, %c1_24] : memref<3x3xf32, #tpu.memory_space<smem>>
    %35 = vector.broadcast %34 : f32 to vector<16x16xf32>
    %36 = arith.mulf %35, %9 : vector<16x16xf32>
    %37 = arith.addf %33, %36 : vector<16x16xf32>
    %c1_25 = arith.constant 1 : index
    %c2_26 = arith.constant 2 : index
    %38 = memref.load %arg5[%c1_25, %c2_26] : memref<3x3xf32, #tpu.memory_space<smem>>
    %39 = vector.broadcast %38 : f32 to vector<16x16xf32>
    %40 = arith.mulf %39, %11 : vector<16x16xf32>
    %41 = arith.addf %37, %40 : vector<16x16xf32>
    %c1_27 = arith.constant 1 : index
    %42 = memref.load %arg6[%c1_27] : memref<6xf32, #tpu.memory_space<smem>>
    %43 = vector.broadcast %42 : f32 to vector<16x16xf32>
    %44 = arith.addf %41, %43 : vector<16x16xf32>
    %45 = math.tanh %44 : vector<16x16xf32>
    %46 = arith.addf %9, %45 : vector<16x16xf32>
    %cst_28 = arith.constant dense<0.000000e+00> : vector<24x16xf32>
    %47 = tpu.matmul %4, %46, %cst_28 {dimension_numbers = #tpu.dot_dimension_numbers<[1], [0], [0], [1], [0, 0, 1, 1], [], []>, precision = #tpu.contract_precision<fp32>} : vector<24x16xf32>, vector<16x16xf32>, vector<24x16xf32> -> vector<24x16xf32>
    %cst_29 = arith.constant dense<0.000000e+00> : vector<24x24xf32>
    %48 = tpu.matmul %47, %5, %cst_29 {dimension_numbers = #tpu.dot_dimension_numbers<[1], [0], [0], [1], [0, 0, 1, 1], [], []>, precision = #tpu.contract_precision<fp32>} : vector<24x16xf32>, vector<16x24xf32>, vector<24x24xf32> -> vector<24x24xf32>
    %c24 = arith.constant 24 : index
    %c0_30 = arith.constant 0 : index
    %49 = vector.load %arg7[%c24, %c0_30] : memref<144x24xf32, #tpu.memory_space<vmem>>, vector<24x24xf32>
    tpu.vector_store %arg7[%c24, %c0_30], %48 {strides = array<i32>} : memref<144x24xf32, #tpu.memory_space<vmem>>, vector<24x24xf32>,
    %c2_31 = arith.constant 2 : index
    %c0_32 = arith.constant 0 : index
    %50 = memref.load %arg5[%c2_31, %c0_32] : memref<3x3xf32, #tpu.memory_space<smem>>
    %51 = vector.broadcast %50 : f32 to vector<16x16xf32>
    %52 = arith.mulf %51, %7 : vector<16x16xf32>
    %c2_33 = arith.constant 2 : index
    %c1_34 = arith.constant 1 : index
    %53 = memref.load %arg5[%c2_33, %c1_34] : memref<3x3xf32, #tpu.memory_space<smem>>
    %54 = vector.broadcast %53 : f32 to vector<16x16xf32>
    %55 = arith.mulf %54, %9 : vector<16x16xf32>
    %56 = arith.addf %52, %55 : vector<16x16xf32>
    %c2_35 = arith.constant 2 : index
    %c2_36 = arith.constant 2 : index
    %57 = memref.load %arg5[%c2_35, %c2_36] : memref<3x3xf32, #tpu.memory_space<smem>>
    %58 = vector.broadcast %57 : f32 to vector<16x16xf32>
    %59 = arith.mulf %58, %11 : vector<16x16xf32>
    %60 = arith.addf %56, %59 : vector<16x16xf32>
    %c2_37 = arith.constant 2 : index
    %61 = memref.load %arg6[%c2_37] : memref<6xf32, #tpu.memory_space<smem>>
    %62 = vector.broadcast %61 : f32 to vector<16x16xf32>
    %63 = arith.addf %60, %62 : vector<16x16xf32>
    %64 = math.tanh %63 : vector<16x16xf32>
    %65 = arith.addf %11, %64 : vector<16x16xf32>
    %cst_38 = arith.constant dense<0.000000e+00> : vector<24x16xf32>
    %66 = tpu.matmul %4, %65, %cst_38 {dimension_numbers = #tpu.dot_dimension_numbers<[1], [0], [0], [1], [0, 0, 1, 1], [], []>, precision = #tpu.contract_precision<fp32>} : vector<24x16xf32>, vector<16x16xf32>, vector<24x16xf32> -> vector<24x16xf32>
    %cst_39 = arith.constant dense<0.000000e+00> : vector<24x24xf32>
    %67 = tpu.matmul %66, %5, %cst_39 {dimension_numbers = #tpu.dot_dimension_numbers<[1], [0], [0], [1], [0, 0, 1, 1], [], []>, precision = #tpu.contract_precision<fp32>} : vector<24x16xf32>, vector<16x24xf32>, vector<24x24xf32> -> vector<24x24xf32>
    %c48 = arith.constant 48 : index
    %c0_40 = arith.constant 0 : index
    %68 = vector.load %arg7[%c48, %c0_40] : memref<144x24xf32, #tpu.memory_space<vmem>>, vector<24x24xf32>
    tpu.vector_store %arg7[%c48, %c0_40], %67 {strides = array<i32>} : memref<144x24xf32, #tpu.memory_space<vmem>>, vector<24x24xf32>,
    %69 = vector.extract_strided_slice %2 {offsets = [72, 0], sizes = [24, 16], strides = [1, 1]} : vector<144x16xf32> to vector<24x16xf32>
    %cst_41 = arith.constant dense<0.000000e+00> : vector<16x16xf32>
    %70 = tpu.matmul %3, %69, %cst_41 {dimension_numbers = #tpu.dot_dimension_numbers<[1], [0], [0], [1], [0, 0, 1, 1], [], []>, precision = #tpu.contract_precision<fp32>} : vector<16x24xf32>, vector<24x16xf32>, vector<16x16xf32> -> vector<16x16xf32>
    %71 = vector.extract_strided_slice %2 {offsets = [96, 0], sizes = [24, 16], strides = [1, 1]} : vector<144x16xf32> to vector<24x16xf32>
    %cst_42 = arith.constant dense<0.000000e+00> : vector<16x16xf32>
    %72 = tpu.matmul %3, %71, %cst_42 {dimension_numbers = #tpu.dot_dimension_numbers<[1], [0], [0], [1], [0, 0, 1, 1], [], []>, precision = #tpu.contract_precision<fp32>} : vector<16x24xf32>, vector<24x16xf32>, vector<16x16xf32> -> vector<16x16xf32>
    %73 = vector.extract_strided_slice %2 {offsets = [120, 0], sizes = [24, 16], strides = [1, 1]} : vector<144x16xf32> to vector<24x16xf32>
    %cst_43 = arith.constant dense<0.000000e+00> : vector<16x16xf32>
    %74 = tpu.matmul %3, %73, %cst_43 {dimension_numbers = #tpu.dot_dimension_numbers<[1], [0], [0], [1], [0, 0, 1, 1], [], []>, precision = #tpu.contract_precision<fp32>} : vector<16x24xf32>, vector<24x16xf32>, vector<16x16xf32> -> vector<16x16xf32>
    %c0_44 = arith.constant 0 : index
    %c0_45 = arith.constant 0 : index
    %75 = memref.load %arg5[%c0_44, %c0_45] : memref<3x3xf32, #tpu.memory_space<smem>>
    %76 = vector.broadcast %75 : f32 to vector<16x16xf32>
    %77 = arith.mulf %76, %70 : vector<16x16xf32>
    %c0_46 = arith.constant 0 : index
    %c1_47 = arith.constant 1 : index
    %78 = memref.load %arg5[%c0_46, %c1_47] : memref<3x3xf32, #tpu.memory_space<smem>>
    %79 = vector.broadcast %78 : f32 to vector<16x16xf32>
    %80 = arith.mulf %79, %72 : vector<16x16xf32>
    %81 = arith.addf %77, %80 : vector<16x16xf32>
    %c0_48 = arith.constant 0 : index
    %c2_49 = arith.constant 2 : index
    %82 = memref.load %arg5[%c0_48, %c2_49] : memref<3x3xf32, #tpu.memory_space<smem>>
    %83 = vector.broadcast %82 : f32 to vector<16x16xf32>
    %84 = arith.mulf %83, %74 : vector<16x16xf32>
    %85 = arith.addf %81, %84 : vector<16x16xf32>
    %c3 = arith.constant 3 : index
    %86 = memref.load %arg6[%c3] : memref<6xf32, #tpu.memory_space<smem>>
    %87 = vector.broadcast %86 : f32 to vector<16x16xf32>
    %88 = arith.addf %85, %87 : vector<16x16xf32>
    %89 = math.tanh %88 : vector<16x16xf32>
    %90 = arith.addf %70, %89 : vector<16x16xf32>
    %cst_50 = arith.constant dense<0.000000e+00> : vector<24x16xf32>
    %91 = tpu.matmul %4, %90, %cst_50 {dimension_numbers = #tpu.dot_dimension_numbers<[1], [0], [0], [1], [0, 0, 1, 1], [], []>, precision = #tpu.contract_precision<fp32>} : vector<24x16xf32>, vector<16x16xf32>, vector<24x16xf32> -> vector<24x16xf32>
    %cst_51 = arith.constant dense<0.000000e+00> : vector<24x24xf32>
    %92 = tpu.matmul %91, %5, %cst_51 {dimension_numbers = #tpu.dot_dimension_numbers<[1], [0], [0], [1], [0, 0, 1, 1], [], []>, precision = #tpu.contract_precision<fp32>} : vector<24x16xf32>, vector<16x24xf32>, vector<24x24xf32> -> vector<24x24xf32>
    %c72 = arith.constant 72 : index
    %c0_52 = arith.constant 0 : index
    %93 = vector.load %arg7[%c72, %c0_52] : memref<144x24xf32, #tpu.memory_space<vmem>>, vector<24x24xf32>
    tpu.vector_store %arg7[%c72, %c0_52], %92 {strides = array<i32>} : memref<144x24xf32, #tpu.memory_space<vmem>>, vector<24x24xf32>,
    %c1_53 = arith.constant 1 : index
    %c0_54 = arith.constant 0 : index
    %94 = memref.load %arg5[%c1_53, %c0_54] : memref<3x3xf32, #tpu.memory_space<smem>>
    %95 = vector.broadcast %94 : f32 to vector<16x16xf32>
    %96 = arith.mulf %95, %70 : vector<16x16xf32>
    %c1_55 = arith.constant 1 : index
    %c1_56 = arith.constant 1 : index
    %97 = memref.load %arg5[%c1_55, %c1_56] : memref<3x3xf32, #tpu.memory_space<smem>>
    %98 = vector.broadcast %97 : f32 to vector<16x16xf32>
    %99 = arith.mulf %98, %72 : vector<16x16xf32>
    %100 = arith.addf %96, %99 : vector<16x16xf32>
    %c1_57 = arith.constant 1 : index
    %c2_58 = arith.constant 2 : index
    %101 = memref.load %arg5[%c1_57, %c2_58] : memref<3x3xf32, #tpu.memory_space<smem>>
    %102 = vector.broadcast %101 : f32 to vector<16x16xf32>
    %103 = arith.mulf %102, %74 : vector<16x16xf32>
    %104 = arith.addf %100, %103 : vector<16x16xf32>
    %c4 = arith.constant 4 : index
    %105 = memref.load %arg6[%c4] : memref<6xf32, #tpu.memory_space<smem>>
    %106 = vector.broadcast %105 : f32 to vector<16x16xf32>
    %107 = arith.addf %104, %106 : vector<16x16xf32>
    %108 = math.tanh %107 : vector<16x16xf32>
    %109 = arith.addf %72, %108 : vector<16x16xf32>
    %cst_59 = arith.constant dense<0.000000e+00> : vector<24x16xf32>
    %110 = tpu.matmul %4, %109, %cst_59 {dimension_numbers = #tpu.dot_dimension_numbers<[1], [0], [0], [1], [0, 0, 1, 1], [], []>, precision = #tpu.contract_precision<fp32>} : vector<24x16xf32>, vector<16x16xf32>, vector<24x16xf32> -> vector<24x16xf32>
    %cst_60 = arith.constant dense<0.000000e+00> : vector<24x24xf32>
    %111 = tpu.matmul %110, %5, %cst_60 {dimension_numbers = #tpu.dot_dimension_numbers<[1], [0], [0], [1], [0, 0, 1, 1], [], []>, precision = #tpu.contract_precision<fp32>} : vector<24x16xf32>, vector<16x24xf32>, vector<24x24xf32> -> vector<24x24xf32>
    %c96 = arith.constant 96 : index
    %c0_61 = arith.constant 0 : index
    %112 = vector.load %arg7[%c96, %c0_61] : memref<144x24xf32, #tpu.memory_space<vmem>>, vector<24x24xf32>
    tpu.vector_store %arg7[%c96, %c0_61], %111 {strides = array<i32>} : memref<144x24xf32, #tpu.memory_space<vmem>>, vector<24x24xf32>,
    %c2_62 = arith.constant 2 : index
    %c0_63 = arith.constant 0 : index
    %113 = memref.load %arg5[%c2_62, %c0_63] : memref<3x3xf32, #tpu.memory_space<smem>>
    %114 = vector.broadcast %113 : f32 to vector<16x16xf32>
    %115 = arith.mulf %114, %70 : vector<16x16xf32>
    %c2_64 = arith.constant 2 : index
    %c1_65 = arith.constant 1 : index
    %116 = memref.load %arg5[%c2_64, %c1_65] : memref<3x3xf32, #tpu.memory_space<smem>>
    %117 = vector.broadcast %116 : f32 to vector<16x16xf32>
    %118 = arith.mulf %117, %72 : vector<16x16xf32>
    %119 = arith.addf %115, %118 : vector<16x16xf32>
    %c2_66 = arith.constant 2 : index
    %c2_67 = arith.constant 2 : index
    %120 = memref.load %arg5[%c2_66, %c2_67] : memref<3x3xf32, #tpu.memory_space<smem>>
    %121 = vector.broadcast %120 : f32 to vector<16x16xf32>
    %122 = arith.mulf %121, %74 : vector<16x16xf32>
    %123 = arith.addf %119, %122 : vector<16x16xf32>
    %c5 = arith.constant 5 : index
    %124 = memref.load %arg6[%c5] : memref<6xf32, #tpu.memory_space<smem>>
    %125 = vector.broadcast %124 : f32 to vector<16x16xf32>
    %126 = arith.addf %123, %125 : vector<16x16xf32>
    %127 = math.tanh %126 : vector<16x16xf32>
    %128 = arith.addf %74, %127 : vector<16x16xf32>
    %cst_68 = arith.constant dense<0.000000e+00> : vector<24x16xf32>
    %129 = tpu.matmul %4, %128, %cst_68 {dimension_numbers = #tpu.dot_dimension_numbers<[1], [0], [0], [1], [0, 0, 1, 1], [], []>, precision = #tpu.contract_precision<fp32>} : vector<24x16xf32>, vector<16x16xf32>, vector<24x16xf32> -> vector<24x16xf32>
    %cst_69 = arith.constant dense<0.000000e+00> : vector<24x24xf32>
    %130 = tpu.matmul %129, %5, %cst_69 {dimension_numbers = #tpu.dot_dimension_numbers<[1], [0], [0], [1], [0, 0, 1, 1], [], []>, precision = #tpu.contract_precision<fp32>} : vector<24x16xf32>, vector<16x24xf32>, vector<24x24xf32> -> vector<24x24xf32>
    %c120 = arith.constant 120 : index
    %c0_70 = arith.constant 0 : index
    %131 = vector.load %arg7[%c120, %c0_70] : memref<144x24xf32, #tpu.memory_space<vmem>>, vector<24x24xf32>
    tpu.vector_store %arg7[%c120, %c0_70], %130 {strides = array<i32>} : memref<144x24xf32, #tpu.memory_space<vmem>>, vector<24x24xf32>,
    return
  }
}

</mosaic_0001>

<bundles_post_ra>
// kernel: tpu_custom_call.1
= control target key start
LH: loop header
LB: loop body
LE: loop exit
PB: predicated region body
PF: predicated region fallthrough
CT: control target
= control target key end

     0   :  { %12 = vsyncpa [#allocation3], 0  ;;  %s16087_s0 = inlined_call_operand.vmem [shape: f32[144,24], index: 0, kind: input, shape index: {}]   ;;  %s16088_s1 = inlined_call_operand.vmem [shape: f32[24,16], index: 1, kind: input, shape index: {}]   ;;  %s16089_s2 = inlined_call_operand.vmem [shape: f32[16,24], index: 2, kind: input, shape index: {}]   ;;  %s16090_s3 = inlined_call_operand.vmem [shape: f32[24,16], index: 3, kind: input, shape index: {}]   ;;  %s16091_s4 = inlined_call_operand.vmem [shape: f32[16,24], index: 4, kind: input, shape index: {}]   ;;  %s16092_s5 = inlined_call_operand.vmem [shape: f32[3,3], index: 5, kind: input, shape index: {}]   ;;  %s16093_s6 = inlined_call_operand.vmem [shape: f32[6], index: 6, kind: input, shape index: {}]   ;;  %s16094_s7 = inlined_call_operand.vmem [shape: f32[144,24], index: 7, kind: output, shape index: {}]  }
   0x1   :  { %s30_s26 = sshll.u32 %s16092_s5, 4  ;;  %s31_s26 = int_to_ptr.vmem [resolvable:$true] %s30_s26 }
   0x2   :  { %13 = vsyncpa [#allocation5], 0  ;;  %s40_s29 = sshll.u32 %s16093_s6, 4  ;;  %s14273_s30 = scalar_lea.vmem %s31_s26, 64  ;;  %s41_s29 = int_to_ptr.vmem [resolvable:$true] %s40_s29 }
   0x3   :  { %p14274_p0 = scmp.ne.s32.totalorder %s31_s26, %s14273_s30  ;;  %p14278_p1 = scmp.lt.s32.totalorder %s31_s26, %s31_s26 }
   0x4   :  { %p14279_p2 = scmp.lt.s32.totalorder %s14273_s30, %s14273_s30 }
   0x6   :  { %p14280_p3 = por %p14279_p2, %p14278_p1 }
   0x8   :  { %p14281_p4 = pnand %p14280_p3, %p14274_p0 }
   0xa   :  { %14284 = shalt.err (!%p14281_p4)
}
   0xb   :  { %s14301_s8 = smov [#allocation2]   ;;  %s14285_s9 = scalar_lea.vmem %s41_s29, 16 }
   0xc   :  { %33 = dma.vmem_to_smem %s31_s26, 64, %s14301_s8, [#allocation3]  }
   0xd   :  { %p14286_p5 = scmp.ne.s32.totalorder %s41_s29, %s14285_s9  ;;  %p14290_p6 = scmp.lt.s32.totalorder %s41_s29, %s41_s29 }
   0xe   :  { %p14291_p7 = scmp.lt.s32.totalorder %s14285_s9, %s14285_s9 }
  0x10   :  { %p14292_p8 = por %p14291_p7, %p14290_p6 }
  0x12   :  { %p14293_p9 = pnand %p14292_p8, %p14286_p5 }
  0x14   :  { %14296 = shalt.err (!%p14293_p9)
}
  0x15   :  { %s14302_s5 = smov [#allocation4]  }
  0x16   :  { %43 = dma.vmem_to_smem %s41_s29, 16, %s14302_s5, [#allocation5]  }
  0x17   :  { %14297 = dma.done.wait [#allocation3], 64  }
  0x18   :  { %14298 = vsyncadd [#allocation3], 4294967232 }
  0x19   :  { %14299 = dma.done.wait [#allocation5], 16  }
  0x1a   :  { %14300 = vsyncadd [#allocation5], 4294967280 }
  0x1b   :  { %50 = sfence }
  0x1c   :  { %v69_v0 = vld [vmem:[%s16088_s1] sm:$0xff]  ;;  %v70_v1 = vld [vmem:[%s16088_s1 + $0x8] sm:$0xff]  ;;  %v14361_v2 = vld [vmem:[%s16088_s1 + $0x10] sm:$0xff]  ;;  %vm72_vm0 = vcmask 195584   ;;  %vm14304_vm1 = vmmov 0   ;;  %s11207_s27 = sld [smem:[#allocation2 + $0x80]] }
  0x1d   :  { %v128_v3 = vand.u32 4294901760, %v69_v0  ;;  %v131_v4 = vand.u32 4294901760, %v70_v1  ;;  %v51_v5 = vld [vmem:[%s16087_s0] sm:$0xff]  ;;  %v52_v6 = vld [vmem:[%s16087_s0 + $0x8] sm:$0xff]  ;;  %v53_v7 = vld [vmem:[%s16087_s0 + $0x10] sm:$0xff]  ;;  %v14373_v8 = vand.u32 4294901760, %v14361_v2 }
  0x1e   :  { %v74_v9 = vsel %vm72_vm0, %v51_v5, 0  ;;  %v77_v10 = vsel %vm72_vm0, %v52_v6, 0  ;;  %v80_v11 = vsel %vm72_vm0, %v53_v7, 0  ;;  %v54_v12 = vld [vmem:[%s16087_s0 + $0x18] sm:$0xff]  ;;  %v55_v13 = vld [vmem:[%s16087_s0 + $0x20] sm:$0xff]  ;;  %v56_v18 = vld [vmem:[%s16087_s0 + $0x28] sm:$0xff] }
  0x1f   :  { %v14384_v14 = vpack.c.bf16 %v131_v4, %v128_v3  ;;  %v14386_v15 = vand.u32 4294901760, %v74_v9  ;;  %v14388_v16 = vand.u32 4294901760, %v77_v10  ;;  %v14390_v17 = vand.u32 4294901760, %v80_v11  ;;  %v57_v43 = vld [vmem:[%s16087_s0 + $0x30] sm:$0xff]  ;;  %v58_v48 = vld [vmem:[%s16087_s0 + $0x38] sm:$0xff]  ;;  %v59_v49 = vld [vmem:[%s16087_s0 + $0x40] sm:$0xff] }
  0x20   :  { %v83_v19 = vsel %vm72_vm0, %v54_v12, 0  ;;  %v14396_v20 = vsub.f32 %v69_v0, %v128_v3  ;;  %v14398_v21 = vsub.f32 %v70_v1, %v131_v4  ;;  %v86_v22 = vsel %vm72_vm0, %v55_v13, 0  ;;  %v60_v58 = vld [vmem:[%s16087_s0 + $0x48] sm:$0xff]  ;;  %v61_v59 = vld [vmem:[%s16087_s0 + $0x50] sm:$0xff]  ;;  %v62_v60 = vld [vmem:[%s16087_s0 + $0x58] sm:$0xff]  ;;  %s11211_s28 = sld [smem:[#allocation2 + $0x100]] }
  0x21   :  { %13351 = vmatprep.subr.bf16.mxu0 %v14384_v14  ;;  %v14403_v23 = vsub.f32 %v74_v9, %v14386_v15  ;;  %v14406_v24 = vsub.f32 %v77_v10, %v14388_v16  ;;  %v14409_v25 = vsub.f32 %v80_v11, %v14390_v17  ;;  %v14411_v26 = vand.u32 4294901760, %v83_v19  ;;  %v63_v11 = vld [vmem:[%s16087_s0 + $0x60] sm:$0xff]  ;;  %s11205_s29 = sld [smem:[#allocation2 + $0x1]]  ;;  %s11206_s9 = sld [smem:[#allocation2 + $0x2]] }
  0x22   :  { %13353 = vmatpush3.bf16.msra.mxu0 %v14384_v14  ;;  %v378_v27 = vand.u32 4294901760, %v14396_v20  ;;  %v385_v28 = vand.u32 4294901760, %v14398_v21  ;;  %v14416_v29 = vand.u32 4294901760, %v86_v22  ;;  %v89_v30 = vsel %vm72_vm0, %v56_v18, 0  ;;  %s11208_s30 = sld [smem:[#allocation2 + $0x81]]  ;;  %s11209_s5 = sld [smem:[#allocation2 + $0x82]] }
  0x23   :  { %11896 = vmatprep.subr.mxu0 %v14373_v8  ;;  %v197_v31 = vand.u32 4294901760, %v14403_v23  ;;  %v207_v32 = vand.u32 4294901760, %v14406_v24  ;;  %v217_v33 = vand.u32 4294901760, %v14409_v25  ;;  %v14424_v34 = vsub.f32 %v83_v19, %v14411_v26  ;;  %s11212_s8 = sld [smem:[#allocation2 + $0x101]]  ;;  %s11213_s6 = sld [smem:[#allocation2 + $0x102]] }
  0x24   :  { %v379_v35 = vsub.f32 %v14396_v20, %v378_v27  ;;  %v386_v36 = vsub.f32 %v14398_v21, %v385_v28  ;;  %v14433_v37 = vsub.f32 %v86_v22, %v14416_v29  ;;  %v14435_v38 = vand.u32 4294901760, %v89_v30  ;;  %s14961_s10 = sld [smem:[#allocation4]]  ;;  %s14963_s11 = sld [smem:[#allocation4 + $0x1]] }
  0x25   :  { %v198_v39 = vsub.f32 %v14403_v23, %v197_v31  ;;  %v208_v40 = vsub.f32 %v14406_v24, %v207_v32  ;;  %v218_v41 = vsub.f32 %v14409_v25, %v217_v33  ;;  %v227_v42 = vand.u32 4294901760, %v14424_v34  ;;  %s14965_s12 = sld [smem:[#allocation4 + $0x2]]  ;;  %s11222_s13 = sld [smem:[#allocation2 + $0x100]] }
  0x26   :  { %11897 = vmatpush3.msra.mxu0 %v14373_v8  ;;  %v380_v44 = vand.u32 4294901760, %v379_v35  ;;  %v387_v45 = vand.u32 4294901760, %v386_v36  ;;  %v237_v46 = vand.u32 4294901760, %v14433_v37  ;;  %v14453_v47 = vsub.f32 %v89_v30, %v14435_v38  ;;  %s11216_s14 = sld [smem:[#allocation2 + $0x2]]  ;;  %s15606_s17 = sld [smem:[#allocation2 + $0x1]] }
  0x27   :  { %v199_v50 = vand.u32 4294901760, %v198_v39  ;;  %v209_v51 = vand.u32 4294901760, %v208_v40  ;;  %v219_v52 = vand.u32 4294901760, %v218_v41  ;;  %v228_v53 = vsub.f32 %v14424_v34, %v227_v42  ;;  %s11220_s15 = sld [smem:[#allocation2 + $0x82]]  ;;  %s15608_s18 = sld [smem:[#allocation2 + $0x81]] }
  0x28   :  { %v13354_v54 = vpack.c.bf16 %v387_v45, %v380_v44  ;;  %v238_v55 = vsub.f32 %v14433_v37, %v237_v46  ;;  %v247_v56 = vand.u32 4294901760, %v14453_v47  ;;  %v92_v57 = vsel %vm72_vm0, %v57_v43, 0  ;;  %s11224_s16 = sld [smem:[#allocation2 + $0x102]]  ;;  %s15612_s19 = sld [smem:[#allocation4 + $0x3]] }
  0x29   :  { %11898 = vmatprep.mubr.f32.mxu0 %v199_v50  ;;  %v229_v61 = vand.u32 4294901760, %v228_v53  ;;  %v14478_v62 = vand.u32 4294901760, %v92_v57  ;;  %v95_v63 = vsel %vm72_vm0, %v58_v48, 0  ;;  %v98_v0 = vsel %vm72_vm0, %v59_v49, 0  ;;  %v64_v53 = vld [vmem:[%s16087_s0 + $0x68] sm:$0xff]  ;;  %s15614_s20 = sld [smem:[#allocation4 + $0x4]] }
  0x2a   :  { %11899 = vmatmul.mubr.f32.vlgmr.msra.gmra.mrb[0].mxu0 %v209_v51  ;;  %13355 = vmatprep.subr.bf16.mxu0 %v13354_v54  ;;  %v239_v1 = vand.u32 4294901760, %v238_v55  ;;  %v248_v3 = vsub.f32 %v14453_v47, %v247_v56  ;;  %v14485_v4 = vand.u32 4294901760, %v95_v63  ;;  %v14487_v5 = vand.u32 4294901760, %v98_v0  ;;  %s15616_s1 = sld [smem:[#allocation4 + $0x5]] }
  0x2b   :  { %11901 = vmatprep.mubr.f32.mxu0 %v219_v52  ;;  %13357 = vmatpush3.bf16.msra.mxu0 %v13354_v54  ;;  %v14490_v6 = vsub.f32 %v92_v57, %v14478_v62  ;;  %v101_v7 = vsel %vm72_vm0, %v60_v58, 0  ;;  %v104_v9 = vsel %vm72_vm0, %v61_v59, 0  ;;  %v107_v10 = vsel %vm72_vm0, %v62_v60, 0  ;;  %v65_v59 = vld [vmem:[%s16087_s0 + $0x70] sm:$0xff] }
  0x2c   :  { %v249_v12 = vand.u32 4294901760, %v248_v3  ;;  %v14499_v13 = vsub.f32 %v95_v63, %v14485_v4  ;;  %v14502_v18 = vsub.f32 %v98_v0, %v14487_v5  ;;  %v14504_v19 = vand.u32 4294901760, %v101_v7  ;;  %v66_v0 = vld [vmem:[%s16087_s0 + $0x78] sm:$0xff] }
  0x2d   :  { %v257_v22 = vand.u32 4294901760, %v14490_v6  ;;  %v14507_v30 = vand.u32 4294901760, %v104_v9  ;;  %v14509_v35 = vand.u32 4294901760, %v107_v10  ;;  %v14513_v36 = vsub.f32 %v14361_v2, %v14373_v8 }
  0x2e   :  { %11902 = vmatmul.mubr.f32.gmra.mrb[2].mxu0 %v229_v61  ;;  %v16100_v39 = vand.u32 4294901760, %v14499_v13  ;;  %v16099_v40 = vand.u32 4294901760, %v14502_v18  ;;  %v14518_v41 = vsub.f32 %v101_v7, %v14504_v19  ;;  %v110_v43 = vsel %vm72_vm0, %v63_v11, 0 }
  0x2f   :  { %11904 = vmatprep.mubr.f32.mxu0 %v239_v1  ;;  %v258_v44 = vsub.f32 %v14490_v6, %v257_v22  ;;  %v14525_v45 = vsub.f32 %v104_v9, %v14507_v30  ;;  %v14528_v2 = vsub.f32 %v107_v10, %v14509_v35  ;;  %v14531_v48 = vand.u32 4294901760, %v14513_v36  ;;  %v67_v10 = vld [vmem:[%s16087_s0 + $0x80] sm:$0xff] }
  0x30   :  { %v268_v49 = vsub.f32 %v14499_v13, %v16100_v39  ;;  %v278_v50 = vsub.f32 %v14502_v18, %v16099_v40  ;;  %v16097_v51 = vand.u32 4294901760, %v14518_v41  ;;  %v14540_v52 = vand.u32 4294901760, %v110_v43 }
  0x31   :  { %v259_v54 = vand.u32 4294901760, %v258_v44  ;;  %v16096_v55 = vand.u32 4294901760, %v14525_v45  ;;  %v16095_v57 = vand.u32 4294901760, %v14528_v2  ;;  %v393_v58 = vsub.f32 %v14513_v36, %v14531_v48 }
  0x32   :  { %11905 = vmatmul.mubr.f32.gmra.mrb[4].mxu0 %v249_v12  ;;  %v269_v60 = vand.u32 4294901760, %v268_v49  ;;  %v288_v61 = vsub.f32 %v14518_v41, %v16097_v51  ;;  %v14556_v63 = vsub.f32 %v110_v43, %v14540_v52  ;;  %v279_v1 = vand.u32 4294901760, %v278_v50  ;;  %v68_v49 = vld [vmem:[%s16087_s0 + $0x88] sm:$0xff] }
  0x33   :  { %11907 = vmatprep.mubr.f32.mxu0 %v259_v54  ;;  %v298_v3 = vsub.f32 %v14525_v45, %v16096_v55  ;;  %v394_v7 = vand.u32 4294901760, %v393_v58  ;;  %v113_v9 = vsel %vm72_vm0, %v64_v53, 0  ;;  %v308_v11 = vsub.f32 %v14528_v2, %v16095_v57 }
  0x34   :  { %v16098_v12 = vand.u32 4294901760, %v14556_v63  ;;  %v14572_v43 = vand.u32 4294901760, %v113_v9  ;;  %v116_v44 = vsel %vm72_vm0, %v65_v59, 0  ;;  %v289_v50 = vand.u32 4294901760, %v288_v61 }
  0x35   :  { %v299_v53 = vand.u32 4294901760, %v298_v3  ;;  %11929 = vmatprep.subr.mxu0 %v394_v7  ;;  %v14578_v54 = vand.u32 4294901760, %v116_v44  ;;  %v119_v58 = vsel %vm72_vm0, %v66_v0, 0  ;;  %v122_v51 = vsel %vm72_vm0, %v67_v10, 0 }
  0x36   :  { %11908 = vmatmul.mubr.f32.gmra.mrb[6].mxu0 %v269_v60  ;;  %v318_v57 = vsub.f32 %v14556_v63, %v16098_v12  ;;  %v14585_v55 = vsub.f32 %v113_v9, %v14572_v43  ;;  %v14587_v59 = vand.u32 4294901760, %v119_v58  ;;  %v14593_v3 = vand.u32 4294901760, %v122_v51 }
  0x37   :  { %11910 = vmatprep.mubr.f32.mxu0 %v279_v1  ;;  %11930 = vmatpush3.msra.mxu0 %v394_v7  ;;  %v14591_v61 = vsub.f32 %v116_v44, %v14578_v54  ;;  %v125_v60 = vsel %vm72_vm0, %v68_v49, 0  ;;  %v13358_v0 = vpack.c.bf16 %v14398_v21, %v14396_v20  ;;  %v14612_v10 = vpack.c.bf16 %v385_v28, %v378_v27 }
  0x38   :  { %v327_v12 = vand.u32 4294901760, %v14585_v55  ;;  %v14600_v9 = vsub.f32 %v119_v58, %v14587_v59  ;;  %v14602_v40 = vand.u32 4294901760, %v125_v60  ;;  %v14606_v7 = vsub.f32 %v122_v51, %v14593_v3 }
  0x39   :  { %v337_v1 = vand.u32 4294901760, %v14591_v61  ;;  %13359 = vmatprep.subr.bf16.mxu0 %v13358_v0  ;;  %v309_v44 = vand.u32 4294901760, %v308_v11  ;;  %v319_v51 = vand.u32 4294901760, %v318_v57  ;;  %vm2912_vm2 = vcmask 130048  }
  0x3a   :  { %11911 = vmatmul.mubr.f32.gmra.mrb[8].mxu0 %v289_v50  ;;  %v328_v49 = vsub.f32 %v14585_v55, %v327_v12  ;;  %v347_v58 = vand.u32 4294901760, %v14600_v9  ;;  %v14619_v39 = vsub.f32 %v125_v60, %v14602_v40  ;;  %v357_v21 = vand.u32 4294901760, %v14606_v7 }
  0x3b   :  { %11913 = vmatprep.mubr.f32.mxu0 %v299_v53  ;;  %v338_v20 = vsub.f32 %v14591_v61, %v337_v1 }
  0x3c   :  { %v329_v27 = vand.u32 4294901760, %v328_v49  ;;  %v348_v28 = vsub.f32 %v14600_v9, %v347_v58  ;;  %v367_v11 = vand.u32 4294901760, %v14619_v39  ;;  %v358_v57 = vsub.f32 %v14606_v7, %v357_v21 }
  0x3d   :  { %v339_v50 = vand.u32 4294901760, %v338_v20 }
  0x3e   :  { %11914 = vmatmul.mubr.f32.gmra.mrb[10].mxu0 %v309_v44  ;;  %v349_v53 = vand.u32 4294901760, %v348_v28  ;;  %v368_v60 = vsub.f32 %v14619_v39, %v367_v11  ;;  %v359_v44 = vand.u32 4294901760, %v358_v57 }
  0x3f   :  { %11916 = vmatprep.mubr.f32.mxu0 %v319_v51 }
  0x40   :  { %v369_v49 = vand.u32 4294901760, %v368_v60 }
  0x42   :  { %11917 = vmatmul.mubr.f32.gmra.mrb[12].mxu0 %v329_v27 }
  0x43   :  { %11919 = vmatprep.mubr.f32.mxu0 %v339_v50 }
  0x46   :  { %11920 = vmatmul.mubr.f32.gmra.mrb[14].mxu0 %v349_v53 }
  0x47   :  { %11922 = vmatprep.mubr.f32.mxu0 %v359_v44 }
  0x4a   :  { %11923 = vmatmul.mubr.f32.gmra.mrb[16].mxu0 %v369_v49 }
  0x4b   :  { %11931 = vmatprep.mubr.f32.mxu0 %v14386_v15 }
  0x4e   :  { %11932 = vmatmul.mubr.f32.vlgmr.msra.gmra.mrb[0].mxu0 %v14388_v16 }
  0x4f   :  { %11934 = vmatprep.mubr.f32.mxu0 %v14390_v17  ;;  %13361 = vmatpush3.bf16.msra.mxu0 %v13358_v0 }
  0x50   :  { %11962 = vmatprep.subr.mxu0 %v14513_v36 }
  0x52   :  { %11935 = vmatmul.mubr.f32.gmra.mrb[2].mxu0 %v14411_v26 }
  0x53   :  { %11937 = vmatprep.mubr.f32.mxu0 %v14416_v29  ;;  %11963 = vmatpush3.msra.mxu0 %v14513_v36 }
  0x54   :  { %13363 = vmatprep.subr.bf16.mxu0 %v14384_v14 }
  0x56   :  { %11938 = vmatmul.mubr.f32.gmra.mrb[4].mxu0 %v14435_v38 }
  0x57   :  { %11940 = vmatprep.mubr.f32.mxu0 %v14478_v62 }
  0x5a   :  { %11941 = vmatmul.mubr.f32.gmra.mrb[6].mxu0 %v14485_v4 }
  0x5b   :  { %11943 = vmatprep.mubr.f32.mxu0 %v14487_v5 }
  0x5e   :  { %11944 = vmatmul.mubr.f32.gmra.mrb[8].mxu0 %v14504_v19 }
  0x5f   :  { %11946 = vmatprep.mubr.f32.mxu0 %v14507_v30 }
  0x62   :  { %11947 = vmatmul.mubr.f32.gmra.mrb[10].mxu0 %v14509_v35 }
  0x63   :  { %11949 = vmatprep.mubr.f32.mxu0 %v14540_v52 }
  0x66   :  { %11950 = vmatmul.mubr.f32.gmra.mrb[12].mxu0 %v14572_v43 }
  0x67   :  { %11952 = vmatprep.mubr.f32.mxu0 %v14578_v54 }
  0x6a   :  { %11953 = vmatmul.mubr.f32.gmra.mrb[14].mxu0 %v14587_v59 }
  0x6b   :  { %11955 = vmatprep.mubr.f32.mxu0 %v14593_v3 }
  0x6e   :  { %11956 = vmatmul.mubr.f32.gmra.mrb[16].mxu0 %v14602_v40 }
  0x6f   :  { %11964 = vmatprep.mubr.f32.mxu0 %v14403_v23  ;;  %v16101_v23 = vand.u32 4294901760, %v14499_v13 }
  0x72   :  { %11965 = vmatmul.mubr.f32.vlgmr.msra.gmra.mrb[0].mxu0 %v14406_v24  ;;  %v16102_v24 = vand.u32 4294901760, %v14502_v18 }
  0x73   :  { %11967 = vmatprep.mubr.f32.mxu0 %v14409_v25  ;;  %13365 = vmatpush3.bf16.msra.mxu0 %v14384_v14  ;;  %v16103_v25 = vand.u32 4294901760, %v14518_v41 }
  0x74   :  { %11995 = vmatprep.subr.mxu0 %v14373_v8 }
  0x76   :  { %11968 = vmatmul.mubr.f32.gmra.mrb[2].mxu0 %v14424_v34  ;;  %v1331_v34 = vld [vmem:[%s16089_s2 + $0x8] sm:$0xff] }
  0x77   :  { %11970 = vmatprep.mubr.f32.mxu0 %v14433_v37  ;;  %11996 = vmatpush3.msra.mxu0 %v14373_v8  ;;  %v1341_v37 = vsel %vm72_vm0, %v1331_v34, 0 }
  0x78   :  { %13367 = vmatprep.subr.bf16.mxu0 %v14612_v10 }
  0x7a   :  { %11971 = vmatmul.mubr.f32.gmra.mrb[4].mxu0 %v14453_v47 }
  0x7b   :  { %11973 = vmatprep.mubr.f32.mxu0 %v14490_v6 }
  0x7e   :  { %11974 = vmatmul.mubr.f32.gmra.mrb[6].mxu0 %v14499_v13 }
  0x7f   :  { %11976 = vmatprep.mubr.f32.mxu0 %v14502_v18 }
  0x82   :  { %11977 = vmatmul.mubr.f32.gmra.mrb[8].mxu0 %v14518_v41 }
  0x83   :  { %11979 = vmatprep.mubr.f32.mxu0 %v14525_v45 }
  0x86   :  { %11980 = vmatmul.mubr.f32.gmra.mrb[10].mxu0 %v14528_v2 }
  0x87   :  { %11982 = vmatprep.mubr.f32.mxu0 %v14556_v63 }
  0x8a   :  { %11983 = vmatmul.mubr.f32.gmra.mrb[12].mxu0 %v14585_v55 }
  0x8b   :  { %11985 = vmatprep.mubr.f32.mxu0 %v14591_v61 }
  0x8e   :  { %11986 = vmatmul.mubr.f32.gmra.mrb[14].mxu0 %v14600_v9 }
  0x8f   :  { %11988 = vmatprep.mubr.f32.mxu0 %v14606_v7 }
  0x92   :  { %11989 = vmatmul.mubr.f32.gmra.mrb[16].mxu0 %v14619_v39 }
  0x93   :  { %11997 = vmatprep.mubr.f32.mxu0 %v197_v31  ;;  %v16104_v31 = vand.u32 4294901760, %v14525_v45 }
  0x96   :  { %11998 = vmatmul.mubr.f32.vlgmr.msra.gmra.mrb[0].mxu0 %v207_v32  ;;  %v16105_v32 = vand.u32 4294901760, %v14528_v2 }
  0x97   :  { %12000 = vmatprep.mubr.f32.mxu0 %v217_v33  ;;  %13369 = vmatpush3.bf16.msra.mxu0 %v14612_v10  ;;  %v16106_v33 = vand.u32 4294901760, %v14556_v63 }
  0x98   :  { %12028 = vmatprep.subr.mxu0 %v14531_v48 }
  0x9a   :  { %12001 = vmatmul.mubr.f32.gmra.mrb[2].mxu0 %v227_v42 }
  0x9b   :  { %12003 = vmatprep.mubr.f32.mxu0 %v237_v46  ;;  %12029 = vmatpush3.msra.mxu0 %v14531_v48 }
  0x9c   :  { %13371 = vmatprep.subr.bf16.mxu0 %v14384_v14 }
  0x9e   :  { %12004 = vmatmul.mubr.f32.gmra.mrb[4].mxu0 %v247_v56 }
  0x9f   :  { %12006 = vmatprep.mubr.f32.mxu0 %v257_v22 }
  0xa2   :  { %12007 = vmatmul.mubr.f32.gmra.mrb[6].mxu0 %v16101_v23 }
  0xa3   :  { %12009 = vmatprep.mubr.f32.mxu0 %v16102_v24 }
  0xa6   :  { %12010 = vmatmul.mubr.f32.gmra.mrb[8].mxu0 %v16103_v25 }
  0xa7   :  { %12012 = vmatprep.mubr.f32.mxu0 %v16104_v31 }
  0xaa   :  { %12013 = vmatmul.mubr.f32.gmra.mrb[10].mxu0 %v16105_v32 }
  0xab   :  { %12015 = vmatprep.mubr.f32.mxu0 %v16106_v33 }
  0xae   :  { %12016 = vmatmul.mubr.f32.gmra.mrb[12].mxu0 %v327_v12 }
  0xaf   :  { %12018 = vmatprep.mubr.f32.mxu0 %v337_v1 }
  0xb2   :  { %12019 = vmatmul.mubr.f32.gmra.mrb[14].mxu0 %v347_v58 }
  0xb3   :  { %12021 = vmatprep.mubr.f32.mxu0 %v357_v21 }
  0xb6   :  { %12022 = vmatmul.mubr.f32.gmra.mrb[16].mxu0 %v367_v11 }
  0xb7   :  { %12030 = vmatprep.mubr.f32.mxu0 %v14386_v15 }
  0xba   :  { %12031 = vmatmul.mubr.f32.vlgmr.msra.gmra.mrb[0].mxu0 %v14388_v16 }
  0xbb   :  { %12033 = vmatprep.mubr.f32.mxu0 %v14390_v17  ;;  %13373 = vmatpush3.bf16.msra.mxu0 %v14384_v14 }
  0xbc   :  { %12061 = vmatprep.subr.mxu0 %v14373_v8 }
  0xbe   :  { %12034 = vmatmul.mubr.f32.gmra.mrb[2].mxu0 %v14411_v26 }
  0xbf   :  { %12036 = vmatprep.mubr.f32.mxu0 %v14416_v29  ;;  %12062 = vmatpush3.msra.mxu0 %v14373_v8  ;;  %v1330_v8 = vld [vmem:[%s16089_s2] sm:$0xff]  ;;  %s2888_s2 = sld [smem:[#allocation2]] }
  0xc0   :  { %v1338_v14 = vsel %vm72_vm0, %v1330_v8, 0 }
  0xc2   :  { %12037 = vmatmul.mubr.f32.gmra.mrb[4].mxu0 %v14435_v38 }
  0xc3   :  { %12039 = vmatprep.mubr.f32.mxu0 %v14478_v62 }
  0xc6   :  { %12040 = vmatmul.mubr.f32.gmra.mrb[6].mxu0 %v14485_v4 }
  0xc7   :  { %12042 = vmatprep.mubr.f32.mxu0 %v14487_v5 }
  0xca   :  { %12043 = vmatmul.mubr.f32.gmra.mrb[8].mxu0 %v14504_v19 }
  0xcb   :  { %12045 = vmatprep.mubr.f32.mxu0 %v14507_v30 }
  0xce   :  { %12046 = vmatmul.mubr.f32.gmra.mrb[10].mxu0 %v14509_v35 }
  0xcf   :  { %12048 = vmatprep.mubr.f32.mxu0 %v14540_v52 }
  0xd2   :  { %12049 = vmatmul.mubr.f32.gmra.mrb[12].mxu0 %v14572_v43 }
  0xd3   :  { %12051 = vmatprep.mubr.f32.mxu0 %v14578_v54 }
  0xd6   :  { %12052 = vmatmul.mubr.f32.gmra.mrb[14].mxu0 %v14587_v59 }
  0xd7   :  { %12054 = vmatprep.mubr.f32.mxu0 %v14593_v3 }
  0xda   :  { %12055 = vmatmul.mubr.f32.gmra.mrb[16].mxu0 %v14602_v40 }
  0xdb   :  { %12063 = vmatprep.mubr.f32.mxu0 %v14386_v15  ;;  %v14761_v15 = vand.u32 4294901760, %v1338_v14 }
  0xde   :  { %12064 = vmatmul.mubr.f32.vlgmr.msra.gmra.mrb[0].mxu0 %v14388_v16  ;;  %v14764_v16 = vsub.f32 %v1338_v14, %v14761_v15 }
  0xdf   :  { %12066 = vmatprep.mubr.f32.mxu0 %v14390_v17 }
  0xe0   :  { %v14767_v17 = vand.u32 4294901760, %v14764_v16 }
  0xe2   :  { %12067 = vmatmul.mubr.f32.gmra.mrb[2].mxu0 %v14411_v26  ;;  %v1414_v26 = vsub.f32 %v14764_v16, %v14767_v17 }
  0xe3   :  { %12069 = vmatprep.mubr.f32.mxu0 %v14416_v29 }
  0xe4   :  { %v14771_v29 = vand.u32 4294901760, %v1414_v26 }
  0xe6   :  { %12070 = vmatmul.mubr.f32.gmra.mrb[4].mxu0 %v14435_v38  ;;  %12096 = vmatprep.mubr.f32.mxu1 %v14771_v29  ;;  %v14778_v38 = vand.u32 4294901760, %v1341_v37 }
  0xe7   :  { %12072 = vmatprep.mubr.f32.mxu0 %v14478_v62 }
  0xe8   :  { %v14781_v42 = vsub.f32 %v1341_v37, %v14778_v38 }
  0xea   :  { %12073 = vmatmul.mubr.f32.gmra.mrb[6].mxu0 %v14485_v4  ;;  %v14784_v47 = vand.u32 4294901760, %v14781_v42 }
  0xeb   :  { %12075 = vmatprep.mubr.f32.mxu0 %v14487_v5 }
  0xee   :  { %12076 = vmatmul.mubr.f32.gmra.mrb[8].mxu0 %v14504_v19  ;;  %v1424_v19 = vsub.f32 %v14781_v42, %v14784_v47 }
  0xef   :  { %12078 = vmatprep.mubr.f32.mxu0 %v14507_v30 }
  0xf0   :  { %v14800_v55 = vand.u32 4294901760, %v1424_v19 }
  0xf2   :  { %12079 = vmatmul.mubr.f32.gmra.mrb[10].mxu0 %v14509_v35 }
  0xf3   :  { %12081 = vmatprep.mubr.f32.mxu0 %v14540_v52 }
  0xf6   :  { %12082 = vmatmul.mubr.f32.gmra.mrb[12].mxu0 %v14572_v43 }
  0xf7   :  { %12084 = vmatprep.mubr.f32.mxu0 %v14578_v54 }
  0xfa   :  { %12085 = vmatmul.mubr.f32.gmra.mrb[14].mxu0 %v14587_v59 }
  0xfb   :  { %12087 = vmatprep.mubr.f32.mxu0 %v14593_v3 }
  0xfe   :  { %12088 = vmatmul.mubr.f32.gmra.mrb[16].mxu0 %v14602_v40 }
 0x1b1   :  { %v12065_v46 = vpop.f32.mrb[0].mxu0 }
 0x1b2   :  { %v1347_v56 = vand.u32 4294901760, %v12065_v46  ;;  %v1224_v62 = vpop.f32.mrb[1].mxu0 }
 0x1b3   :  { %v1344_v4 = vand.u32 4294901760, %v1224_v62 }
 0x1b4   :  { %v1440_v5 = vsub.f32 %v12065_v46, %v1347_v56 }
 0x1b5   :  { %v14786_v6 = vpack.c.bf16 %v1347_v56, %v1344_v4  ;;  %v1433_v13 = vsub.f32 %v1224_v62, %v1344_v4  ;;  %v12068_v18 = vpop.f32.mrb[2].mxu0 }
 0x1b6   :  { %v1441_v22 = vand.u32 4294901760, %v1440_v5  ;;  %v1859_v30 = vand.u32 4294901760, %v12068_v18  ;;  %v1236_v35 = vpop.f32.mrb[3].mxu0 }
 0x1b7   :  { %v1434_v36 = vand.u32 4294901760, %v1433_v13  ;;  %v14790_v39 = vand.u32 4294901760, %v1236_v35  ;;  %13375 = vmatprep.subr.bf16.mxu1 %v14786_v6  ;;  %v13382_v40 = vpack.c.bf16 %v1440_v5, %v1433_v13 }
 0x1b8   :  { %v1442_v41 = vsub.f32 %v1440_v5, %v1441_v22  ;;  %v1948_v45 = vsub.f32 %v12068_v18, %v1859_v30  ;;  %13377 = vmatpush3.bf16.msra.mxu1 %v14786_v6 }
 0x1b9   :  { %v1435_v2 = vsub.f32 %v1433_v13, %v1434_v36  ;;  %v14795_v48 = vsub.f32 %v1236_v35, %v14790_v39  ;;  %v14797_v52 = vpop.f32.mrb[4].mxu0  ;;  %12094 = vmatprep.subr.mxu1 %v14790_v39  ;;  %v14802_v63 = vpack.c.bf16 %v1441_v22, %v1434_v36 }
 0x1ba   :  { %v1949_v12 = vand.u32 4294901760, %v1948_v45  ;;  %v1248_v43 = vpop.f32.mrb[5].mxu0  ;;  %v1443_v54 = vand.u32 4294901760, %v1442_v41 }
 0x1bb   :  { %v1862_v59 = vand.u32 4294901760, %v1248_v43  ;;  %v1436_v61 = vand.u32 4294901760, %v1435_v2  ;;  %v14805_v3 = vand.u32 4294901760, %v14795_v48 }
 0x1bc   :  { %12095 = vmatpush3.msra.mxu1 %v14790_v39  ;;  %v1950_v58 = vsub.f32 %v1948_v45, %v1949_v12 }
 0x1bd   :  { %v14808_v0 = vpack.c.bf16 %v1862_v59, %v1859_v30  ;;  %v1955_v9 = vsub.f32 %v1248_v43, %v1862_v59  ;;  %v12074_v1 = vpop.f32.mrb[6].mxu0  ;;  %12097 = vmatmul.mubr.f32.vlgmr.msra.gmra.mrb[0].mxu1 %v14800_v55  ;;  %v13378_v7 = vpack.c.bf16 %v1443_v54, %v1436_v61  ;;  %v1449_v10 = vsub.f32 %v14795_v48, %v14805_v3 }
 0x1be   :  { %v2377_v51 = vand.u32 4294901760, %v12074_v1  ;;  %v1260_v20 = vpop.f32.mrb[7].mxu0  ;;  %12105 = vmatprep.mubr.f32.mxu1 %v14761_v15  ;;  %v1951_v32 = vand.u32 4294901760, %v1950_v58 }
 0x1bf   :  { %v1956_v21 = vand.u32 4294901760, %v1955_v9  ;;  %v2374_v27 = vand.u32 4294901760, %v1260_v20  ;;  %13379 = vmatprep.subr.bf16.mxu1 %v13378_v7  ;;  %v1450_v28 = vand.u32 4294901760, %v1449_v10  ;;  %v14814_v11 = vpack.c.bf16 %v1955_v9, %v1948_v45 }
 0x1c0   :  { %v2470_v50 = vsub.f32 %v12074_v1, %v2377_v51  ;;  %13381 = vmatpush3.bf16.msra.mxu1 %v13378_v7 }
 0x1c1   :  { %v1957_v57 = vsub.f32 %v1955_v9, %v1956_v21  ;;  %v14816_v53 = vpack.c.bf16 %v2377_v51, %v2374_v27  ;;  %v2463_v60 = vsub.f32 %v1260_v20, %v2374_v27  ;;  %v12077_v44 = vpop.f32.mrb[8].mxu0  ;;  %12103 = vmatprep.subr.mxu1 %v1450_v28  ;;  %v14818_v49 = vpack.c.bf16 %v1956_v21, %v1949_v12 }
 0x1c2   :  { %v2471_v23 = vand.u32 4294901760, %v2470_v50  ;;  %v6277_v24 = vand.u32 4294901760, %v12077_v44  ;;  %v14820_v25 = vpop.f32.mrb[9].mxu0 }
 0x1c3   :  { %v2464_v31 = vand.u32 4294901760, %v2463_v60  ;;  %v1958_v33 = vand.u32 4294901760, %v1957_v57  ;;  %v14822_v8 = vpack.c.bf16 %v2470_v50, %v2463_v60 }
 0x1c4   :  { %v2472_v14 = vsub.f32 %v2470_v50, %v2471_v23  ;;  %v6366_v26 = vsub.f32 %v12077_v44, %v6277_v24  ;;  %12104 = vmatpush3.msra.mxu1 %v1450_v28 }
 0x1c5   :  { %v2465_v34 = vsub.f32 %v2463_v60, %v2464_v31  ;;  %v14824_v37 = vpop.f32.mrb[10].mxu0  ;;  %12106 = vmatmul.mubr.f32.vlgmr.msra.gmra.mrb[0].mxu1 %v14778_v38  ;;  %13383 = vmatprep.subr.bf16.mxu1 %v13382_v40  ;;  %v14827_v46 = vpack.c.bf16 %v1958_v33, %v1951_v32  ;;  %v14830_v4 = vpack.c.bf16 %v2471_v23, %v2464_v31 }
 0x1c6   :  { %v1284_v56 = vpop.f32.mrb[11].mxu0  ;;  %13385 = vmatpush3.bf16.msra.mxu1 %v13382_v40  ;;  %12114 = vmatprep.mubr.f32.mxu1 %v14764_v16  ;;  %v2473_v62 = vand.u32 4294901760, %v2472_v14  ;;  %v6367_v5 = vand.u32 4294901760, %v6366_v26 }
 0x1c7   :  { %v6280_v13 = vand.u32 4294901760, %v1284_v56  ;;  %12112 = vmatprep.subr.mxu1 %v14795_v48  ;;  %v2466_v18 = vand.u32 4294901760, %v2465_v34 }
 0x1c8   :  { %v6368_v40 = vsub.f32 %v6366_v26, %v6367_v5 }
 0x1c9   :  { %v14833_v19 = vpack.c.bf16 %v6280_v13, %v6277_v24  ;;  %v6373_v22 = vsub.f32 %v1284_v56, %v6280_v13  ;;  %v12083_v30 = vpop.f32.mrb[12].mxu0  ;;  %v14835_v35 = vpack.c.bf16 %v2473_v62, %v2466_v18 }
 0x1ca   :  { %v6795_v36 = vand.u32 4294901760, %v12083_v30  ;;  %v1296_v41 = vpop.f32.mrb[13].mxu0  ;;  %12113 = vmatpush3.msra.mxu1 %v14795_v48  ;;  %v6369_v51 = vand.u32 4294901760, %v6368_v40 }
 0x1cb   :  { %v6374_v45 = vand.u32 4294901760, %v6373_v22  ;;  %v6792_v2 = vand.u32 4294901760, %v1296_v41  ;;  %13387 = vmatprep.subr.bf16.mxu1 %v14786_v6  ;;  %v14839_v12 = vpack.c.bf16 %v6373_v22, %v6366_v26 }
 0x1cc   :  { %v6888_v43 = vsub.f32 %v12083_v30, %v6795_v36 }
 0x1cd   :  { %v6375_v54 = vsub.f32 %v6373_v22, %v6374_v45  ;;  %v14841_v59 = vpack.c.bf16 %v6795_v36, %v6792_v2  ;;  %v6881_v61 = vsub.f32 %v1296_v41, %v6792_v2  ;;  %v12086_v9 = vpop.f32.mrb[14].mxu0  ;;  %12115 = vmatmul.mubr.f32.vlgmr.msra.gmra.mrb[0].mxu1 %v14781_v42  ;;  %v14844_v1 = vpack.c.bf16 %v6374_v45, %v6367_v5 }
 0x1ce   :  { %v6889_v7 = vand.u32 4294901760, %v6888_v43  ;;  %v7307_v10 = vand.u32 4294901760, %v12086_v9  ;;  %13389 = vmatpush3.bf16.msra.mxu1 %v14786_v6  ;;  %v14847_v48 = vpop.f32.mrb[15].mxu0  ;;  %12123 = vmatprep.mubr.f32.mxu1 %v14767_v17  ;;  %v1865_v22 = vand.u32 4294901760, %v14797_v52  ;;  %v5151_v45 = vstv %s11211_s28 }
 0x1cf   :  { %v6882_v58 = vand.u32 4294901760, %v6881_v61  ;;  %12121 = vmatprep.subr.mxu1 %v14790_v39  ;;  %v6376_v20 = vand.u32 4294901760, %v6375_v54  ;;  %v14851_v21 = vpack.c.bf16 %v6888_v43, %v6881_v61  ;;  %v2893_v2 = vstv %s11205_s29 }
 0x1d0   :  { %v6890_v27 = vsub.f32 %v6888_v43, %v6889_v7  ;;  %v7396_v28 = vsub.f32 %v12086_v9, %v7307_v10  ;;  %v1962_v41 = vsub.f32 %v14797_v52, %v1865_v22  ;;  %v4029_v43 = vstv %s11208_s30 }
 0x1d1   :  { %v6883_v50 = vsub.f32 %v6881_v61, %v6882_v58  ;;  %v14853_v57 = vpop.f32.mrb[16].mxu0  ;;  %v14855_v60 = vpack.c.bf16 %v6376_v20, %v6369_v51  ;;  %v14857_v44 = vpack.c.bf16 %v6889_v7, %v6882_v58  ;;  %v5155_v54 = vstv %s11212_s8 }
 0x1d2   :  { %12122 = vmatpush3.msra.mxu1 %v14790_v39  ;;  %v1320_v23 = vpop.f32.mrb[17].mxu0  ;;  %v6891_v24 = vand.u32 4294901760, %v6890_v27  ;;  %v7397_v31 = vand.u32 4294901760, %v7396_v28 }
 0x1d3   :  { %v7310_v32 = vand.u32 4294901760, %v1320_v23  ;;  %13391 = vmatprep.subr.bf16.mxu1 %v14802_v63  ;;  %v6884_v33 = vand.u32 4294901760, %v6883_v50 }
 0x1d4   :  { %v7398_v56 = vsub.f32 %v7396_v28, %v7397_v31 }
 0x1d5   :  { %v14861_v14 = vpack.c.bf16 %v7310_v32, %v7307_v10  ;;  %v7403_v26 = vsub.f32 %v1320_v23, %v7310_v32  ;;  %12124 = vmatmul.mubr.f32.vlgmr.msra.gmra.mrb[0].mxu1 %v14784_v47  ;;  %v14864_v34 = vpack.c.bf16 %v6891_v24, %v6884_v33 }
 0x1d6   :  { %13393 = vmatpush3.bf16.msra.mxu1 %v14802_v63  ;;  %12132 = vmatprep.mubr.f32.mxu1 %v14761_v15  ;;  %v7399_v30 = vand.u32 4294901760, %v7398_v56 }
 0x1d7   :  { %v7404_v62 = vand.u32 4294901760, %v7403_v26  ;;  %12130 = vmatprep.subr.mxu1 %v14805_v3  ;;  %v14869_v5 = vpack.c.bf16 %v7403_v26, %v7396_v28 }
 0x1d9   :  { %v7405_v13 = vsub.f32 %v7403_v26, %v7404_v62  ;;  %v14871_v18 = vpack.c.bf16 %v7404_v62, %v7397_v31 }
 0x1da   :  { %12131 = vmatpush3.msra.mxu1 %v14805_v3  ;;  %v1963_v3 = vand.u32 4294901760, %v1962_v41 }
 0x1db   :  { %13395 = vmatprep.subr.bf16.mxu1 %v14786_v6  ;;  %v7406_v36 = vand.u32 4294901760, %v7405_v13 }
 0x1dc   :  { %v1964_v40 = vsub.f32 %v1962_v41, %v1963_v3 }
 0x1dd   :  { %12133 = vmatmul.mubr.f32.vlgmr.msra.gmra.mrb[0].mxu1 %v14778_v38  ;;  %v14877_v63 = vpack.c.bf16 %v7406_v36, %v7399_v30  ;;  %v2899_v30 = vstv %s11206_s9  ;;  %v4035_v36 = vstv %s11209_s5 }
 0x1de   :  { %13397 = vmatpush3.bf16.msra.mxu1 %v14786_v6  ;;  %12141 = vmatprep.mubr.f32.mxu1 %v14761_v15  ;;  %v1965_v6 = vand.u32 4294901760, %v1964_v40  ;;  %v2905_v40 = vstv %s14961_s10 }
 0x1df   :  { %12139 = vmatprep.subr.mxu1 %v14790_v39 }
 0x1e2   :  { %12140 = vmatpush3.msra.mxu1 %v14790_v39  ;;  %v2380_v39 = vand.u32 4294901760, %v14820_v25 }
 0x1e3   :  { %13399 = vmatprep.subr.bf16.mxu1 %v14808_v0 }
 0x1e4   :  { %v2477_v52 = vsub.f32 %v14820_v25, %v2380_v39  ;;  %v14303_v25 = vmov 0.0|0.0  }
 0x1e5   :  { %12142 = vmatmul.mubr.f32.vlgmr.msra.gmra.mrb[0].mxu1 %v14778_v38  ;;  %13482 = vmatprep.subr.bf16.mxu0 %v14303_v25 }
 0x1e6   :  { %13401 = vmatpush3.bf16.msra.mxu1 %v14808_v0  ;;  %12150 = vmatprep.mubr.f32.mxu1 %v14771_v29 }
 0x1e7   :  { %12148 = vmatprep.subr.mxu1 %v1865_v22 }
 0x1ea   :  { %12149 = vmatpush3.msra.mxu1 %v1865_v22 }
 0x1eb   :  { %12151 = vmatmul.mubr.f32.vlgmr.msra.gmra.mrb[2].mxu1 %v14800_v55  ;;  %13403 = vmatprep.subr.bf16.mxu1 %v14827_v46 }
 0x1ec   :  { %13405 = vmatpush3.bf16.msra.mxu1 %v14827_v46  ;;  %12159 = vmatprep.mubr.f32.mxu1 %v14761_v15 }
 0x1ed   :  { %12157 = vmatprep.subr.mxu1 %v1965_v6 }
 0x1f0   :  { %12158 = vmatpush3.msra.mxu1 %v1965_v6  ;;  %v1332_v6 = vld [vmem:[%s16090_s3] sm:$0xff] }
 0x1f1   :  { %13407 = vmatprep.subr.bf16.mxu1 %v14814_v11 }
 0x1f3   :  { %12160 = vmatmul.mubr.f32.vlgmr.msra.gmra.mrb[2].mxu1 %v14778_v38 }
 0x1f4   :  { %13409 = vmatpush3.bf16.msra.mxu1 %v14814_v11  ;;  %12168 = vmatprep.mubr.f32.mxu1 %v14764_v16  ;;  %v2478_v11 = vand.u32 4294901760, %v2477_v52 }
 0x1f5   :  { %12166 = vmatprep.subr.mxu1 %v1962_v41 }
 0x1f8   :  { %12167 = vmatpush3.msra.mxu1 %v1962_v41  ;;  %v5161_v41 = vstv %s11213_s6 }
 0x1f9   :  { %13411 = vmatprep.subr.bf16.mxu1 %v14808_v0 }
 0x1fb   :  { %12169 = vmatmul.mubr.f32.vlgmr.msra.gmra.mrb[2].mxu1 %v14781_v42 }
 0x1fc   :  { %13413 = vmatpush3.bf16.msra.mxu1 %v14808_v0  ;;  %12177 = vmatprep.mubr.f32.mxu1 %v14767_v17 }
 0x1fd   :  { %12175 = vmatprep.subr.mxu1 %v1865_v22 }
 0x200   :  { %12176 = vmatpush3.msra.mxu1 %v1865_v22 }
 0x201   :  { %13415 = vmatprep.subr.bf16.mxu1 %v14818_v49 }
 0x203   :  { %12178 = vmatmul.mubr.f32.vlgmr.msra.gmra.mrb[2].mxu1 %v14784_v47 }
 0x204   :  { %13417 = vmatpush3.bf16.msra.mxu1 %v14818_v49  ;;  %12186 = vmatprep.mubr.f32.mxu1 %v14761_v15  ;;  %v2479_v49 = vsub.f32 %v2477_v52, %v2478_v11 }
 0x205   :  { %12184 = vmatprep.subr.mxu1 %v1963_v3 }
 0x208   :  { %12185 = vmatpush3.msra.mxu1 %v1963_v3 }
 0x209   :  { %13419 = vmatprep.subr.bf16.mxu1 %v14808_v0 }
 0x20b   :  { %12187 = vmatmul.mubr.f32.vlgmr.msra.gmra.mrb[2].mxu1 %v14778_v38 }
 0x20c   :  { %13421 = vmatpush3.bf16.msra.mxu1 %v14808_v0  ;;  %12195 = vmatprep.mubr.f32.mxu1 %v14761_v15  ;;  %v2480_v0 = vand.u32 4294901760, %v2479_v49 }
 0x20d   :  { %12193 = vmatprep.subr.mxu1 %v1865_v22 }
 0x210   :  { %12194 = vmatpush3.msra.mxu1 %v1865_v22 }
 0x211   :  { %13423 = vmatprep.subr.bf16.mxu1 %v14816_v53 }
 0x213   :  { %12196 = vmatmul.mubr.f32.vlgmr.msra.gmra.mrb[2].mxu1 %v14778_v38 }
 0x214   :  { %13425 = vmatpush3.bf16.msra.mxu1 %v14816_v53  ;;  %12204 = vmatprep.mubr.f32.mxu1 %v14771_v29 }
 0x215   :  { %12202 = vmatprep.subr.mxu1 %v2380_v39 }
 0x218   :  { %12203 = vmatpush3.msra.mxu1 %v2380_v39 }
 0x219   :  { %12205 = vmatmul.mubr.f32.vlgmr.msra.gmra.mrb[4].mxu1 %v14800_v55  ;;  %13427 = vmatprep.subr.bf16.mxu1 %v14835_v35 }
 0x21a   :  { %13429 = vmatpush3.bf16.msra.mxu1 %v14835_v35  ;;  %12213 = vmatprep.mubr.f32.mxu1 %v14761_v15  ;;  %v4025_v35 = vstv %s11207_s27 }
 0x21b   :  { %12211 = vmatprep.subr.mxu1 %v2480_v0 }
 0x21e   :  { %12212 = vmatpush3.msra.mxu1 %v2480_v0 }
 0x21f   :  { %13431 = vmatprep.subr.bf16.mxu1 %v14822_v8 }
 0x221   :  { %12214 = vmatmul.mubr.f32.vlgmr.msra.gmra.mrb[4].mxu1 %v14778_v38 }
 0x222   :  { %13433 = vmatpush3.bf16.msra.mxu1 %v14822_v8  ;;  %12222 = vmatprep.mubr.f32.mxu1 %v14764_v16  ;;  %v14305_v8 = vmov 0.0  }
 0x223   :  { %12220 = vmatprep.subr.mxu1 %v2477_v52  ;;  %12412 = vmatprep.mubr.msk.f32.mxu0 %vm14304_vm1, %v14305_v8 }
 0x226   :  { %12221 = vmatpush3.msra.mxu1 %v2477_v52 }
 0x227   :  { %13435 = vmatprep.subr.bf16.mxu1 %v14816_v53 }
 0x229   :  { %12223 = vmatmul.mubr.f32.vlgmr.msra.gmra.mrb[4].mxu1 %v14781_v42 }
 0x22a   :  { %13437 = vmatpush3.bf16.msra.mxu1 %v14816_v53  ;;  %12231 = vmatprep.mubr.f32.mxu1 %v14767_v17 }
 0x22b   :  { %12229 = vmatprep.subr.mxu1 %v2380_v39 }
 0x22e   :  { %12230 = vmatpush3.msra.mxu1 %v2380_v39 }
 0x22f   :  { %13439 = vmatprep.subr.bf16.mxu1 %v14830_v4 }
 0x231   :  { %12232 = vmatmul.mubr.f32.vlgmr.msra.gmra.mrb[4].mxu1 %v14784_v47 }
 0x232   :  { %13441 = vmatpush3.bf16.msra.mxu1 %v14830_v4  ;;  %12240 = vmatprep.mubr.f32.mxu1 %v14761_v15  ;;  %v2889_v4 = vstv %s2888_s2 }
 0x233   :  { %12238 = vmatprep.subr.mxu1 %v2478_v11 }
 0x236   :  { %12239 = vmatpush3.msra.mxu1 %v2478_v11  ;;  %v4041_v11 = vstv %s14963_s11  ;;  %s7821_s11 = sld [smem:[#allocation2]] }
 0x237   :  { %13443 = vmatprep.subr.bf16.mxu1 %v14816_v53 }
 0x239   :  { %12241 = vmatmul.mubr.f32.vlgmr.msra.gmra.mrb[4].mxu1 %v14778_v38 }
 0x23a   :  { %13445 = vmatpush3.bf16.msra.mxu1 %v14816_v53  ;;  %12249 = vmatprep.mubr.f32.mxu1 %v14761_v15 }
 0x23b   :  { %12247 = vmatprep.subr.mxu1 %v2380_v39 }
 0x23e   :  { %12248 = vmatpush3.msra.mxu1 %v2380_v39 }
 0x23f   :  { %13446 = vmatprep.subr.bf16.mxu1 %v14303_v25 }
 0x241   :  { %12250 = vmatmul.mubr.f32.vlgmr.msra.gmra.mrb[4].mxu1 %v14778_v38 }
 0x242   :  { %12256 = vmatprep.mubr.msk.f32.mxu1 %vm14304_vm1, %v14305_v8 }
 0x2b8   :  { %v14941_v53 = vpop.f32.mrb[0].mxu1 }
 0x2b9   :  { %v14943_v46 = vpop.f32.mrb[1].mxu1  ;;  %v2891_v61 = vmul.f32 %v14941_v53, %v2889_v4  ;;  %v4027_v9 = vmul.f32 %v14941_v53, %v4025_v35  ;;  %v5153_v7 = vmul.f32 %v14941_v53, %v5151_v45 }
 0x2ba   :  { %v2890_v10 = vmul.f32 %v2889_v4, %v14943_v46  ;;  %v4026_v51 = vmul.f32 %v4025_v35, %v14943_v46  ;;  %v5152_v23 = vmul.f32 %v5151_v45, %v14943_v46  ;;  %v1333_v4 = vld [vmem:[%s16090_s3 + $0x8] sm:$0xff]  ;;  %v5167_v35 = vstv %s14965_s12  ;;  %s11218_s12 = sld [smem:[#allocation2 + $0x80]] }
 0x2e6   :  { %v14949_v58 = vpop.f32.mrb[2].mxu1 }
 0x2e7   :  { %v2895_v20 = vmul.f32 %v14949_v58, %v2893_v2  ;;  %v4031_v27 = vmul.f32 %v14949_v58, %v4029_v43  ;;  %v5157_v28 = vmul.f32 %v14949_v58, %v5155_v54  ;;  %v14955_v50 = vpop.f32.mrb[3].mxu1 }
 0x2e8   :  { %v2894_v24 = vmul.f32 %v2893_v2, %v14955_v50  ;;  %v4030_v31 = vmul.f32 %v4029_v43, %v14955_v50  ;;  %v5156_v32 = vmul.f32 %v5155_v54, %v14955_v50 }
 0x2e9   :  { %v2897_v33 = vadd.f32 %v2895_v20, %v2891_v61  ;;  %v4033_v26 = vadd.f32 %v4031_v27, %v4027_v9  ;;  %v5159_v56 = vadd.f32 %v5157_v28, %v5153_v7  ;;  %v2914_v7 = vsel %vm2912_vm2, %v1332_v6, 0 }
 0x2ea   :  { %v2896_v62 = vadd.f32 %v2894_v24, %v2890_v10  ;;  %v4032_v13 = vadd.f32 %v4030_v31, %v4026_v51  ;;  %v5158_v22 = vadd.f32 %v5156_v32, %v5152_v23  ;;  %v2917_v27 = vsel %vm2912_vm2, %v1333_v4, 0 }
 0x2eb   :  { %v14978_v32 = vand.u32 4294901760, %v2914_v7 }
 0x314   :  { %v12251_v3 = vpop.f32.mrb[4].mxu1 }
 0x315   :  { %v2901_v39 = vmul.f32 %v12251_v3, %v2899_v30  ;;  %v4037_v52 = vmul.f32 %v12251_v3, %v4035_v36  ;;  %v5163_v49 = vmul.f32 %v12251_v3, %v5161_v41  ;;  %v2878_v0 = vpop.f32.mrb[5].mxu1 }
 0x316   :  { %v2900_v45 = vmul.f32 %v2899_v30, %v2878_v0  ;;  %v4036_v2 = vmul.f32 %v4035_v36, %v2878_v0  ;;  %v5162_v43 = vmul.f32 %v5161_v41, %v2878_v0  ;;  %v1334_v30 = vld [vmem:[%s16090_s3 + $0x10] sm:$0xff]  ;;  %s15610_s3 = sld [smem:[#allocation2 + $0x101]] }
 0x317   :  { %v2903_v54 = vadd.f32 %v2901_v39, %v2897_v33  ;;  %v4039_v61 = vadd.f32 %v4037_v52, %v4033_v26  ;;  %v5165_v9 = vadd.f32 %v5163_v49, %v5159_v56  ;;  %v14983_v26 = vand.u32 4294901760, %v2917_v27 }
 0x318   :  { %v2902_v10 = vadd.f32 %v2900_v45, %v2896_v62  ;;  %v4038_v51 = vadd.f32 %v4036_v2, %v4032_v13  ;;  %v5164_v20 = vadd.f32 %v5162_v43, %v5158_v22  ;;  %v2920_v62 = vsel %vm2912_vm2, %v1334_v30, 0 }
 0x319   :  { %v2907_v28 = vadd.f32 %v2905_v40, %v2903_v54  ;;  %v4043_v23 = vadd.f32 %v4041_v11, %v4039_v61  ;;  %v5169_v24 = vadd.f32 %v5167_v35, %v5165_v9  ;;  %v14987_v13 = vsub.f32 %v2914_v7, %v14978_v32 }
 0x31a   :  { %v2906_v31 = vadd.f32 %v2905_v40, %v2902_v10  ;;  %v4042_v33 = vadd.f32 %v4041_v11, %v4038_v51  ;;  %v5168_v56 = vadd.f32 %v5167_v35, %v5164_v20  ;;  %v14990_v22 = vsub.f32 %v2917_v27, %v14983_v26 }
 0x31b   :  { %14249 = vtanh.f32 %v2907_v28  ;;  %v14992_v36 = vand.u32 4294901760, %v2920_v62  ;;  %v14995_v41 = vand.u32 4294901760, %v14987_v13 }
 0x31c   :  { %14251 = vtanh.f32 %v4043_v23  ;;  %v14998_v40 = vand.u32 4294901760, %v14990_v22 }
 0x31d   :  { %14253 = vtanh.f32 %v5169_v24  ;;  %v15001_v6 = vsub.f32 %v2920_v62, %v14992_v36  ;;  %v2992_v49 = vsub.f32 %v14987_v13, %v14995_v41 }
 0x31e   :  { %14255 = vtanh.f32 %v2906_v31  ;;  %v3002_v45 = vsub.f32 %v14990_v22, %v14998_v40 }
 0x31f   :  { %14257 = vtanh.f32 %v4042_v33  ;;  %v15010_v61 = vand.u32 4294901760, %v15001_v6 }
 0x320   :  { %14259 = vtanh.f32 %v5168_v56 }
 0x321   :  { %v3012_v33 = vsub.f32 %v15001_v6, %v15010_v61 }
 0x325   :  { %v14250_v39 = vpop.eup %14249 }
 0x326   :  { %v14252_v52 = vpop.eup %14251  ;;  %v2911_v11 = vadd.f32 %v14250_v39, %v14941_v53 }
 0x327   :  { %v14254_v4 = vpop.eup %14253  ;;  %v4047_v35 = vadd.f32 %v14252_v52, %v14949_v58  ;;  %v15016_v58 = vand.u32 4294901760, %v2992_v49 }
 0x328   :  { %v14256_v2 = vpop.eup %14255  ;;  %v5173_v43 = vadd.f32 %v14254_v4, %v12251_v3  ;;  %v2926_v54 = vand.u32 4294901760, %v2911_v11  ;;  %v15020_v3 = vand.u32 4294901760, %v3002_v45 }
 0x329   :  { %v14258_v9 = vpop.eup %14257  ;;  %v2910_v7 = vadd.f32 %v14256_v2, %v14943_v46  ;;  %v4052_v10 = vand.u32 4294901760, %v4047_v35 }
 0x32a   :  { %v14260_v53 = vpop.eup %14259  ;;  %v5178_v51 = vand.u32 4294901760, %v5173_v43  ;;  %v15013_v20 = vsub.f32 %v2911_v11, %v2926_v54  ;;  %v4046_v27 = vadd.f32 %v14258_v9, %v14955_v50 }
 0x32b   :  { %v5172_v28 = vadd.f32 %v14260_v53, %v2878_v0  ;;  %v2923_v23 = vand.u32 4294901760, %v2910_v7  ;;  %v15018_v24 = vsub.f32 %v4047_v35, %v4052_v10 }
 0x32c   :  { %v15022_v31 = vsub.f32 %v5173_v43, %v5178_v51  ;;  %v4049_v30 = vand.u32 4294901760, %v4046_v27  ;;  %v3029_v46 = vand.u32 4294901760, %v15013_v20 }
 0x32d   :  { %v5175_v56 = vand.u32 4294901760, %v5172_v28  ;;  %v15027_v62 = vpack.c.bf16 %v2926_v54, %v2923_v23  ;;  %v3021_v50 = vsub.f32 %v2910_v7, %v2923_v23  ;;  %v4155_v39 = vand.u32 4294901760, %v15018_v24 }
 0x32e   :  { %v15030_v0 = vpack.c.bf16 %v4052_v10, %v4049_v30  ;;  %v4147_v52 = vsub.f32 %v4046_v27, %v4049_v30  ;;  %v3030_v11 = vsub.f32 %v15013_v20, %v3029_v46  ;;  %v5281_v49 = vand.u32 4294901760, %v15022_v31 }
 0x32f   :  { %v15034_v4 = vsub.f32 %v5172_v28, %v5175_v56  ;;  %13448 = vmatpush3.bf16.msra.mxu1 %v15027_v62  ;;  %v3022_v35 = vand.u32 4294901760, %v3021_v50  ;;  %v4156_v45 = vsub.f32 %v15018_v24, %v4155_v39  ;;  %v13453_v2 = vpack.c.bf16 %v15013_v20, %v3021_v50 }
 0x330   :  { %13484 = vmatpush3.bf16.msra.mxu0 %v15030_v0  ;;  %13449 = vmatprep.subr.bf16.mxu1 %v14303_v25  ;;  %v3031_v43 = vand.u32 4294901760, %v3030_v11  ;;  %v4148_v54 = vand.u32 4294901760, %v4147_v52  ;;  %v13489_v9 = vpack.c.bf16 %v15018_v24, %v4147_v52  ;;  %v15042_v7 = vpack.c.bf16 %v5178_v51, %v5175_v56 }
 0x331   :  { %13485 = vmatprep.subr.bf16.mxu0 %v14303_v25  ;;  %v3023_v10 = vsub.f32 %v3021_v50, %v3022_v35  ;;  %v4157_v53 = vand.u32 4294901760, %v4156_v45  ;;  %v15045_v27 = vpack.c.bf16 %v3029_v46, %v3022_v35  ;;  %v5274_v28 = vand.u32 4294901760, %v15034_v4 }
 0x332   :  { %12257 = vmatmul.mubr.f32.vlgmr.msra.gmra.mrb[6].mxu1 %v15016_v58  ;;  %v4149_v20 = vsub.f32 %v4147_v52, %v4148_v54  ;;  %v13495_v23 = vpack.c.bf16 %v4155_v39, %v4148_v54  ;;  %v5282_v30 = vsub.f32 %v15022_v31, %v5281_v49  ;;  %v13525_v11 = vpack.c.bf16 %v15022_v31, %v15034_v4 }
 0x333   :  { %12413 = vmatmul.mubr.f32.vlgmr.msra.gmra.mrb[18].mxu0 %v15016_v58  ;;  %12259 = vmatprep.mubr.msk.f32.mxu1 %vm14304_vm1, %v14305_v8  ;;  %v3024_v51 = vand.u32 4294901760, %v3023_v10  ;;  %v5275_v24 = vsub.f32 %v15034_v4, %v5274_v28  ;;  %v15056_v46 = vpack.c.bf16 %v5281_v49, %v5274_v28  ;;  %v15061_v45 = vand.u32 4294901760, %v3012_v33  ;;  %v1335_v49 = vld [vmem:[%s16091_s4] sm:$0xff]  ;;  %v1336_v4 = vld [vmem:[%s16091_s4 + $0x8] sm:$0xff] }
 0x334   :  { %12415 = vmatprep.mubr.msk.f32.mxu0 %vm14304_vm1, %v14305_v8  ;;  %v4150_v56 = vand.u32 4294901760, %v4149_v20  ;;  %v5283_v50 = vand.u32 4294901760, %v5282_v30  ;;  %v15238_v31 = vand.u32 4294901760, %v14824_v37 }
 0x335   :  { %v13450_v39 = vpack.c.bf16 %v3031_v43, %v3024_v51  ;;  %v5276_v52 = vand.u32 4294901760, %v5275_v24  ;;  %v3480_v43 = vand.u32 4294901760, %v1336_v4 }
 0x336   :  { %12260 = vmatmul.mubr.f32.gmra.mrb[8].mxu1 %v15020_v3  ;;  %v13486_v35 = vpack.c.bf16 %v4157_v53, %v4150_v56  ;;  %v6380_v33 = vsub.f32 %v14824_v37, %v15238_v31 }
 0x337   :  { %12416 = vmatmul.mubr.f32.gmra.mrb[20].mxu0 %v15020_v3  ;;  %13451 = vmatpush3.bf16.msra.mxu1 %v13450_v39  ;;  %v15064_v54 = vpack.c.bf16 %v5283_v50, %v5276_v52 }
 0x338   :  { %13487 = vmatpush3.bf16.msra.mxu0 %v13486_v35  ;;  %12262 = vmatprep.mubr.msk.f32.mxu1 %vm14304_vm1, %v14305_v8 }
 0x339   :  { %12418 = vmatprep.mubr.msk.f32.mxu0 %vm14304_vm1, %v14305_v8  ;;  %13452 = vmatprep.subr.bf16.mxu1 %v14303_v25 }
 0x33a   :  { %12263 = vmatmul.mubr.f32.gmra.mrb[10].mxu1 %v15061_v45  ;;  %13488 = vmatprep.subr.bf16.mxu0 %v14303_v25 }
 0x33b   :  { %12419 = vmatmul.mubr.f32.gmra.mrb[22].mxu0 %v15061_v45  ;;  %12269 = vmatprep.mubr.msk.f32.mxu1 %vm14304_vm1, %v14305_v8 }
 0x33c   :  { %12425 = vmatprep.mubr.msk.f32.mxu0 %vm14304_vm1, %v14305_v8 }
 0x33e   :  { %12270 = vmatmul.mubr.f32.vlgmr.msra.gmra.mrb[6].mxu1 %v14978_v32 }
 0x33f   :  { %13454 = vmatpush3.bf16.msra.mxu1 %v13453_v2  ;;  %12426 = vmatmul.mubr.f32.vlgmr.msra.gmra.mrb[18].mxu0 %v14978_v32  ;;  %v3477_v2 = vand.u32 4294901760, %v1335_v49 }
 0x340   :  { %13490 = vmatpush3.bf16.msra.mxu0 %v13489_v9  ;;  %12272 = vmatprep.mubr.msk.f32.mxu1 %vm14304_vm1, %v14305_v8 }
 0x341   :  { %12428 = vmatprep.mubr.msk.f32.mxu0 %vm14304_vm1, %v14305_v8  ;;  %13455 = vmatprep.subr.bf16.mxu1 %v14303_v25  ;;  %v15268_v9 = vpack.c.bf16 %v3480_v43, %v3477_v2 }
 0x342   :  { %12273 = vmatmul.mubr.f32.gmra.mrb[8].mxu1 %v14983_v26  ;;  %13491 = vmatprep.subr.bf16.mxu0 %v14303_v25 }
 0x343   :  { %12429 = vmatmul.mubr.f32.gmra.mrb[20].mxu0 %v14983_v26  ;;  %12275 = vmatprep.mubr.msk.f32.mxu1 %vm14304_vm1, %v14305_v8 }
 0x344   :  { %12431 = vmatprep.mubr.msk.f32.mxu0 %vm14304_vm1, %v14305_v8 }
 0x346   :  { %12276 = vmatmul.mubr.f32.gmra.mrb[10].mxu1 %v14992_v36 }
 0x347   :  { %12432 = vmatmul.mubr.f32.gmra.mrb[22].mxu0 %v14992_v36  ;;  %12282 = vmatprep.mubr.msk.f32.mxu1 %vm14304_vm1, %v14305_v8 }
 0x348   :  { %12438 = vmatprep.mubr.msk.f32.mxu0 %vm14304_vm1, %v14305_v8 }
 0x34a   :  { %12283 = vmatmul.mubr.f32.vlgmr.msra.gmra.mrb[6].mxu1 %v14987_v13 }
 0x34b   :  { %13457 = vmatpush3.bf16.msra.mxu1 %v15027_v62  ;;  %12439 = vmatmul.mubr.f32.vlgmr.msra.gmra.mrb[18].mxu0 %v14987_v13 }
 0x34c   :  { %13493 = vmatpush3.bf16.msra.mxu0 %v15030_v0  ;;  %12285 = vmatprep.mubr.msk.f32.mxu1 %vm14304_vm1, %v14305_v8 }
 0x34d   :  { %12441 = vmatprep.mubr.msk.f32.mxu0 %vm14304_vm1, %v14305_v8  ;;  %13458 = vmatprep.subr.bf16.mxu1 %v14303_v25 }
 0x34e   :  { %12286 = vmatmul.mubr.f32.gmra.mrb[8].mxu1 %v14990_v22  ;;  %13494 = vmatprep.subr.bf16.mxu0 %v14303_v25 }
 0x34f   :  { %12442 = vmatmul.mubr.f32.gmra.mrb[20].mxu0 %v14990_v22  ;;  %12288 = vmatprep.mubr.msk.f32.mxu1 %vm14304_vm1, %v14305_v8 }
 0x350   :  { %12444 = vmatprep.mubr.msk.f32.mxu0 %vm14304_vm1, %v14305_v8 }
 0x352   :  { %12289 = vmatmul.mubr.f32.gmra.mrb[10].mxu1 %v15001_v6 }
 0x353   :  { %12445 = vmatmul.mubr.f32.gmra.mrb[22].mxu0 %v15001_v6  ;;  %12295 = vmatprep.mubr.msk.f32.mxu1 %vm14304_vm1, %v14305_v8 }
 0x354   :  { %12451 = vmatprep.mubr.msk.f32.mxu0 %vm14304_vm1, %v14305_v8 }
 0x356   :  { %12296 = vmatmul.mubr.f32.vlgmr.msra.gmra.mrb[6].mxu1 %v14995_v41 }
 0x357   :  { %13460 = vmatpush3.bf16.msra.mxu1 %v15045_v27  ;;  %12452 = vmatmul.mubr.f32.vlgmr.msra.gmra.mrb[18].mxu0 %v14995_v41 }
 0x358   :  { %13496 = vmatpush3.bf16.msra.mxu0 %v13495_v23  ;;  %12298 = vmatprep.mubr.msk.f32.mxu1 %vm14304_vm1, %v14305_v8 }
 0x359   :  { %12454 = vmatprep.mubr.msk.f32.mxu0 %vm14304_vm1, %v14305_v8  ;;  %13461 = vmatprep.subr.bf16.mxu1 %v14303_v25 }
 0x35a   :  { %12299 = vmatmul.mubr.f32.gmra.mrb[8].mxu1 %v14998_v40  ;;  %13497 = vmatprep.subr.bf16.mxu0 %v14303_v25 }
 0x35b   :  { %12455 = vmatmul.mubr.f32.gmra.mrb[20].mxu0 %v14998_v40  ;;  %12301 = vmatprep.mubr.msk.f32.mxu1 %vm14304_vm1, %v14305_v8 }
 0x35c   :  { %12457 = vmatprep.mubr.msk.f32.mxu0 %vm14304_vm1, %v14305_v8 }
 0x35e   :  { %12302 = vmatmul.mubr.f32.gmra.mrb[10].mxu1 %v15010_v61 }
 0x35f   :  { %12458 = vmatmul.mubr.f32.gmra.mrb[22].mxu0 %v15010_v61  ;;  %12308 = vmatprep.mubr.msk.f32.mxu1 %vm14304_vm1, %v14305_v8 }
 0x360   :  { %12464 = vmatprep.mubr.msk.f32.mxu0 %vm14304_vm1, %v14305_v8 }
 0x362   :  { %12309 = vmatmul.mubr.f32.vlgmr.msra.gmra.mrb[6].mxu1 %v14978_v32 }
 0x363   :  { %13463 = vmatpush3.bf16.msra.mxu1 %v15027_v62  ;;  %12465 = vmatmul.mubr.f32.vlgmr.msra.gmra.mrb[18].mxu0 %v14978_v32  ;;  %v6381_v62 = vand.u32 4294901760, %v6380_v33 }
 0x364   :  { %13499 = vmatpush3.bf16.msra.mxu0 %v15030_v0  ;;  %12311 = vmatprep.mubr.msk.f32.mxu1 %vm14304_vm1, %v14305_v8 }
 0x365   :  { %12467 = vmatprep.mubr.msk.f32.mxu0 %vm14304_vm1, %v14305_v8  ;;  %13518 = vmatprep.subr.bf16.mxu0 %v14303_v25  ;;  %v6382_v37 = vsub.f32 %v6380_v33, %v6381_v62 }
 0x366   :  { %12312 = vmatmul.mubr.f32.gmra.mrb[8].mxu1 %v14983_v26  ;;  %13464 = vmatprep.subr.bf16.mxu1 %v14303_v25 }
 0x367   :  { %12468 = vmatmul.mubr.f32.gmra.mrb[20].mxu0 %v14983_v26  ;;  %12314 = vmatprep.mubr.msk.f32.mxu1 %vm14304_vm1, %v14305_v8  ;;  %v6383_v0 = vand.u32 4294901760, %v6382_v37 }
 0x368   :  { %12470 = vmatprep.mubr.msk.f32.mxu0 %vm14304_vm1, %v14305_v8 }
 0x36a   :  { %12315 = vmatmul.mubr.f32.gmra.mrb[10].mxu1 %v14992_v36 }
 0x36b   :  { %12471 = vmatmul.mubr.f32.gmra.mrb[22].mxu0 %v14992_v36  ;;  %12321 = vmatprep.mubr.msk.f32.mxu1 %vm14304_vm1, %v14305_v8 }
 0x36c   :  { %12477 = vmatprep.mubr.msk.f32.mxu0 %vm14304_vm1, %v14305_v8 }
 0x36e   :  { %12322 = vmatmul.mubr.f32.vlgmr.msra.gmra.mrb[6].mxu1 %v14978_v32 }
 0x36f   :  { %12478 = vmatmul.mubr.f32.vlgmr.msra.gmra.mrb[18].mxu0 %v14978_v32  ;;  %12324 = vmatprep.mubr.msk.f32.mxu1 %vm14304_vm1, %v14305_v8 }
 0x370   :  { %13520 = vmatpush3.bf16.msra.mxu0 %v15042_v7  ;;  %12480 = vmatprep.mubr.msk.f32.mxu0 %vm14304_vm1, %v14305_v8 }
 0x371   :  { %13521 = vmatprep.subr.bf16.mxu0 %v14303_v25  ;;  %13466 = vmatpush3.bf16.msra.mxu1 %v15268_v9 }
 0x372   :  { %12325 = vmatmul.mubr.f32.gmra.mrb[8].mxu1 %v14983_v26  ;;  %13467 = vmatprep.subr.bf16.mxu1 %v14303_v25 }
 0x373   :  { %12481 = vmatmul.mubr.f32.gmra.mrb[20].mxu0 %v14983_v26  ;;  %12327 = vmatprep.mubr.msk.f32.mxu1 %vm14304_vm1, %v14305_v8 }
 0x374   :  { %12483 = vmatprep.mubr.msk.f32.mxu0 %vm14304_vm1, %v14305_v8 }
 0x376   :  { %12328 = vmatmul.mubr.f32.gmra.mrb[10].mxu1 %v14992_v36 }
 0x377   :  { %12484 = vmatmul.mubr.f32.gmra.mrb[22].mxu0 %v14992_v36  ;;  %12334 = vmatprep.mubr.msk.f32.mxu1 %vm14304_vm1, %v14305_v8 }
 0x378   :  { %12568 = vmatprep.mubr.msk.f32.mxu0 %vm14304_vm1, %v14305_v8 }
 0x37b   :  { %12569 = vmatmul.mubr.f32.vlgmr.msra.gmra.mrb[24].mxu0 %v15016_v58 }
 0x37c   :  { %13523 = vmatpush3.bf16.msra.mxu0 %v15064_v54  ;;  %12571 = vmatprep.mubr.msk.f32.mxu0 %vm14304_vm1, %v14305_v8 }
 0x37d   :  { %13524 = vmatprep.subr.bf16.mxu0 %v14303_v25 }
 0x37f   :  { %12572 = vmatmul.mubr.f32.gmra.mrb[26].mxu0 %v15020_v3 }
 0x380   :  { %12574 = vmatprep.mubr.msk.f32.mxu0 %vm14304_vm1, %v14305_v8 }
 0x383   :  { %12575 = vmatmul.mubr.f32.gmra.mrb[28].mxu0 %v15061_v45 }
 0x384   :  { %12581 = vmatprep.mubr.msk.f32.mxu0 %vm14304_vm1, %v14305_v8 }
 0x387   :  { %12582 = vmatmul.mubr.f32.vlgmr.msra.gmra.mrb[24].mxu0 %v14978_v32 }
 0x388   :  { %13526 = vmatpush3.bf16.msra.mxu0 %v13525_v11  ;;  %12584 = vmatprep.mubr.msk.f32.mxu0 %vm14304_vm1, %v14305_v8  ;;  %v7313_v11 = vand.u32 4294901760, %v14853_v57 }
 0x389   :  { %13527 = vmatprep.subr.bf16.mxu0 %v14303_v25 }
 0x38a   :  { %v7410_v51 = vsub.f32 %v14853_v57, %v7313_v11 }
 0x38b   :  { %12585 = vmatmul.mubr.f32.gmra.mrb[26].mxu0 %v14983_v26 }
 0x38c   :  { %12587 = vmatprep.mubr.msk.f32.mxu0 %vm14304_vm1, %v14305_v8 }
 0x38f   :  { %12588 = vmatmul.mubr.f32.gmra.mrb[28].mxu0 %v14992_v36 }
 0x390   :  { %12594 = vmatprep.mubr.msk.f32.mxu0 %vm14304_vm1, %v14305_v8 }
 0x393   :  { %12595 = vmatmul.mubr.f32.vlgmr.msra.gmra.mrb[24].mxu0 %v14987_v13 }
 0x394   :  { %13529 = vmatpush3.bf16.msra.mxu0 %v15042_v7  ;;  %12597 = vmatprep.mubr.msk.f32.mxu0 %vm14304_vm1, %v14305_v8 }
 0x395   :  { %13530 = vmatprep.subr.bf16.mxu0 %v14303_v25 }
 0x397   :  { %12598 = vmatmul.mubr.f32.gmra.mrb[26].mxu0 %v14990_v22 }
 0x398   :  { %12600 = vmatprep.mubr.msk.f32.mxu0 %vm14304_vm1, %v14305_v8 }
 0x39b   :  { %12601 = vmatmul.mubr.f32.gmra.mrb[28].mxu0 %v15001_v6 }
 0x39c   :  { %12607 = vmatprep.mubr.msk.f32.mxu0 %vm14304_vm1, %v14305_v8 }
 0x39f   :  { %12608 = vmatmul.mubr.f32.vlgmr.msra.gmra.mrb[24].mxu0 %v14995_v41 }
 0x3a0   :  { %13532 = vmatpush3.bf16.msra.mxu0 %v15056_v46  ;;  %12610 = vmatprep.mubr.msk.f32.mxu0 %vm14304_vm1, %v14305_v8 }
 0x3a1   :  { %13533 = vmatprep.subr.bf16.mxu0 %v14303_v25 }
 0x3a3   :  { %12611 = vmatmul.mubr.f32.gmra.mrb[26].mxu0 %v14998_v40 }
 0x3a4   :  { %12613 = vmatprep.mubr.msk.f32.mxu0 %vm14304_vm1, %v14305_v8 }
 0x3a7   :  { %12614 = vmatmul.mubr.f32.gmra.mrb[28].mxu0 %v15010_v61 }
 0x3a8   :  { %12620 = vmatprep.mubr.msk.f32.mxu0 %vm14304_vm1, %v14305_v8 }
 0x3ab   :  { %12621 = vmatmul.mubr.f32.vlgmr.msra.gmra.mrb[24].mxu0 %v14978_v32 }
 0x3ac   :  { %13535 = vmatpush3.bf16.msra.mxu0 %v15042_v7  ;;  %12623 = vmatprep.mubr.msk.f32.mxu0 %vm14304_vm1, %v14305_v8  ;;  %v3582_v7 = vsub.f32 %v1336_v4, %v3480_v43 }
 0x3ad   :  { %13555 = vmatprep.subr.bf16.mxu0 %v14833_v19 }
 0x3ae   :  { %v3583_v53 = vand.u32 4294901760, %v3582_v7 }
 0x3af   :  { %12624 = vmatmul.mubr.f32.gmra.mrb[26].mxu0 %v14983_v26 }
 0x3b0   :  { %12626 = vmatprep.mubr.msk.f32.mxu0 %vm14304_vm1, %v14305_v8  ;;  %v3584_v28 = vsub.f32 %v3582_v7, %v3583_v53 }
 0x3b2   :  { %v3585_v20 = vand.u32 4294901760, %v3584_v28 }
 0x3b3   :  { %12627 = vmatmul.mubr.f32.gmra.mrb[28].mxu0 %v14992_v36 }
 0x3b4   :  { %12633 = vmatprep.mubr.msk.f32.mxu0 %vm14304_vm1, %v14305_v8 }
 0x3b7   :  { %12634 = vmatmul.mubr.f32.vlgmr.msra.gmra.mrb[24].mxu0 %v14978_v32 }
 0x3b8   :  { %13557 = vmatpush3.bf16.msra.mxu0 %v14833_v19  ;;  %12636 = vmatprep.mubr.msk.f32.mxu0 %vm14304_vm1, %v14305_v8 }
 0x3b9   :  { %12724 = vmatprep.subr.mxu0 %v15238_v31 }
 0x3bb   :  { %12637 = vmatmul.mubr.f32.gmra.mrb[26].mxu0 %v14983_v26 }
 0x3bc   :  { %12725 = vmatpush3.msra.mxu0 %v15238_v31  ;;  %12639 = vmatprep.mubr.msk.f32.mxu0 %vm14304_vm1, %v14305_v8 }
 0x3bd   :  { %13559 = vmatprep.subr.bf16.mxu0 %v14855_v60 }
 0x3bf   :  { %12640 = vmatmul.mubr.f32.gmra.mrb[28].mxu0 %v14992_v36 }
 0x3c0   :  { %12726 = vmatprep.mubr.f32.mxu0 %v14771_v29 }
 0x3c3   :  { %12727 = vmatmul.mubr.f32.vlgmr.msra.gmra.mrb[30].mxu0 %v14800_v55 }
 0x3c4   :  { %13561 = vmatpush3.bf16.msra.mxu0 %v14855_v60  ;;  %12735 = vmatprep.mubr.f32.mxu0 %v14761_v15  ;;  %v3575_v60 = vsub.f32 %v1335_v49, %v3477_v2 }
 0x3c5   :  { %12733 = vmatprep.subr.mxu0 %v6383_v0 }
 0x3c6   :  { %v3576_v10 = vand.u32 4294901760, %v3575_v60  ;;  %v15286_v30 = vpack.c.bf16 %v3582_v7, %v3575_v60 }
 0x3c8   :  { %12734 = vmatpush3.msra.mxu0 %v6383_v0  ;;  %v3577_v27 = vsub.f32 %v3575_v60, %v3576_v10  ;;  %v15304_v57 = vpack.c.bf16 %v3583_v53, %v3576_v10 }
 0x3c9   :  { %13563 = vmatprep.subr.bf16.mxu0 %v14839_v12 }
 0x3cb   :  { %12736 = vmatmul.mubr.f32.vlgmr.msra.gmra.mrb[30].mxu0 %v14778_v38 }
 0x3cc   :  { %13565 = vmatpush3.bf16.msra.mxu0 %v14839_v12  ;;  %12744 = vmatprep.mubr.f32.mxu0 %v14764_v16  ;;  %v3578_v12 = vand.u32 4294901760, %v3577_v27 }
 0x3cd   :  { %12742 = vmatprep.subr.mxu0 %v6380_v33 }
 0x3ce   :  { %v15279_v23 = vpack.c.bf16 %v3585_v20, %v3578_v12 }
 0x3d0   :  { %12743 = vmatpush3.msra.mxu0 %v6380_v33 }
 0x3d1   :  { %13567 = vmatprep.subr.bf16.mxu0 %v14833_v19 }
 0x3d3   :  { %12745 = vmatmul.mubr.f32.vlgmr.msra.gmra.mrb[30].mxu0 %v14781_v42 }
 0x3d4   :  { %13569 = vmatpush3.bf16.msra.mxu0 %v14833_v19  ;;  %12753 = vmatprep.mubr.f32.mxu0 %v14767_v17 }
 0x3d5   :  { %12751 = vmatprep.subr.mxu0 %v15238_v31 }
 0x3d8   :  { %12752 = vmatpush3.msra.mxu0 %v15238_v31 }
 0x3d9   :  { %13571 = vmatprep.subr.bf16.mxu0 %v14844_v1 }
 0x3db   :  { %12754 = vmatmul.mubr.f32.vlgmr.msra.gmra.mrb[30].mxu0 %v14784_v47 }
 0x3dc   :  { %13573 = vmatpush3.bf16.msra.mxu0 %v14844_v1  ;;  %12762 = vmatprep.mubr.f32.mxu0 %v14761_v15  ;;  %v7411_v1 = vand.u32 4294901760, %v7410_v51 }
 0x3dd   :  { %12760 = vmatprep.subr.mxu0 %v6381_v62 }
 0x3de   :  { %v7412_v24 = vsub.f32 %v7410_v51, %v7411_v1 }
 0x3e0   :  { %12761 = vmatpush3.msra.mxu0 %v6381_v62 }
 0x3e1   :  { %13575 = vmatprep.subr.bf16.mxu0 %v14833_v19 }
 0x3e3   :  { %12763 = vmatmul.mubr.f32.vlgmr.msra.gmra.mrb[30].mxu0 %v14778_v38 }
 0x3e4   :  { %13577 = vmatpush3.bf16.msra.mxu0 %v14833_v19  ;;  %12771 = vmatprep.mubr.f32.mxu0 %v14761_v15  ;;  %v7413_v19 = vand.u32 4294901760, %v7412_v24 }
 0x3e5   :  { %12769 = vmatprep.subr.mxu0 %v15238_v31 }
 0x3e8   :  { %12770 = vmatpush3.msra.mxu0 %v15238_v31 }
 0x3e9   :  { %13603 = vmatprep.subr.bf16.mxu0 %v14861_v14 }
 0x3eb   :  { %12772 = vmatmul.mubr.f32.vlgmr.msra.gmra.mrb[30].mxu0 %v14778_v38 }
 0x3ec   :  { %13605 = vmatpush3.bf16.msra.mxu0 %v14861_v14  ;;  %12834 = vmatprep.mubr.f32.mxu0 %v14771_v29 }
 0x3ed   :  { %12832 = vmatprep.subr.mxu0 %v7313_v11 }
 0x3f0   :  { %12833 = vmatpush3.msra.mxu0 %v7313_v11 }
 0x3f1   :  { %12835 = vmatmul.mubr.f32.vlgmr.msra.gmra.mrb[32].mxu0 %v14800_v55  ;;  %13607 = vmatprep.subr.bf16.mxu0 %v14877_v63 }
 0x3f2   :  { %13609 = vmatpush3.bf16.msra.mxu0 %v14877_v63  ;;  %12843 = vmatprep.mubr.f32.mxu0 %v14761_v15 }
 0x3f3   :  { %12841 = vmatprep.subr.mxu0 %v7413_v19 }
 0x3f6   :  { %12842 = vmatpush3.msra.mxu0 %v7413_v19 }
 0x3f7   :  { %13611 = vmatprep.subr.bf16.mxu0 %v14869_v5 }
 0x3f9   :  { %12844 = vmatmul.mubr.f32.vlgmr.msra.gmra.mrb[32].mxu0 %v14778_v38 }
 0x3fa   :  { %13613 = vmatpush3.bf16.msra.mxu0 %v14869_v5  ;;  %12852 = vmatprep.mubr.f32.mxu0 %v14764_v16 }
 0x3fb   :  { %12850 = vmatprep.subr.mxu0 %v7410_v51 }
 0x3fe   :  { %12851 = vmatpush3.msra.mxu0 %v7410_v51 }
 0x3ff   :  { %13615 = vmatprep.subr.bf16.mxu0 %v14861_v14 }
 0x401   :  { %12853 = vmatmul.mubr.f32.vlgmr.msra.gmra.mrb[32].mxu0 %v14781_v42 }
 0x402   :  { %13617 = vmatpush3.bf16.msra.mxu0 %v14861_v14  ;;  %12861 = vmatprep.mubr.f32.mxu0 %v14767_v17 }
 0x403   :  { %12859 = vmatprep.subr.mxu0 %v7313_v11 }
 0x406   :  { %12860 = vmatpush3.msra.mxu0 %v7313_v11 }
 0x407   :  { %13619 = vmatprep.subr.bf16.mxu0 %v14871_v18 }
 0x409   :  { %12862 = vmatmul.mubr.f32.vlgmr.msra.gmra.mrb[32].mxu0 %v14784_v47 }
 0x40a   :  { %13621 = vmatpush3.bf16.msra.mxu0 %v14871_v18  ;;  %12870 = vmatprep.mubr.f32.mxu0 %v14761_v15 }
 0x40b   :  { %12868 = vmatprep.subr.mxu0 %v7411_v1 }
 0x40e   :  { %12869 = vmatpush3.msra.mxu0 %v7411_v1 }
 0x40f   :  { %13623 = vmatprep.subr.bf16.mxu0 %v14861_v14 }
 0x411   :  { %12871 = vmatmul.mubr.f32.vlgmr.msra.gmra.mrb[32].mxu0 %v14778_v38 }
 0x412   :  { %13625 = vmatpush3.bf16.msra.mxu0 %v14861_v14  ;;  %12879 = vmatprep.mubr.f32.mxu0 %v14761_v15 }
 0x413   :  { %12877 = vmatprep.subr.mxu0 %v7313_v11 }
 0x416   :  { %12878 = vmatpush3.msra.mxu0 %v7313_v11 }
 0x417   :  { %13644 = vmatprep.subr.bf16.mxu0 %v14303_v25 }
 0x419   :  { %12880 = vmatmul.mubr.f32.vlgmr.msra.gmra.mrb[32].mxu0 %v14778_v38 }
 0x41a   :  { %13646 = vmatpush3.bf16.msra.mxu0 %v15268_v9  ;;  %12964 = vmatprep.mubr.msk.f32.mxu0 %vm14304_vm1, %v14305_v8 }
 0x41b   :  { %13647 = vmatprep.subr.bf16.mxu0 %v14303_v25 }
 0x441   :  { %v3451_v5 = vpop.f32.mrb[6].mxu1 }
 0x442   :  { %v3468_v18 = vsel %vm2912_vm2, %v3451_v5, 0  ;;  %v12323_v63 = vpop.f32.mrb[7].mxu1  ;;  %v15329_v14 = vpop.f32.mrb[18].mxu0 }
 0x443   :  { %v15331_v46 = vand.u32 4294901760, %v3468_v18  ;;  %v12479_v56 = vpop.f32.mrb[19].mxu0  ;;  %v4594_v1 = vsel %vm2912_vm2, %v15329_v14, 0 }
 0x444   :  { %v15387_v24 = vand.u32 4294901760, %v4594_v1 }
 0x445   :  { %v3544_v50 = vsub.f32 %v3468_v18, %v15331_v46  ;;  %v3457_v39 = vpop.f32.mrb[8].mxu1 }
 0x446   :  { %v3471_v52 = vsel %vm2912_vm2, %v3457_v39, 0  ;;  %v12326_v35 = vpop.f32.mrb[9].mxu1  ;;  %v4583_v54 = vpop.f32.mrb[20].mxu0  ;;  %v4670_v5 = vsub.f32 %v4594_v1, %v15387_v24 }
 0x447   :  { %v3545_v31 = vand.u32 4294901760, %v3544_v50  ;;  %v15335_v33 = vand.u32 4294901760, %v3471_v52  ;;  %v12482_v62 = vpop.f32.mrb[21].mxu0  ;;  %v4597_v19 = vsel %vm2912_vm2, %v4583_v54, 0 }
 0x448   :  { %v15394_v18 = vand.u32 4294901760, %v4597_v19  ;;  %v4671_v56 = vand.u32 4294901760, %v4670_v5 }
 0x449   :  { %v3546_v37 = vsub.f32 %v3544_v50, %v3545_v31  ;;  %v3554_v0 = vsub.f32 %v3471_v52, %v15335_v33  ;;  %v3463_v49 = vpop.f32.mrb[10].mxu1 }
 0x44a   :  { %v3474_v4 = vsel %vm2912_vm2, %v3463_v49, 0  ;;  %v12329_v2 = vpop.f32.mrb[11].mxu1  ;;  %v4589_v43 = vpop.f32.mrb[22].mxu0  ;;  %v4672_v35 = vsub.f32 %v4670_v5, %v4671_v56 }
 0x44b   :  { %v3547_v60 = vand.u32 4294901760, %v3546_v37  ;;  %v3555_v7 = vand.u32 4294901760, %v3554_v0  ;;  %v15339_v10 = vand.u32 4294901760, %v3474_v4  ;;  %v12485_v53 = vpop.f32.mrb[23].mxu0  ;;  %v4600_v63 = vsel %vm2912_vm2, %v4589_v43, 0 }
 0x44c   :  { %v15402_v39 = vand.u32 4294901760, %v4600_v63 }
 0x44d   :  { %v3564_v27 = vsub.f32 %v3474_v4, %v15339_v10  ;;  %12335 = vmatmul.mubr.f32.vlgmr.msra.gmra.mrb[12].mxu1 %v3547_v60  ;;  %v3556_v28 = vsub.f32 %v3554_v0, %v3555_v7 }
 0x44e   :  { %12337 = vmatprep.mubr.msk.f32.mxu1 %vm14304_vm1, %v14305_v8  ;;  %13469 = vmatpush3.bf16.msra.mxu1 %v15279_v23 }
 0x44f   :  { %v3565_v12 = vand.u32 4294901760, %v3564_v27  ;;  %v3557_v20 = vand.u32 4294901760, %v3556_v28  ;;  %13470 = vmatprep.subr.bf16.mxu1 %v14303_v25 }
 0x451   :  { %12338 = vmatmul.mubr.f32.gmra.mrb[14].mxu1 %v3557_v20  ;;  %v3566_v11 = vsub.f32 %v3564_v27, %v3565_v12 }
 0x452   :  { %12340 = vmatprep.mubr.msk.f32.mxu1 %vm14304_vm1, %v14305_v8 }
 0x453   :  { %v3567_v51 = vand.u32 4294901760, %v3566_v11 }
 0x455   :  { %12341 = vmatmul.mubr.f32.gmra.mrb[16].mxu1 %v3567_v51 }
 0x456   :  { %12347 = vmatprep.mubr.msk.f32.mxu1 %vm14304_vm1, %v14305_v8 }
 0x459   :  { %12348 = vmatmul.mubr.f32.vlgmr.msra.gmra.mrb[12].mxu1 %v15331_v46 }
 0x45a   :  { %12350 = vmatprep.mubr.msk.f32.mxu1 %vm14304_vm1, %v14305_v8  ;;  %13472 = vmatpush3.bf16.msra.mxu1 %v15286_v30 }
 0x45b   :  { %13473 = vmatprep.subr.bf16.mxu1 %v14303_v25 }
 0x45d   :  { %12351 = vmatmul.mubr.f32.gmra.mrb[14].mxu1 %v15335_v33 }
 0x45e   :  { %12353 = vmatprep.mubr.msk.f32.mxu1 %vm14304_vm1, %v14305_v8 }
 0x461   :  { %12354 = vmatmul.mubr.f32.gmra.mrb[16].mxu1 %v15339_v10 }
 0x462   :  { %12360 = vmatprep.mubr.msk.f32.mxu1 %vm14304_vm1, %v14305_v8 }
 0x465   :  { %12361 = vmatmul.mubr.f32.vlgmr.msra.gmra.mrb[12].mxu1 %v3544_v50  ;;  %v4680_v50 = vsub.f32 %v4597_v19, %v15394_v18 }
 0x466   :  { %12363 = vmatprep.mubr.msk.f32.mxu1 %vm14304_vm1, %v14305_v8  ;;  %13475 = vmatpush3.bf16.msra.mxu1 %v15268_v9 }
 0x467   :  { %13476 = vmatprep.subr.bf16.mxu1 %v14303_v25  ;;  %v4681_v54 = vand.u32 4294901760, %v4680_v50 }
 0x469   :  { %12364 = vmatmul.mubr.f32.gmra.mrb[14].mxu1 %v3554_v0  ;;  %v4673_v0 = vand.u32 4294901760, %v4672_v35  ;;  %v4682_v4 = vsub.f32 %v4680_v50, %v4681_v54 }
 0x46a   :  { %12366 = vmatprep.mubr.msk.f32.mxu1 %vm14304_vm1, %v14305_v8 }
 0x46d   :  { %12367 = vmatmul.mubr.f32.gmra.mrb[16].mxu1 %v3564_v27 }
 0x46e   :  { %12373 = vmatprep.mubr.msk.f32.mxu1 %vm14304_vm1, %v14305_v8 }
 0x471   :  { %12374 = vmatmul.mubr.f32.vlgmr.msra.gmra.mrb[12].mxu1 %v3545_v31  ;;  %v4690_v31 = vsub.f32 %v4600_v63, %v15402_v39 }
 0x472   :  { %12376 = vmatprep.mubr.msk.f32.mxu1 %vm14304_vm1, %v14305_v8  ;;  %13478 = vmatpush3.bf16.msra.mxu1 %v15304_v57 }
 0x473   :  { %13479 = vmatprep.subr.bf16.mxu1 %v14303_v25  ;;  %v4691_v49 = vand.u32 4294901760, %v4690_v31 }
 0x475   :  { %12377 = vmatmul.mubr.f32.gmra.mrb[14].mxu1 %v3555_v7  ;;  %v4692_v43 = vsub.f32 %v4690_v31, %v4691_v49 }
 0x476   :  { %12379 = vmatprep.mubr.msk.f32.mxu1 %vm14304_vm1, %v14305_v8 }
 0x477   :  { %v4693_v60 = vand.u32 4294901760, %v4692_v43 }
 0x479   :  { %12380 = vmatmul.mubr.f32.gmra.mrb[16].mxu1 %v3565_v12 }
 0x47a   :  { %12386 = vmatprep.mubr.msk.f32.mxu1 %vm14304_vm1, %v14305_v8 }
 0x47d   :  { %12387 = vmatmul.mubr.f32.vlgmr.msra.gmra.mrb[12].mxu1 %v15331_v46 }
 0x47e   :  { %12389 = vmatprep.mubr.msk.f32.mxu1 %vm14304_vm1, %v14305_v8  ;;  %13481 = vmatpush3.bf16.msra.mxu1 %v15268_v9 }
 0x47f   :  { %13500 = vmatprep.subr.bf16.mxu1 %v14303_v25 }
 0x481   :  { %12390 = vmatmul.mubr.f32.gmra.mrb[14].mxu1 %v15335_v33 }
 0x482   :  { %12392 = vmatprep.mubr.msk.f32.mxu1 %vm14304_vm1, %v14305_v8 }
 0x485   :  { %12393 = vmatmul.mubr.f32.gmra.mrb[16].mxu1 %v15339_v10 }
 0x486   :  { %12399 = vmatprep.mubr.msk.f32.mxu1 %vm14304_vm1, %v14305_v8 }
 0x489   :  { %12400 = vmatmul.mubr.f32.vlgmr.msra.gmra.mrb[12].mxu1 %v15331_v46 }
 0x48a   :  { %12402 = vmatprep.mubr.msk.f32.mxu1 %vm14304_vm1, %v14305_v8  ;;  %13502 = vmatpush3.bf16.msra.mxu1 %v15268_v9  ;;  %v5703_v14 = vpop.f32.mrb[24].mxu0 }
 0x48b   :  { %v12635_v52 = vpop.f32.mrb[25].mxu0  ;;  %13503 = vmatprep.subr.bf16.mxu1 %v14303_v25  ;;  %v5720_v7 = vsel %vm2912_vm2, %v5703_v14, 0 }
 0x48d   :  { %12403 = vmatmul.mubr.f32.gmra.mrb[14].mxu1 %v15335_v33  ;;  %v4683_v33 = vand.u32 4294901760, %v4682_v4 }
 0x48e   :  { %12405 = vmatprep.mubr.msk.f32.mxu1 %vm14304_vm1, %v14305_v8  ;;  %v5709_v46 = vpop.f32.mrb[26].mxu0 }
 0x48f   :  { %v12638_v62 = vpop.f32.mrb[27].mxu0  ;;  %v5723_v53 = vsel %vm2912_vm2, %v5709_v46, 0 }
 0x490   :  { %v15463_v28 = vand.u32 4294901760, %v5723_v53 }
 0x491   :  { %12406 = vmatmul.mubr.f32.gmra.mrb[16].mxu1 %v15339_v10  ;;  %v15456_v10 = vand.u32 4294901760, %v5720_v7 }
 0x492   :  { %12490 = vmatprep.mubr.msk.f32.mxu1 %vm14304_vm1, %v14305_v8  ;;  %v5715_v37 = vpop.f32.mrb[28].mxu0  ;;  %v5806_v11 = vsub.f32 %v5723_v53, %v15463_v28  ;;  %v7832_v53 = vstv %s11216_s14 }
 0x493   :  { %v12641_v2 = vpop.f32.mrb[29].mxu0  ;;  %v5796_v27 = vsub.f32 %v5720_v7, %v15456_v10  ;;  %v5726_v12 = vsel %vm2912_vm2, %v5715_v37, 0  ;;  %v8948_v7 = vstv %s11218_s12 }
 0x494   :  { %v15471_v51 = vand.u32 4294901760, %v5726_v12  ;;  %v5807_v19 = vand.u32 4294901760, %v5806_v11 }
 0x495   :  { %12491 = vmatmul.mubr.f32.vlgmr.msra.gmra.mrb[18].mxu1 %v4673_v0  ;;  %v5797_v20 = vand.u32 4294901760, %v5796_v27 }
 0x496   :  { %12493 = vmatprep.mubr.msk.f32.mxu1 %vm14304_vm1, %v14305_v8  ;;  %13505 = vmatpush3.bf16.msra.mxu1 %v15279_v23  ;;  %v5808_v14 = vsub.f32 %v5806_v11, %v5807_v19 }
 0x497   :  { %13506 = vmatprep.subr.bf16.mxu1 %v14303_v25  ;;  %v5798_v1 = vsub.f32 %v5796_v27, %v5797_v20 }
 0x499   :  { %12494 = vmatmul.mubr.f32.gmra.mrb[20].mxu1 %v4683_v33 }
 0x49a   :  { %12496 = vmatprep.mubr.msk.f32.mxu1 %vm14304_vm1, %v14305_v8 }
 0x49d   :  { %12497 = vmatmul.mubr.f32.gmra.mrb[22].mxu1 %v4693_v60  ;;  %v7822_v60 = vstv %s7821_s11 }
 0x49e   :  { %12503 = vmatprep.mubr.msk.f32.mxu1 %vm14304_vm1, %v14305_v8 }
 0x4a1   :  { %12504 = vmatmul.mubr.f32.vlgmr.msra.gmra.mrb[18].mxu1 %v15387_v24 }
 0x4a2   :  { %12506 = vmatprep.mubr.msk.f32.mxu1 %vm14304_vm1, %v14305_v8  ;;  %13508 = vmatpush3.bf16.msra.mxu1 %v15286_v30 }
 0x4a3   :  { %13509 = vmatprep.subr.bf16.mxu1 %v14303_v25 }
 0x4a5   :  { %12507 = vmatmul.mubr.f32.gmra.mrb[20].mxu1 %v15394_v18 }
 0x4a6   :  { %12509 = vmatprep.mubr.msk.f32.mxu1 %vm14304_vm1, %v14305_v8 }
 0x4a9   :  { %12510 = vmatmul.mubr.f32.gmra.mrb[22].mxu1 %v15402_v39 }
 0x4aa   :  { %12516 = vmatprep.mubr.msk.f32.mxu1 %vm14304_vm1, %v14305_v8 }
 0x4ad   :  { %12517 = vmatmul.mubr.f32.vlgmr.msra.gmra.mrb[18].mxu1 %v4670_v5  ;;  %v5799_v5 = vand.u32 4294901760, %v5798_v1  ;;  %v8952_v1 = vstv %s15608_s18 }
 0x4ae   :  { %12519 = vmatprep.mubr.msk.f32.mxu1 %vm14304_vm1, %v14305_v8  ;;  %13511 = vmatpush3.bf16.msra.mxu1 %v15268_v9 }
 0x4af   :  { %13512 = vmatprep.subr.bf16.mxu1 %v14303_v25 }
 0x4b1   :  { %12520 = vmatmul.mubr.f32.gmra.mrb[20].mxu1 %v4680_v50 }
 0x4b2   :  { %12522 = vmatprep.mubr.msk.f32.mxu1 %vm14304_vm1, %v14305_v8 }
 0x4b5   :  { %12523 = vmatmul.mubr.f32.gmra.mrb[22].mxu1 %v4690_v31 }
 0x4b6   :  { %12529 = vmatprep.mubr.msk.f32.mxu1 %vm14304_vm1, %v14305_v8 }
 0x4b9   :  { %12530 = vmatmul.mubr.f32.vlgmr.msra.gmra.mrb[18].mxu1 %v4671_v56 }
 0x4ba   :  { %12532 = vmatprep.mubr.msk.f32.mxu1 %vm14304_vm1, %v14305_v8  ;;  %13514 = vmatpush3.bf16.msra.mxu1 %v15304_v57 }
 0x4bb   :  { %13515 = vmatprep.subr.bf16.mxu1 %v14303_v25 }
 0x4bd   :  { %12533 = vmatmul.mubr.f32.gmra.mrb[20].mxu1 %v4681_v54 }
 0x4be   :  { %12535 = vmatprep.mubr.msk.f32.mxu1 %vm14304_vm1, %v14305_v8  ;;  %v15544_v54 = vpop.f32.mrb[30].mxu0 }
 0x4c1   :  { %12536 = vmatmul.mubr.f32.gmra.mrb[22].mxu1 %v4691_v49 }
 0x4c2   :  { %12542 = vmatprep.mubr.msk.f32.mxu1 %vm14304_vm1, %v14305_v8 }
 0x4c5   :  { %12543 = vmatmul.mubr.f32.vlgmr.msra.gmra.mrb[18].mxu1 %v15387_v24 }
 0x4c6   :  { %12545 = vmatprep.mubr.msk.f32.mxu1 %vm14304_vm1, %v14305_v8  ;;  %13517 = vmatpush3.bf16.msra.mxu1 %v15268_v9 }
 0x4c7   :  { %13536 = vmatprep.subr.bf16.mxu1 %v14303_v25 }
 0x4c9   :  { %12546 = vmatmul.mubr.f32.gmra.mrb[20].mxu1 %v15394_v18 }
 0x4ca   :  { %12548 = vmatprep.mubr.msk.f32.mxu1 %vm14304_vm1, %v14305_v8 }
 0x4cd   :  { %12549 = vmatmul.mubr.f32.gmra.mrb[22].mxu1 %v15402_v39 }
 0x4ce   :  { %12555 = vmatprep.mubr.msk.f32.mxu1 %vm14304_vm1, %v14305_v8 }
 0x4d1   :  { %12556 = vmatmul.mubr.f32.vlgmr.msra.gmra.mrb[18].mxu1 %v15387_v24  ;;  %v5816_v24 = vsub.f32 %v5726_v12, %v15471_v51  ;;  %v8958_v12 = vstv %s11220_s15 }
 0x4d2   :  { %12558 = vmatprep.mubr.msk.f32.mxu1 %vm14304_vm1, %v14305_v8  ;;  %13538 = vmatpush3.bf16.msra.mxu1 %v15268_v9 }
 0x4d3   :  { %13539 = vmatprep.subr.bf16.mxu1 %v14303_v25  ;;  %v5817_v63 = vand.u32 4294901760, %v5816_v24 }
 0x4d5   :  { %12559 = vmatmul.mubr.f32.gmra.mrb[20].mxu1 %v15394_v18  ;;  %v5809_v18 = vand.u32 4294901760, %v5808_v14  ;;  %v5818_v56 = vsub.f32 %v5816_v24, %v5817_v63 }
 0x4d6   :  { %12561 = vmatprep.mubr.msk.f32.mxu1 %vm14304_vm1, %v14305_v8 }
 0x4d7   :  { %v5819_v50 = vand.u32 4294901760, %v5818_v56 }
 0x4d9   :  { %12562 = vmatmul.mubr.f32.gmra.mrb[22].mxu1 %v15402_v39  ;;  %v6798_v39 = vand.u32 4294901760, %v14847_v48 }
 0x4da   :  { %12646 = vmatprep.mubr.msk.f32.mxu1 %vm14304_vm1, %v14305_v8 }
 0x4db   :  { %v6895_v52 = vsub.f32 %v14847_v48, %v6798_v39 }
 0x4dd   :  { %12647 = vmatmul.mubr.f32.vlgmr.msra.gmra.mrb[24].mxu1 %v5799_v5  ;;  %v6896_v46 = vand.u32 4294901760, %v6895_v52 }
 0x4de   :  { %12649 = vmatprep.mubr.msk.f32.mxu1 %vm14304_vm1, %v14305_v8  ;;  %13541 = vmatpush3.bf16.msra.mxu1 %v15279_v23 }
 0x4df   :  { %13542 = vmatprep.subr.bf16.mxu1 %v14303_v25  ;;  %v6897_v48 = vsub.f32 %v6895_v52, %v6896_v46 }
 0x4e1   :  { %12650 = vmatmul.mubr.f32.gmra.mrb[26].mxu1 %v5809_v18  ;;  %v6898_v35 = vand.u32 4294901760, %v6897_v48 }
 0x4e2   :  { %12652 = vmatprep.mubr.msk.f32.mxu1 %vm14304_vm1, %v14305_v8 }
 0x4e5   :  { %12653 = vmatmul.mubr.f32.gmra.mrb[28].mxu1 %v5819_v50 }
 0x4e6   :  { %12659 = vmatprep.mubr.msk.f32.mxu1 %vm14304_vm1, %v14305_v8 }
 0x4e9   :  { %12660 = vmatmul.mubr.f32.vlgmr.msra.gmra.mrb[24].mxu1 %v15456_v10 }
 0x4ea   :  { %12662 = vmatprep.mubr.msk.f32.mxu1 %vm14304_vm1, %v14305_v8  ;;  %13544 = vmatpush3.bf16.msra.mxu1 %v15286_v30 }
 0x4eb   :  { %13545 = vmatprep.subr.bf16.mxu1 %v14303_v25 }
 0x4ed   :  { %12663 = vmatmul.mubr.f32.gmra.mrb[26].mxu1 %v15463_v28 }
 0x4ee   :  { %12665 = vmatprep.mubr.msk.f32.mxu1 %vm14304_vm1, %v14305_v8 }
 0x4f1   :  { %12666 = vmatmul.mubr.f32.gmra.mrb[28].mxu1 %v15471_v51 }
 0x4f2   :  { %12672 = vmatprep.mubr.msk.f32.mxu1 %vm14304_vm1, %v14305_v8 }
 0x4f5   :  { %12673 = vmatmul.mubr.f32.vlgmr.msra.gmra.mrb[24].mxu1 %v5796_v27  ;;  %v7824_v27 = vmul.f32 %v15544_v54, %v7822_v60 }
 0x4f6   :  { %12675 = vmatprep.mubr.msk.f32.mxu1 %vm14304_vm1, %v14305_v8  ;;  %13547 = vmatpush3.bf16.msra.mxu1 %v15268_v9 }
 0x4f7   :  { %13548 = vmatprep.subr.bf16.mxu1 %v14303_v25 }
 0x4f9   :  { %12676 = vmatmul.mubr.f32.gmra.mrb[26].mxu1 %v5806_v11 }
 0x4fa   :  { %12678 = vmatprep.mubr.msk.f32.mxu1 %vm14304_vm1, %v14305_v8 }
 0x4fd   :  { %12679 = vmatmul.mubr.f32.gmra.mrb[28].mxu1 %v5816_v24 }
 0x4fe   :  { %12685 = vmatprep.mubr.msk.f32.mxu1 %vm14304_vm1, %v14305_v8 }
 0x501   :  { %12686 = vmatmul.mubr.f32.vlgmr.msra.gmra.mrb[24].mxu1 %v5797_v20  ;;  %v10084_v20 = vstv %s11224_s16 }
 0x502   :  { %12688 = vmatprep.mubr.msk.f32.mxu1 %vm14304_vm1, %v14305_v8  ;;  %13550 = vmatpush3.bf16.msra.mxu1 %v15304_v57 }
 0x503   :  { %13551 = vmatprep.subr.bf16.mxu1 %v14303_v25 }
 0x505   :  { %12689 = vmatmul.mubr.f32.gmra.mrb[26].mxu1 %v5807_v19  ;;  %v10078_v19 = vstv %s15610_s3 }
 0x506   :  { %12691 = vmatprep.mubr.msk.f32.mxu1 %vm14304_vm1, %v14305_v8 }
 0x509   :  { %12692 = vmatmul.mubr.f32.gmra.mrb[28].mxu1 %v5817_v63 }
 0x50a   :  { %12698 = vmatprep.mubr.msk.f32.mxu1 %vm14304_vm1, %v14305_v8 }
 0x50d   :  { %12699 = vmatmul.mubr.f32.vlgmr.msra.gmra.mrb[24].mxu1 %v15456_v10 }
 0x50e   :  { %13553 = vmatpush3.bf16.msra.mxu1 %v15268_v9  ;;  %12701 = vmatprep.mubr.msk.f32.mxu1 %vm14304_vm1, %v14305_v8 }
 0x50f   :  { %13579 = vmatprep.subr.bf16.mxu1 %v14841_v59 }
 0x511   :  { %12702 = vmatmul.mubr.f32.gmra.mrb[26].mxu1 %v15463_v28 }
 0x512   :  { %12704 = vmatprep.mubr.msk.f32.mxu1 %vm14304_vm1, %v14305_v8 }
 0x515   :  { %12705 = vmatmul.mubr.f32.gmra.mrb[28].mxu1 %v15471_v51 }
 0x516   :  { %12711 = vmatprep.mubr.msk.f32.mxu1 %vm14304_vm1, %v14305_v8 }
 0x519   :  { %12712 = vmatmul.mubr.f32.vlgmr.msra.gmra.mrb[24].mxu1 %v15456_v10  ;;  %v10074_v10 = vstv %s11222_s13 }
 0x51a   :  { %13581 = vmatpush3.bf16.msra.mxu1 %v14841_v59  ;;  %12714 = vmatprep.mubr.msk.f32.mxu1 %vm14304_vm1, %v14305_v8  ;;  %v10076_v24 = vmul.f32 %v15544_v54, %v10074_v10 }
 0x51b   :  { %12778 = vmatprep.subr.mxu1 %v6798_v39 }
 0x51d   :  { %12715 = vmatmul.mubr.f32.gmra.mrb[26].mxu1 %v15463_v28  ;;  %v8950_v28 = vmul.f32 %v15544_v54, %v8948_v7 }
 0x51e   :  { %12779 = vmatpush3.msra.mxu1 %v6798_v39  ;;  %12717 = vmatprep.mubr.msk.f32.mxu1 %vm14304_vm1, %v14305_v8 }
 0x51f   :  { %13583 = vmatprep.subr.bf16.mxu1 %v14864_v34 }
 0x521   :  { %12718 = vmatmul.mubr.f32.gmra.mrb[28].mxu1 %v15471_v51  ;;  %v7826_v51 = vstv %s15606_s17 }
 0x522   :  { %12780 = vmatprep.mubr.f32.mxu1 %v14771_v29  ;;  %v15548_v29 = vpop.f32.mrb[31].mxu0 }
 0x523   :  { %v7823_v11 = vmul.f32 %v7822_v60, %v15548_v29  ;;  %v8949_v5 = vmul.f32 %v8948_v7, %v15548_v29  ;;  %v10075_v63 = vmul.f32 %v10074_v10, %v15548_v29 }
 0x525   :  { %12781 = vmatmul.mubr.f32.vlgmr.msra.gmra.mrb[30].mxu1 %v14800_v55  ;;  %v15578_v55 = vpop.f32.mrb[32].mxu0 }
 0x526   :  { %13585 = vmatpush3.bf16.msra.mxu1 %v14864_v34  ;;  %12789 = vmatprep.mubr.f32.mxu1 %v14761_v15  ;;  %v7834_v14 = vmul.f32 %v15578_v55, %v7832_v53  ;;  %v8960_v18 = vmul.f32 %v15578_v55, %v8958_v12  ;;  %v10086_v56 = vmul.f32 %v15578_v55, %v10084_v20 }
 0x527   :  { %12787 = vmatprep.subr.mxu1 %v6898_v35 }
 0x52a   :  { %12788 = vmatpush3.msra.mxu1 %v6898_v35 }
 0x52b   :  { %13587 = vmatprep.subr.bf16.mxu1 %v14851_v21 }
 0x52d   :  { %12790 = vmatmul.mubr.f32.vlgmr.msra.gmra.mrb[30].mxu1 %v14778_v38 }
 0x52e   :  { %13589 = vmatpush3.bf16.msra.mxu1 %v14851_v21  ;;  %12798 = vmatprep.mubr.f32.mxu1 %v14764_v16 }
 0x52f   :  { %12796 = vmatprep.subr.mxu1 %v6895_v52 }
 0x532   :  { %12797 = vmatpush3.msra.mxu1 %v6895_v52 }
 0x533   :  { %13591 = vmatprep.subr.bf16.mxu1 %v14841_v59 }
 0x535   :  { %12799 = vmatmul.mubr.f32.vlgmr.msra.gmra.mrb[30].mxu1 %v14781_v42 }
 0x536   :  { %13593 = vmatpush3.bf16.msra.mxu1 %v14841_v59  ;;  %12807 = vmatprep.mubr.f32.mxu1 %v14767_v17 }
 0x537   :  { %12805 = vmatprep.subr.mxu1 %v6798_v39 }
 0x53a   :  { %12806 = vmatpush3.msra.mxu1 %v6798_v39 }
 0x53b   :  { %13595 = vmatprep.subr.bf16.mxu1 %v14857_v44 }
 0x53d   :  { %12808 = vmatmul.mubr.f32.vlgmr.msra.gmra.mrb[30].mxu1 %v14784_v47 }
 0x53e   :  { %13597 = vmatpush3.bf16.msra.mxu1 %v14857_v44  ;;  %12816 = vmatprep.mubr.f32.mxu1 %v14761_v15 }
 0x53f   :  { %12814 = vmatprep.subr.mxu1 %v6896_v46 }
 0x542   :  { %12815 = vmatpush3.msra.mxu1 %v6896_v46 }
 0x543   :  { %13599 = vmatprep.subr.bf16.mxu1 %v14841_v59 }
 0x545   :  { %12817 = vmatmul.mubr.f32.vlgmr.msra.gmra.mrb[30].mxu1 %v14778_v38 }
 0x546   :  { %13601 = vmatpush3.bf16.msra.mxu1 %v14841_v59  ;;  %12825 = vmatprep.mubr.f32.mxu1 %v14761_v15  ;;  %v15580_v59 = vpop.f32.mrb[33].mxu0 }
 0x547   :  { %12823 = vmatprep.subr.mxu1 %v6798_v39  ;;  %v7833_v50 = vmul.f32 %v7832_v53, %v15580_v59  ;;  %v10085_v46 = vmul.f32 %v10084_v20, %v15580_v59 }
 0x54a   :  { %12824 = vmatpush3.msra.mxu1 %v6798_v39  ;;  %v8959_v39 = vmul.f32 %v8958_v12, %v15580_v59 }
 0x54b   :  { %13626 = vmatprep.subr.bf16.mxu1 %v14303_v25 }
 0x54d   :  { %12826 = vmatmul.mubr.f32.vlgmr.msra.gmra.mrb[30].mxu1 %v14778_v38 }
 0x54e   :  { %12886 = vmatprep.mubr.msk.f32.mxu1 %vm14304_vm1, %v14305_v8 }
 0x55c   :  { %v4005_v16 = vpop.f32.mrb[12].mxu1 }
 0x55d   :  { %4021 = vst.msk [vmem:[%s16094_s7] sm:$0xff] %vm72_vm0, %v4005_v16  ;;  %v12401_v17 = vpop.f32.mrb[13].mxu1 }
 0x560   :  { %v4011_v42 = vpop.f32.mrb[14].mxu1 }
 0x561   :  { %4022 = vst.msk [vmem:[%s16094_s7 + $0x8] sm:$0xff] %vm72_vm0, %v4011_v42  ;;  %v12404_v15 = vpop.f32.mrb[15].mxu1  ;;  %v7838_v42 = vstv %s15612_s19 }
 0x564   :  { %v4017_v47 = vpop.f32.mrb[16].mxu1 }
 0x565   :  { %4023 = vst.msk [vmem:[%s16094_s7 + $0x10] sm:$0xff] %vm72_vm0, %v4017_v47  ;;  %v12407_v38 = vpop.f32.mrb[17].mxu1 }
 0x5a4   :  { %v5131_v21 = vpop.f32.mrb[18].mxu1 }
 0x5a5   :  { %5147 = vst.msk [vmem:[%s16094_s7 + $0x18] sm:$0xff] %vm72_vm0, %v5131_v21  ;;  %v12557_v44 = vpop.f32.mrb[19].mxu1 }
 0x5a8   :  { %v5137_v34 = vpop.f32.mrb[20].mxu1 }
 0x5a9   :  { %5148 = vst.msk [vmem:[%s16094_s7 + $0x20] sm:$0xff] %vm72_vm0, %v5137_v34  ;;  %v12560_v31 = vpop.f32.mrb[21].mxu1  ;;  %v8964_v34 = vstv %s15614_s20 }
 0x5ac   :  { %v5143_v62 = vpop.f32.mrb[22].mxu1 }
 0x5ad   :  { %5149 = vst.msk [vmem:[%s16094_s7 + $0x28] sm:$0xff] %vm72_vm0, %v5143_v62  ;;  %v12563_v37 = vpop.f32.mrb[23].mxu1  ;;  %v10090_v62 = vstv %s15616_s1 }
 0x5ec   :  { %v6257_v0 = vpop.f32.mrb[24].mxu1 }
 0x5ed   :  { %6273 = vst.msk [vmem:[%s16094_s7 + $0x30] sm:$0xff] %vm72_vm0, %v6257_v0  ;;  %v12713_v49 = vpop.f32.mrb[25].mxu1 }
 0x5f0   :  { %v6263_v4 = vpop.f32.mrb[26].mxu1 }
 0x5f1   :  { %6274 = vst.msk [vmem:[%s16094_s7 + $0x38] sm:$0xff] %vm72_vm0, %v6263_v4  ;;  %v12716_v2 = vpop.f32.mrb[27].mxu1 }
 0x5f4   :  { %v6269_v33 = vpop.f32.mrb[28].mxu1 }
 0x5f5   :  { %6275 = vst.msk [vmem:[%s16094_s7 + $0x40] sm:$0xff] %vm72_vm0, %v6269_v33  ;;  %v12719_v43 = vpop.f32.mrb[29].mxu1 }
 0x620   :  { %v12827_v52 = vpop.f32.mrb[30].mxu1 }
 0x621   :  { %v7828_v48 = vmul.f32 %v12827_v52, %v7826_v51  ;;  %v8954_v35 = vmul.f32 %v12827_v52, %v8952_v1  ;;  %v10080_v16 = vmul.f32 %v12827_v52, %v10078_v19  ;;  %v7296_v17 = vpop.f32.mrb[31].mxu1 }
 0x622   :  { %v7827_v15 = vmul.f32 %v7826_v51, %v7296_v17  ;;  %v8953_v47 = vmul.f32 %v8952_v1, %v7296_v17  ;;  %v10079_v38 = vmul.f32 %v10078_v19, %v7296_v17 }
 0x623   :  { %v7830_v21 = vadd.f32 %v7828_v48, %v7824_v27  ;;  %v8956_v44 = vadd.f32 %v8954_v35, %v8950_v28  ;;  %v10082_v31 = vadd.f32 %v10080_v16, %v10076_v24 }
 0x624   :  { %v7829_v37 = vadd.f32 %v7827_v15, %v7823_v11  ;;  %v8955_v0 = vadd.f32 %v8953_v47, %v8949_v5  ;;  %v10081_v49 = vadd.f32 %v10079_v38, %v10075_v63 }
 0x625   :  { %v7836_v4 = vadd.f32 %v7834_v14, %v7830_v21  ;;  %v8962_v2 = vadd.f32 %v8960_v18, %v8956_v44  ;;  %v10088_v33 = vadd.f32 %v10086_v56, %v10082_v31 }
 0x626   :  { %v7835_v43 = vadd.f32 %v7833_v50, %v7829_v37  ;;  %v8961_v60 = vadd.f32 %v8959_v39, %v8955_v0  ;;  %v10087_v7 = vadd.f32 %v10085_v46, %v10081_v49 }
 0x627   :  { %v7840_v10 = vadd.f32 %v7838_v42, %v7836_v4  ;;  %v8966_v53 = vadd.f32 %v8964_v34, %v8962_v2  ;;  %v10092_v12 = vadd.f32 %v10090_v62, %v10088_v33 }
 0x628   :  { %v7839_v20 = vadd.f32 %v7838_v42, %v7835_v43  ;;  %v8965_v51 = vadd.f32 %v8964_v34, %v8961_v60  ;;  %v10091_v27 = vadd.f32 %v10090_v62, %v10087_v7 }
 0x629   :  { %14261 = vtanh.f32 %v7840_v10 }
 0x62a   :  { %14263 = vtanh.f32 %v8966_v53 }
 0x62b   :  { %14265 = vtanh.f32 %v10092_v12 }
 0x62c   :  { %14267 = vtanh.f32 %v7839_v20 }
 0x62d   :  { %14269 = vtanh.f32 %v8965_v51 }
 0x62e   :  { %14271 = vtanh.f32 %v10091_v27 }
 0x633   :  { %v14262_v28 = vpop.eup %14261 }
 0x634   :  { %v14264_v11 = vpop.eup %14263  ;;  %v7844_v1 = vadd.f32 %v14262_v28, %v15544_v54 }
 0x635   :  { %v14266_v19 = vpop.eup %14265  ;;  %v8970_v24 = vadd.f32 %v14264_v11, %v12827_v52 }
 0x636   :  { %v14268_v5 = vpop.eup %14267  ;;  %v7849_v63 = vand.u32 4294901760, %v7844_v1  ;;  %v10096_v14 = vadd.f32 %v14266_v19, %v15578_v55 }
 0x637   :  { %v14270_v18 = vpop.eup %14269  ;;  %v8975_v56 = vand.u32 4294901760, %v8970_v24  ;;  %v7843_v50 = vadd.f32 %v14268_v5, %v15548_v29 }
 0x638   :  { %v14272_v39 = vpop.eup %14271  ;;  %v8969_v46 = vadd.f32 %v14270_v18, %v7296_v17  ;;  %v7951_v48 = vsub.f32 %v7844_v1, %v7849_v63  ;;  %v10101_v35 = vand.u32 4294901760, %v10096_v14 }
 0x639   :  { %v15639_v16 = vsub.f32 %v8970_v24, %v8975_v56  ;;  %v7846_v42 = vand.u32 4294901760, %v7843_v50  ;;  %v10095_v15 = vadd.f32 %v14272_v39, %v15580_v59 }
 0x63a   :  { %v8972_v54 = vand.u32 4294901760, %v8969_v46  ;;  %v7952_v47 = vand.u32 4294901760, %v7951_v48  ;;  %v15642_v52 = vsub.f32 %v10096_v14, %v10101_v35 }
 0x63b   :  { %v15644_v38 = vpack.c.bf16 %v7849_v63, %v7846_v42  ;;  %v7944_v55 = vsub.f32 %v7843_v50, %v7846_v42  ;;  %v9078_v21 = vand.u32 4294901760, %v15639_v16  ;;  %v10098_v44 = vand.u32 4294901760, %v10095_v15 }
 0x63c   :  { %v15647_v29 = vsub.f32 %v8969_v46, %v8972_v54  ;;  %v7953_v17 = vsub.f32 %v7951_v48, %v7952_v47  ;;  %v15649_v34 = vpack.c.bf16 %v8975_v56, %v8972_v54  ;;  %v10204_v31 = vand.u32 4294901760, %v15642_v52 }
 0x63d   :  { %13628 = vmatpush3.bf16.msra.mxu1 %v15644_v38  ;;  %v7945_v59 = vand.u32 4294901760, %v7944_v55  ;;  %v13633_v62 = vpack.c.bf16 %v7951_v48, %v7944_v55  ;;  %v9079_v37 = vsub.f32 %v15639_v16, %v9078_v21  ;;  %v15654_v0 = vpack.c.bf16 %v10101_v35, %v10098_v44 }
 0x63e   :  { %13629 = vmatprep.subr.bf16.mxu1 %v14303_v25  ;;  %v7954_v49 = vand.u32 4294901760, %v7953_v17  ;;  %v9071_v4 = vand.u32 4294901760, %v15647_v29  ;;  %v13669_v2 = vpack.c.bf16 %v15639_v16, %v15647_v29  ;;  %v15660_v33 = vsub.f32 %v10095_v15, %v10098_v44 }
 0x63f   :  { %v7946_v43 = vsub.f32 %v7944_v55, %v7945_v59  ;;  %v13639_v60 = vpack.c.bf16 %v7952_v47, %v7945_v59  ;;  %v9080_v7 = vand.u32 4294901760, %v9079_v37  ;;  %v10205_v10 = vsub.f32 %v15642_v52, %v10204_v31 }
 0x640   :  { %12887 = vmatmul.mubr.f32.vlgmr.msra.gmra.mrb[32].mxu1 %v15016_v58  ;;  %v9072_v53 = vsub.f32 %v15647_v29, %v9071_v4  ;;  %v15665_v12 = vpack.c.bf16 %v9078_v21, %v9071_v4  ;;  %v10197_v20 = vand.u32 4294901760, %v15660_v33  ;;  %v13705_v51 = vpack.c.bf16 %v15642_v52, %v15660_v33 }
 0x641   :  { %12889 = vmatprep.mubr.msk.f32.mxu1 %vm14304_vm1, %v14305_v8  ;;  %v7947_v27 = vand.u32 4294901760, %v7946_v43  ;;  %v10206_v1 = vand.u32 4294901760, %v10205_v10 }
 0x642   :  { %v9073_v28 = vand.u32 4294901760, %v9072_v53  ;;  %v10198_v11 = vsub.f32 %v15660_v33, %v10197_v20  ;;  %v15673_v19 = vpack.c.bf16 %v10204_v31, %v10197_v20 }
 0x643   :  { %v13630_v24 = vpack.c.bf16 %v7954_v49, %v7947_v27 }
 0x644   :  { %12890 = vmatmul.mubr.f32.gmra.mrb[34].mxu1 %v15020_v3  ;;  %v13666_v5 = vpack.c.bf16 %v9080_v7, %v9073_v28  ;;  %v10199_v63 = vand.u32 4294901760, %v10198_v11 }
 0x645   :  { %13631 = vmatpush3.bf16.msra.mxu1 %v13630_v24  ;;  %12892 = vmatprep.mubr.msk.f32.mxu1 %vm14304_vm1, %v14305_v8 }
 0x646   :  { %13632 = vmatprep.subr.bf16.mxu1 %v14303_v25  ;;  %v15679_v14 = vpack.c.bf16 %v10206_v1, %v10199_v63 }
 0x648   :  { %12893 = vmatmul.mubr.f32.gmra.mrb[36].mxu1 %v15061_v45 }
 0x649   :  { %12899 = vmatprep.mubr.msk.f32.mxu1 %vm14304_vm1, %v14305_v8 }
 0x64c   :  { %12900 = vmatmul.mubr.f32.vlgmr.msra.gmra.mrb[32].mxu1 %v14978_v32 }
 0x64d   :  { %13634 = vmatpush3.bf16.msra.mxu1 %v13633_v62  ;;  %12902 = vmatprep.mubr.msk.f32.mxu1 %vm14304_vm1, %v14305_v8 }
 0x64e   :  { %13635 = vmatprep.subr.bf16.mxu1 %v14303_v25 }
 0x650   :  { %12903 = vmatmul.mubr.f32.gmra.mrb[34].mxu1 %v14983_v26 }
 0x651   :  { %12905 = vmatprep.mubr.msk.f32.mxu1 %vm14304_vm1, %v14305_v8 }
 0x654   :  { %12906 = vmatmul.mubr.f32.gmra.mrb[36].mxu1 %v14992_v36 }
 0x655   :  { %12912 = vmatprep.mubr.msk.f32.mxu1 %vm14304_vm1, %v14305_v8 }
 0x658   :  { %12913 = vmatmul.mubr.f32.vlgmr.msra.gmra.mrb[32].mxu1 %v14987_v13 }
 0x659   :  { %13637 = vmatpush3.bf16.msra.mxu1 %v15644_v38  ;;  %12915 = vmatprep.mubr.msk.f32.mxu1 %vm14304_vm1, %v14305_v8 }
 0x65a   :  { %13638 = vmatprep.subr.bf16.mxu1 %v14303_v25 }
 0x65c   :  { %12916 = vmatmul.mubr.f32.gmra.mrb[34].mxu1 %v14990_v22 }
 0x65d   :  { %12918 = vmatprep.mubr.msk.f32.mxu1 %vm14304_vm1, %v14305_v8 }
 0x660   :  { %12919 = vmatmul.mubr.f32.gmra.mrb[36].mxu1 %v15001_v6 }
 0x661   :  { %12925 = vmatprep.mubr.msk.f32.mxu1 %vm14304_vm1, %v14305_v8 }
 0x664   :  { %12926 = vmatmul.mubr.f32.vlgmr.msra.gmra.mrb[32].mxu1 %v14995_v41 }
 0x665   :  { %13640 = vmatpush3.bf16.msra.mxu1 %v13639_v60  ;;  %12928 = vmatprep.mubr.msk.f32.mxu1 %vm14304_vm1, %v14305_v8 }
 0x666   :  { %13641 = vmatprep.subr.bf16.mxu1 %v14303_v25 }
 0x668   :  { %12929 = vmatmul.mubr.f32.gmra.mrb[34].mxu1 %v14998_v40 }
 0x669   :  { %12931 = vmatprep.mubr.msk.f32.mxu1 %vm14304_vm1, %v14305_v8 }
 0x66c   :  { %12932 = vmatmul.mubr.f32.gmra.mrb[36].mxu1 %v15010_v61 }
 0x66d   :  { %12938 = vmatprep.mubr.msk.f32.mxu1 %vm14304_vm1, %v14305_v8 }
 0x670   :  { %12939 = vmatmul.mubr.f32.vlgmr.msra.gmra.mrb[32].mxu1 %v14978_v32 }
 0x671   :  { %13643 = vmatpush3.bf16.msra.mxu1 %v15644_v38  ;;  %12941 = vmatprep.mubr.msk.f32.mxu1 %vm14304_vm1, %v14305_v8 }
 0x672   :  { %13662 = vmatprep.subr.bf16.mxu1 %v14303_v25 }
 0x674   :  { %12942 = vmatmul.mubr.f32.gmra.mrb[34].mxu1 %v14983_v26 }
 0x675   :  { %12944 = vmatprep.mubr.msk.f32.mxu1 %vm14304_vm1, %v14305_v8 }
 0x678   :  { %12945 = vmatmul.mubr.f32.gmra.mrb[36].mxu1 %v14992_v36 }
 0x679   :  { %12951 = vmatprep.mubr.msk.f32.mxu1 %vm14304_vm1, %v14305_v8 }
 0x67c   :  { %12952 = vmatmul.mubr.f32.vlgmr.msra.gmra.mrb[32].mxu1 %v14978_v32 }
 0x67d   :  { %13664 = vmatpush3.bf16.msra.mxu1 %v15649_v34  ;;  %12954 = vmatprep.mubr.msk.f32.mxu1 %vm14304_vm1, %v14305_v8 }
 0x67e   :  { %13665 = vmatprep.subr.bf16.mxu1 %v14303_v25 }
 0x680   :  { %12955 = vmatmul.mubr.f32.gmra.mrb[34].mxu1 %v14983_v26 }
 0x681   :  { %12957 = vmatprep.mubr.msk.f32.mxu1 %vm14304_vm1, %v14305_v8 }
 0x684   :  { %12958 = vmatmul.mubr.f32.gmra.mrb[36].mxu1 %v14992_v36 }
 0x685   :  { %13042 = vmatprep.mubr.msk.f32.mxu1 %vm14304_vm1, %v14305_v8 }
 0x688   :  { %13043 = vmatmul.mubr.f32.vlgmr.msra.gmra.mrb[38].mxu1 %v15016_v58 }
 0x689   :  { %13667 = vmatpush3.bf16.msra.mxu1 %v13666_v5  ;;  %13045 = vmatprep.mubr.msk.f32.mxu1 %vm14304_vm1, %v14305_v8 }
 0x68a   :  { %13668 = vmatprep.subr.bf16.mxu1 %v14303_v25 }
 0x68c   :  { %13046 = vmatmul.mubr.f32.gmra.mrb[40].mxu1 %v15020_v3 }
 0x68d   :  { %13048 = vmatprep.mubr.msk.f32.mxu1 %vm14304_vm1, %v14305_v8 }
 0x690   :  { %13049 = vmatmul.mubr.f32.gmra.mrb[42].mxu1 %v15061_v45 }
 0x691   :  { %13055 = vmatprep.mubr.msk.f32.mxu1 %vm14304_vm1, %v14305_v8 }
 0x694   :  { %13056 = vmatmul.mubr.f32.vlgmr.msra.gmra.mrb[38].mxu1 %v14978_v32 }
 0x695   :  { %13670 = vmatpush3.bf16.msra.mxu1 %v13669_v2  ;;  %13058 = vmatprep.mubr.msk.f32.mxu1 %vm14304_vm1, %v14305_v8 }
 0x696   :  { %13671 = vmatprep.subr.bf16.mxu1 %v14303_v25 }
 0x698   :  { %13059 = vmatmul.mubr.f32.gmra.mrb[40].mxu1 %v14983_v26 }
 0x699   :  { %13061 = vmatprep.mubr.msk.f32.mxu1 %vm14304_vm1, %v14305_v8 }
 0x69c   :  { %13062 = vmatmul.mubr.f32.gmra.mrb[42].mxu1 %v14992_v36 }
 0x69d   :  { %13068 = vmatprep.mubr.msk.f32.mxu1 %vm14304_vm1, %v14305_v8 }
 0x6a0   :  { %13069 = vmatmul.mubr.f32.vlgmr.msra.gmra.mrb[38].mxu1 %v14987_v13 }
 0x6a1   :  { %13673 = vmatpush3.bf16.msra.mxu1 %v15649_v34  ;;  %13071 = vmatprep.mubr.msk.f32.mxu1 %vm14304_vm1, %v14305_v8 }
 0x6a2   :  { %13674 = vmatprep.subr.bf16.mxu1 %v14303_v25 }
 0x6a4   :  { %13072 = vmatmul.mubr.f32.gmra.mrb[40].mxu1 %v14990_v22 }
 0x6a5   :  { %13074 = vmatprep.mubr.msk.f32.mxu1 %vm14304_vm1, %v14305_v8 }
 0x6a8   :  { %13075 = vmatmul.mubr.f32.gmra.mrb[42].mxu1 %v15001_v6 }
 0x6a9   :  { %13081 = vmatprep.mubr.msk.f32.mxu1 %vm14304_vm1, %v14305_v8 }
 0x6ac   :  { %13082 = vmatmul.mubr.f32.vlgmr.msra.gmra.mrb[38].mxu1 %v14995_v41 }
 0x6ad   :  { %13676 = vmatpush3.bf16.msra.mxu1 %v15665_v12  ;;  %13084 = vmatprep.mubr.msk.f32.mxu1 %vm14304_vm1, %v14305_v8 }
 0x6ae   :  { %13677 = vmatprep.subr.bf16.mxu1 %v14303_v25 }
 0x6b0   :  { %13085 = vmatmul.mubr.f32.gmra.mrb[40].mxu1 %v14998_v40 }
 0x6b1   :  { %13087 = vmatprep.mubr.msk.f32.mxu1 %vm14304_vm1, %v14305_v8 }
 0x6b4   :  { %13088 = vmatmul.mubr.f32.gmra.mrb[42].mxu1 %v15010_v61 }
 0x6b5   :  { %13094 = vmatprep.mubr.msk.f32.mxu1 %vm14304_vm1, %v14305_v8 }
 0x6b8   :  { %13095 = vmatmul.mubr.f32.vlgmr.msra.gmra.mrb[38].mxu1 %v14978_v32 }
 0x6b9   :  { %13679 = vmatpush3.bf16.msra.mxu1 %v15649_v34  ;;  %13097 = vmatprep.mubr.msk.f32.mxu1 %vm14304_vm1, %v14305_v8 }
 0x6ba   :  { %13698 = vmatprep.subr.bf16.mxu1 %v14303_v25 }
 0x6bc   :  { %13098 = vmatmul.mubr.f32.gmra.mrb[40].mxu1 %v14983_v26 }
 0x6bd   :  { %13100 = vmatprep.mubr.msk.f32.mxu1 %vm14304_vm1, %v14305_v8 }
 0x6c0   :  { %13101 = vmatmul.mubr.f32.gmra.mrb[42].mxu1 %v14992_v36 }
 0x6c1   :  { %13107 = vmatprep.mubr.msk.f32.mxu1 %vm14304_vm1, %v14305_v8 }
 0x6c4   :  { %13108 = vmatmul.mubr.f32.vlgmr.msra.gmra.mrb[38].mxu1 %v14978_v32 }
 0x6c5   :  { %13700 = vmatpush3.bf16.msra.mxu1 %v15654_v0  ;;  %13110 = vmatprep.mubr.msk.f32.mxu1 %vm14304_vm1, %v14305_v8 }
 0x6c6   :  { %13701 = vmatprep.subr.bf16.mxu1 %v14303_v25 }
 0x6c8   :  { %13111 = vmatmul.mubr.f32.gmra.mrb[40].mxu1 %v14983_v26 }
 0x6c9   :  { %13113 = vmatprep.mubr.msk.f32.mxu1 %vm14304_vm1, %v14305_v8 }
 0x6cc   :  { %13114 = vmatmul.mubr.f32.gmra.mrb[42].mxu1 %v14992_v36 }
 0x6cd   :  { %13198 = vmatprep.mubr.msk.f32.mxu1 %vm14304_vm1, %v14305_v8 }
 0x6d0   :  { %13199 = vmatmul.mubr.f32.vlgmr.msra.gmra.mrb[44].mxu1 %v15016_v58 }
 0x6d1   :  { %13703 = vmatpush3.bf16.msra.mxu1 %v15679_v14  ;;  %13201 = vmatprep.mubr.msk.f32.mxu1 %vm14304_vm1, %v14305_v8 }
 0x6d2   :  { %13704 = vmatprep.subr.bf16.mxu1 %v14303_v25 }
 0x6d4   :  { %13202 = vmatmul.mubr.f32.gmra.mrb[46].mxu1 %v15020_v3 }
 0x6d5   :  { %13204 = vmatprep.mubr.msk.f32.mxu1 %vm14304_vm1, %v14305_v8 }
 0x6d8   :  { %13205 = vmatmul.mubr.f32.gmra.mrb[48].mxu1 %v15061_v45 }
 0x6d9   :  { %13211 = vmatprep.mubr.msk.f32.mxu1 %vm14304_vm1, %v14305_v8 }
 0x6dc   :  { %13212 = vmatmul.mubr.f32.vlgmr.msra.gmra.mrb[44].mxu1 %v14978_v32 }
 0x6dd   :  { %13706 = vmatpush3.bf16.msra.mxu1 %v13705_v51  ;;  %13214 = vmatprep.mubr.msk.f32.mxu1 %vm14304_vm1, %v14305_v8 }
 0x6de   :  { %13707 = vmatprep.subr.bf16.mxu1 %v14303_v25 }
 0x6e0   :  { %13215 = vmatmul.mubr.f32.gmra.mrb[46].mxu1 %v14983_v26 }
 0x6e1   :  { %13217 = vmatprep.mubr.msk.f32.mxu1 %vm14304_vm1, %v14305_v8 }
 0x6e4   :  { %13218 = vmatmul.mubr.f32.gmra.mrb[48].mxu1 %v14992_v36 }
 0x6e5   :  { %13224 = vmatprep.mubr.msk.f32.mxu1 %vm14304_vm1, %v14305_v8 }
 0x6e8   :  { %13225 = vmatmul.mubr.f32.vlgmr.msra.gmra.mrb[44].mxu1 %v14987_v13 }
 0x6e9   :  { %13709 = vmatpush3.bf16.msra.mxu1 %v15654_v0  ;;  %13227 = vmatprep.mubr.msk.f32.mxu1 %vm14304_vm1, %v14305_v8 }
 0x6ea   :  { %13710 = vmatprep.subr.bf16.mxu1 %v14303_v25 }
 0x6ec   :  { %13228 = vmatmul.mubr.f32.gmra.mrb[46].mxu1 %v14990_v22 }
 0x6ed   :  { %13230 = vmatprep.mubr.msk.f32.mxu1 %vm14304_vm1, %v14305_v8 }
 0x6f0   :  { %13231 = vmatmul.mubr.f32.gmra.mrb[48].mxu1 %v15001_v6 }
 0x6f1   :  { %13237 = vmatprep.mubr.msk.f32.mxu1 %vm14304_vm1, %v14305_v8 }
 0x6f4   :  { %13238 = vmatmul.mubr.f32.vlgmr.msra.gmra.mrb[44].mxu1 %v14995_v41 }
 0x6f5   :  { %13712 = vmatpush3.bf16.msra.mxu1 %v15673_v19  ;;  %13240 = vmatprep.mubr.msk.f32.mxu1 %vm14304_vm1, %v14305_v8 }
 0x6f6   :  { %13713 = vmatprep.subr.bf16.mxu1 %v14303_v25 }
 0x6f8   :  { %13241 = vmatmul.mubr.f32.gmra.mrb[46].mxu1 %v14998_v40 }
 0x6f9   :  { %13243 = vmatprep.mubr.msk.f32.mxu1 %vm14304_vm1, %v14305_v8 }
 0x6fc   :  { %13244 = vmatmul.mubr.f32.gmra.mrb[48].mxu1 %v15010_v61 }
 0x6fd   :  { %13250 = vmatprep.mubr.msk.f32.mxu1 %vm14304_vm1, %v14305_v8 }
 0x700   :  { %13251 = vmatmul.mubr.f32.vlgmr.msra.gmra.mrb[44].mxu1 %v14978_v32 }
 0x701   :  { %13715 = vmatpush3.bf16.msra.mxu1 %v15654_v0  ;;  %13253 = vmatprep.mubr.msk.f32.mxu1 %vm14304_vm1, %v14305_v8 }
 0x704   :  { %13254 = vmatmul.mubr.f32.gmra.mrb[46].mxu1 %v14983_v26 }
 0x705   :  { %13256 = vmatprep.mubr.msk.f32.mxu1 %vm14304_vm1, %v14305_v8 }
 0x708   :  { %13257 = vmatmul.mubr.f32.gmra.mrb[48].mxu1 %v14992_v36 }
 0x709   :  { %13263 = vmatprep.mubr.msk.f32.mxu1 %vm14304_vm1, %v14305_v8 }
 0x70c   :  { %13264 = vmatmul.mubr.f32.vlgmr.msra.gmra.mrb[44].mxu1 %v14978_v32 }
 0x70d   :  { %13266 = vmatprep.mubr.msk.f32.mxu1 %vm14304_vm1, %v14305_v8 }
 0x710   :  { %13267 = vmatmul.mubr.f32.gmra.mrb[46].mxu1 %v14983_v26 }
 0x711   :  { %13269 = vmatprep.mubr.msk.f32.mxu1 %vm14304_vm1, %v14305_v8 }
 0x714   :  { %13270 = vmatmul.mubr.f32.gmra.mrb[48].mxu1 %v14992_v36 }
 0x74f   :  { %v8374_v13 = vpop.f32.mrb[32].mxu1 }
 0x750   :  { %v8391_v22 = vsel %vm2912_vm2, %v8374_v13, 0  ;;  %v12953_v41 = vpop.f32.mrb[33].mxu1 }
 0x751   :  { %v8466_v40 = vand.u32 4294901760, %v8391_v22 }
 0x753   :  { %v8467_v6 = vsub.f32 %v8391_v22, %v8466_v40  ;;  %v8380_v61 = vpop.f32.mrb[34].mxu1 }
 0x754   :  { %v8394_v58 = vsel %vm2912_vm2, %v8380_v61, 0  ;;  %v12956_v32 = vpop.f32.mrb[35].mxu1 }
 0x755   :  { %v8468_v3 = vand.u32 4294901760, %v8467_v6  ;;  %v15869_v45 = vand.u32 4294901760, %v8394_v58 }
 0x757   :  { %v8469_v18 = vsub.f32 %v8467_v6, %v8468_v3  ;;  %v8477_v26 = vsub.f32 %v8394_v58, %v15869_v45  ;;  %v8386_v56 = vpop.f32.mrb[36].mxu1 }
 0x758   :  { %v8397_v50 = vsel %vm2912_vm2, %v8386_v56, 0  ;;  %v12959_v36 = vpop.f32.mrb[37].mxu1 }
 0x759   :  { %v8470_v39 = vand.u32 4294901760, %v8469_v18  ;;  %v8478_v46 = vand.u32 4294901760, %v8477_v26  ;;  %v15873_v48 = vand.u32 4294901760, %v8397_v50 }
 0x75b   :  { %v8487_v35 = vsub.f32 %v8397_v50, %v15873_v48  ;;  %12965 = vmatmul.mubr.f32.vlgmr.msra.gmra.mrb[34].mxu0 %v8470_v39  ;;  %v8479_v16 = vsub.f32 %v8477_v26, %v8478_v46 }
 0x75c   :  { %12967 = vmatprep.mubr.msk.f32.mxu0 %vm14304_vm1, %v14305_v8  ;;  %13649 = vmatpush3.bf16.msra.mxu0 %v15279_v23 }
 0x75d   :  { %v8488_v42 = vand.u32 4294901760, %v8487_v35  ;;  %v8480_v15 = vand.u32 4294901760, %v8479_v16  ;;  %13650 = vmatprep.subr.bf16.mxu0 %v14303_v25 }
 0x75f   :  { %12968 = vmatmul.mubr.f32.gmra.mrb[36].mxu0 %v8480_v15  ;;  %v8489_v54 = vsub.f32 %v8487_v35, %v8488_v42 }
 0x760   :  { %12970 = vmatprep.mubr.msk.f32.mxu0 %vm14304_vm1, %v14305_v8 }
 0x761   :  { %v8490_v47 = vand.u32 4294901760, %v8489_v54 }
 0x763   :  { %12971 = vmatmul.mubr.f32.gmra.mrb[38].mxu0 %v8490_v47 }
 0x764   :  { %12977 = vmatprep.mubr.msk.f32.mxu0 %vm14304_vm1, %v14305_v8 }
 0x767   :  { %12978 = vmatmul.mubr.f32.vlgmr.msra.gmra.mrb[34].mxu0 %v8466_v40 }
 0x768   :  { %12980 = vmatprep.mubr.msk.f32.mxu0 %vm14304_vm1, %v14305_v8  ;;  %13652 = vmatpush3.bf16.msra.mxu0 %v15286_v30 }
 0x769   :  { %13653 = vmatprep.subr.bf16.mxu0 %v14303_v25 }
 0x76b   :  { %12981 = vmatmul.mubr.f32.gmra.mrb[36].mxu0 %v15869_v45 }
 0x76c   :  { %12983 = vmatprep.mubr.msk.f32.mxu0 %vm14304_vm1, %v14305_v8 }
 0x76f   :  { %12984 = vmatmul.mubr.f32.gmra.mrb[38].mxu0 %v15873_v48 }
 0x770   :  { %12990 = vmatprep.mubr.msk.f32.mxu0 %vm14304_vm1, %v14305_v8 }
 0x773   :  { %12991 = vmatmul.mubr.f32.vlgmr.msra.gmra.mrb[34].mxu0 %v8467_v6 }
 0x774   :  { %12993 = vmatprep.mubr.msk.f32.mxu0 %vm14304_vm1, %v14305_v8  ;;  %13655 = vmatpush3.bf16.msra.mxu0 %v15268_v9 }
 0x775   :  { %13656 = vmatprep.subr.bf16.mxu0 %v14303_v25 }
 0x777   :  { %12994 = vmatmul.mubr.f32.gmra.mrb[36].mxu0 %v8477_v26 }
 0x778   :  { %12996 = vmatprep.mubr.msk.f32.mxu0 %vm14304_vm1, %v14305_v8 }
 0x77b   :  { %12997 = vmatmul.mubr.f32.gmra.mrb[38].mxu0 %v8487_v35 }
 0x77c   :  { %13003 = vmatprep.mubr.msk.f32.mxu0 %vm14304_vm1, %v14305_v8 }
 0x77f   :  { %13004 = vmatmul.mubr.f32.vlgmr.msra.gmra.mrb[34].mxu0 %v8468_v3 }
 0x780   :  { %13006 = vmatprep.mubr.msk.f32.mxu0 %vm14304_vm1, %v14305_v8  ;;  %13658 = vmatpush3.bf16.msra.mxu0 %v15304_v57 }
 0x781   :  { %13659 = vmatprep.subr.bf16.mxu0 %v14303_v25 }
 0x783   :  { %13007 = vmatmul.mubr.f32.gmra.mrb[36].mxu0 %v8478_v46 }
 0x784   :  { %13009 = vmatprep.mubr.msk.f32.mxu0 %vm14304_vm1, %v14305_v8 }
 0x787   :  { %13010 = vmatmul.mubr.f32.gmra.mrb[38].mxu0 %v8488_v42 }
 0x788   :  { %13016 = vmatprep.mubr.msk.f32.mxu0 %vm14304_vm1, %v14305_v8 }
 0x78b   :  { %13017 = vmatmul.mubr.f32.vlgmr.msra.gmra.mrb[34].mxu0 %v8466_v40 }
 0x78c   :  { %13019 = vmatprep.mubr.msk.f32.mxu0 %vm14304_vm1, %v14305_v8  ;;  %13661 = vmatpush3.bf16.msra.mxu0 %v15268_v9 }
 0x78d   :  { %13680 = vmatprep.subr.bf16.mxu0 %v14303_v25 }
 0x78f   :  { %13020 = vmatmul.mubr.f32.gmra.mrb[36].mxu0 %v15869_v45 }
 0x790   :  { %13022 = vmatprep.mubr.msk.f32.mxu0 %vm14304_vm1, %v14305_v8 }
 0x793   :  { %13023 = vmatmul.mubr.f32.gmra.mrb[38].mxu0 %v15873_v48 }
 0x794   :  { %13029 = vmatprep.mubr.msk.f32.mxu0 %vm14304_vm1, %v14305_v8 }
 0x797   :  { %13030 = vmatmul.mubr.f32.vlgmr.msra.gmra.mrb[34].mxu0 %v8466_v40  ;;  %v9500_v52 = vpop.f32.mrb[38].mxu1 }
 0x798   :  { %v9517_v38 = vsel %vm2912_vm2, %v9500_v52, 0  ;;  %v13109_v55 = vpop.f32.mrb[39].mxu1  ;;  %13032 = vmatprep.mubr.msk.f32.mxu0 %vm14304_vm1, %v14305_v8  ;;  %13682 = vmatpush3.bf16.msra.mxu0 %v15268_v9 }
 0x799   :  { %v15924_v21 = vand.u32 4294901760, %v9517_v38  ;;  %13683 = vmatprep.subr.bf16.mxu0 %v14303_v25 }
 0x79b   :  { %v9593_v44 = vsub.f32 %v9517_v38, %v15924_v21  ;;  %13033 = vmatmul.mubr.f32.gmra.mrb[36].mxu0 %v15869_v45  ;;  %v9506_v29 = vpop.f32.mrb[40].mxu1 }
 0x79c   :  { %v9520_v17 = vsel %vm2912_vm2, %v9506_v29, 0  ;;  %v13112_v34 = vpop.f32.mrb[41].mxu1  ;;  %13035 = vmatprep.mubr.msk.f32.mxu0 %vm14304_vm1, %v14305_v8 }
 0x79d   :  { %v9594_v31 = vand.u32 4294901760, %v9593_v44  ;;  %v15932_v59 = vand.u32 4294901760, %v9520_v17 }
 0x79f   :  { %v9595_v62 = vsub.f32 %v9593_v44, %v9594_v31  ;;  %v9603_v37 = vsub.f32 %v9520_v17, %v15932_v59  ;;  %13036 = vmatmul.mubr.f32.gmra.mrb[38].mxu0 %v15873_v48  ;;  %v9512_v0 = vpop.f32.mrb[42].mxu1 }
 0x7a0   :  { %v9523_v49 = vsel %vm2912_vm2, %v9512_v0, 0  ;;  %v13115_v4 = vpop.f32.mrb[43].mxu1  ;;  %13120 = vmatprep.mubr.msk.f32.mxu0 %vm14304_vm1, %v14305_v8 }
 0x7a1   :  { %v9596_v2 = vand.u32 4294901760, %v9595_v62  ;;  %v9604_v33 = vand.u32 4294901760, %v9603_v37  ;;  %v15939_v43 = vand.u32 4294901760, %v9523_v49 }
 0x7a3   :  { %v9613_v60 = vsub.f32 %v9523_v49, %v15939_v43  ;;  %13121 = vmatmul.mubr.f32.vlgmr.msra.gmra.mrb[40].mxu0 %v9596_v2  ;;  %v9605_v7 = vsub.f32 %v9603_v37, %v9604_v33 }
 0x7a4   :  { %13123 = vmatprep.mubr.msk.f32.mxu0 %vm14304_vm1, %v14305_v8  ;;  %13685 = vmatpush3.bf16.msra.mxu0 %v15279_v23 }
 0x7a5   :  { %v9614_v10 = vand.u32 4294901760, %v9613_v60  ;;  %v9606_v53 = vand.u32 4294901760, %v9605_v7  ;;  %13686 = vmatprep.subr.bf16.mxu0 %v14303_v25 }
 0x7a7   :  { %13124 = vmatmul.mubr.f32.gmra.mrb[42].mxu0 %v9606_v53  ;;  %v9615_v12 = vsub.f32 %v9613_v60, %v9614_v10 }
 0x7a8   :  { %13126 = vmatprep.mubr.msk.f32.mxu0 %vm14304_vm1, %v14305_v8 }
 0x7a9   :  { %v9616_v20 = vand.u32 4294901760, %v9615_v12 }
 0x7ab   :  { %13127 = vmatmul.mubr.f32.gmra.mrb[44].mxu0 %v9616_v20 }
 0x7ac   :  { %13133 = vmatprep.mubr.msk.f32.mxu0 %vm14304_vm1, %v14305_v8 }
 0x7af   :  { %13134 = vmatmul.mubr.f32.vlgmr.msra.gmra.mrb[40].mxu0 %v15924_v21 }
 0x7b0   :  { %13136 = vmatprep.mubr.msk.f32.mxu0 %vm14304_vm1, %v14305_v8  ;;  %13688 = vmatpush3.bf16.msra.mxu0 %v15286_v30 }
 0x7b1   :  { %13689 = vmatprep.subr.bf16.mxu0 %v14303_v25 }
 0x7b3   :  { %13137 = vmatmul.mubr.f32.gmra.mrb[42].mxu0 %v15932_v59 }
 0x7b4   :  { %13139 = vmatprep.mubr.msk.f32.mxu0 %vm14304_vm1, %v14305_v8 }
 0x7b7   :  { %13140 = vmatmul.mubr.f32.gmra.mrb[44].mxu0 %v15939_v43 }
 0x7b8   :  { %13146 = vmatprep.mubr.msk.f32.mxu0 %vm14304_vm1, %v14305_v8 }
 0x7bb   :  { %13147 = vmatmul.mubr.f32.vlgmr.msra.gmra.mrb[40].mxu0 %v9593_v44 }
 0x7bc   :  { %13149 = vmatprep.mubr.msk.f32.mxu0 %vm14304_vm1, %v14305_v8  ;;  %13691 = vmatpush3.bf16.msra.mxu0 %v15268_v9 }
 0x7bd   :  { %13692 = vmatprep.subr.bf16.mxu0 %v14303_v25 }
 0x7bf   :  { %13150 = vmatmul.mubr.f32.gmra.mrb[42].mxu0 %v9603_v37 }
 0x7c0   :  { %13152 = vmatprep.mubr.msk.f32.mxu0 %vm14304_vm1, %v14305_v8 }
 0x7c3   :  { %13153 = vmatmul.mubr.f32.gmra.mrb[44].mxu0 %v9613_v60 }
 0x7c4   :  { %13159 = vmatprep.mubr.msk.f32.mxu0 %vm14304_vm1, %v14305_v8 }
 0x7c7   :  { %13160 = vmatmul.mubr.f32.vlgmr.msra.gmra.mrb[40].mxu0 %v9594_v31 }
 0x7c8   :  { %13162 = vmatprep.mubr.msk.f32.mxu0 %vm14304_vm1, %v14305_v8  ;;  %13694 = vmatpush3.bf16.msra.mxu0 %v15304_v57 }
 0x7c9   :  { %13695 = vmatprep.subr.bf16.mxu0 %v14303_v25 }
 0x7cb   :  { %13163 = vmatmul.mubr.f32.gmra.mrb[42].mxu0 %v9604_v33 }
 0x7cc   :  { %13165 = vmatprep.mubr.msk.f32.mxu0 %vm14304_vm1, %v14305_v8 }
 0x7cf   :  { %13166 = vmatmul.mubr.f32.gmra.mrb[44].mxu0 %v9614_v10 }
 0x7d0   :  { %13172 = vmatprep.mubr.msk.f32.mxu0 %vm14304_vm1, %v14305_v8 }
 0x7d3   :  { %13173 = vmatmul.mubr.f32.vlgmr.msra.gmra.mrb[40].mxu0 %v15924_v21 }
 0x7d4   :  { %13175 = vmatprep.mubr.msk.f32.mxu0 %vm14304_vm1, %v14305_v8  ;;  %13697 = vmatpush3.bf16.msra.mxu0 %v15268_v9 }
 0x7d5   :  { %13716 = vmatprep.subr.bf16.mxu0 %v14303_v25 }
 0x7d7   :  { %13176 = vmatmul.mubr.f32.gmra.mrb[42].mxu0 %v15932_v59 }
 0x7d8   :  { %13178 = vmatprep.mubr.msk.f32.mxu0 %vm14304_vm1, %v14305_v8 }
 0x7db   :  { %13179 = vmatmul.mubr.f32.gmra.mrb[44].mxu0 %v15939_v43 }
 0x7dc   :  { %13185 = vmatprep.mubr.msk.f32.mxu0 %vm14304_vm1, %v14305_v8 }
 0x7df   :  { %13186 = vmatmul.mubr.f32.vlgmr.msra.gmra.mrb[40].mxu0 %v15924_v21  ;;  %v10626_v51 = vpop.f32.mrb[44].mxu1 }
 0x7e0   :  { %v10643_v27 = vsel %vm2912_vm2, %v10626_v51, 0  ;;  %v13265_v28 = vpop.f32.mrb[45].mxu1  ;;  %13188 = vmatprep.mubr.msk.f32.mxu0 %vm14304_vm1, %v14305_v8  ;;  %13718 = vmatpush3.bf16.msra.mxu0 %v15268_v9 }
 0x7e1   :  { %v15993_v11 = vand.u32 4294901760, %v10643_v27  ;;  %13719 = vmatprep.subr.bf16.mxu0 %v14303_v25 }
 0x7e3   :  { %v10719_v1 = vsub.f32 %v10643_v27, %v15993_v11  ;;  %13189 = vmatmul.mubr.f32.gmra.mrb[42].mxu0 %v15932_v59  ;;  %v10632_v19 = vpop.f32.mrb[46].mxu1 }
 0x7e4   :  { %v10646_v24 = vsel %vm2912_vm2, %v10632_v19, 0  ;;  %v13268_v5 = vpop.f32.mrb[47].mxu1  ;;  %13191 = vmatprep.mubr.msk.f32.mxu0 %vm14304_vm1, %v14305_v8 }
 0x7e5   :  { %v10720_v63 = vand.u32 4294901760, %v10719_v1  ;;  %v10728_v14 = vand.u32 4294901760, %v10646_v24 }
 0x7e7   :  { %v10721_v13 = vsub.f32 %v10719_v1, %v10720_v63  ;;  %v10729_v22 = vsub.f32 %v10646_v24, %v10728_v14  ;;  %13192 = vmatmul.mubr.f32.gmra.mrb[44].mxu0 %v15939_v43  ;;  %v10638_v41 = vpop.f32.mrb[48].mxu1 }
 0x7e8   :  { %v10649_v40 = vsel %vm2912_vm2, %v10638_v41, 0  ;;  %v13271_v6 = vpop.f32.mrb[49].mxu1  ;;  %13276 = vmatprep.mubr.msk.f32.mxu0 %vm14304_vm1, %v14305_v8 }
 0x7e9   :  { %v10722_v61 = vand.u32 4294901760, %v10721_v13  ;;  %v10730_v58 = vand.u32 4294901760, %v10729_v22  ;;  %v10738_v32 = vand.u32 4294901760, %v10649_v40 }
 0x7eb   :  { %v10739_v3 = vsub.f32 %v10649_v40, %v10738_v32  ;;  %13277 = vmatmul.mubr.f32.vlgmr.msra.gmra.mrb[46].mxu0 %v10722_v61  ;;  %v10731_v45 = vsub.f32 %v10729_v22, %v10730_v58 }
 0x7ec   :  { %13279 = vmatprep.mubr.msk.f32.mxu0 %vm14304_vm1, %v14305_v8  ;;  %13721 = vmatpush3.bf16.msra.mxu0 %v15279_v23 }
 0x7ed   :  { %v10740_v18 = vand.u32 4294901760, %v10739_v3  ;;  %v10732_v26 = vand.u32 4294901760, %v10731_v45  ;;  %13722 = vmatprep.subr.bf16.mxu0 %v14303_v25 }
 0x7ef   :  { %13280 = vmatmul.mubr.f32.gmra.mrb[48].mxu0 %v10732_v26  ;;  %v10741_v56 = vsub.f32 %v10739_v3, %v10740_v18 }
 0x7f0   :  { %13282 = vmatprep.mubr.msk.f32.mxu0 %vm14304_vm1, %v14305_v8 }
 0x7f1   :  { %v10742_v50 = vand.u32 4294901760, %v10741_v56 }
 0x7f3   :  { %13283 = vmatmul.mubr.f32.gmra.mrb[50].mxu0 %v10742_v50 }
 0x7f4   :  { %13289 = vmatprep.mubr.msk.f32.mxu0 %vm14304_vm1, %v14305_v8 }
 0x7f7   :  { %13290 = vmatmul.mubr.f32.vlgmr.msra.gmra.mrb[46].mxu0 %v15993_v11 }
 0x7f8   :  { %13292 = vmatprep.mubr.msk.f32.mxu0 %vm14304_vm1, %v14305_v8  ;;  %13724 = vmatpush3.bf16.msra.mxu0 %v15286_v30 }
 0x7f9   :  { %13725 = vmatprep.subr.bf16.mxu0 %v14303_v25 }
 0x7fb   :  { %13293 = vmatmul.mubr.f32.gmra.mrb[48].mxu0 %v10728_v14 }
 0x7fc   :  { %13295 = vmatprep.mubr.msk.f32.mxu0 %vm14304_vm1, %v14305_v8 }
 0x7ff   :  { %13296 = vmatmul.mubr.f32.gmra.mrb[50].mxu0 %v10738_v32 }
 0x800   :  { %13302 = vmatprep.mubr.msk.f32.mxu0 %vm14304_vm1, %v14305_v8 }
 0x803   :  { %13303 = vmatmul.mubr.f32.vlgmr.msra.gmra.mrb[46].mxu0 %v10719_v1 }
 0x804   :  { %13305 = vmatprep.mubr.msk.f32.mxu0 %vm14304_vm1, %v14305_v8  ;;  %13727 = vmatpush3.bf16.msra.mxu0 %v15268_v9 }
 0x805   :  { %13728 = vmatprep.subr.bf16.mxu0 %v14303_v25 }
 0x807   :  { %13306 = vmatmul.mubr.f32.gmra.mrb[48].mxu0 %v10729_v22 }
 0x808   :  { %13308 = vmatprep.mubr.msk.f32.mxu0 %vm14304_vm1, %v14305_v8 }
 0x80b   :  { %13309 = vmatmul.mubr.f32.gmra.mrb[50].mxu0 %v10739_v3 }
 0x80c   :  { %13315 = vmatprep.mubr.msk.f32.mxu0 %vm14304_vm1, %v14305_v8 }
 0x80f   :  { %13316 = vmatmul.mubr.f32.vlgmr.msra.gmra.mrb[46].mxu0 %v10720_v63 }
 0x810   :  { %13318 = vmatprep.mubr.msk.f32.mxu0 %vm14304_vm1, %v14305_v8  ;;  %13730 = vmatpush3.bf16.msra.mxu0 %v15304_v57 }
 0x811   :  { %13731 = vmatprep.subr.bf16.mxu0 %v14303_v25 }
 0x813   :  { %13319 = vmatmul.mubr.f32.gmra.mrb[48].mxu0 %v10730_v58 }
 0x814   :  { %13321 = vmatprep.mubr.msk.f32.mxu0 %vm14304_vm1, %v14305_v8 }
 0x817   :  { %13322 = vmatmul.mubr.f32.gmra.mrb[50].mxu0 %v10740_v18 }
 0x818   :  { %13328 = vmatprep.mubr.msk.f32.mxu0 %vm14304_vm1, %v14305_v8 }
 0x81b   :  { %13329 = vmatmul.mubr.f32.vlgmr.msra.gmra.mrb[46].mxu0 %v15993_v11 }
 0x81c   :  { %13331 = vmatprep.mubr.msk.f32.mxu0 %vm14304_vm1, %v14305_v8  ;;  %13733 = vmatpush3.bf16.msra.mxu0 %v15268_v9 }
 0x81f   :  { %13332 = vmatmul.mubr.f32.gmra.mrb[48].mxu0 %v10728_v14 }
 0x820   :  { %13334 = vmatprep.mubr.msk.f32.mxu0 %vm14304_vm1, %v14305_v8 }
 0x823   :  { %13335 = vmatmul.mubr.f32.gmra.mrb[50].mxu0 %v10738_v32 }
 0x824   :  { %13341 = vmatprep.mubr.msk.f32.mxu0 %vm14304_vm1, %v14305_v8 }
 0x827   :  { %13342 = vmatmul.mubr.f32.vlgmr.msra.gmra.mrb[46].mxu0 %v15993_v11 }
 0x828   :  { %13344 = vmatprep.mubr.msk.f32.mxu0 %vm14304_vm1, %v14305_v8 }
 0x82b   :  { %13345 = vmatmul.mubr.f32.gmra.mrb[48].mxu0 %v10728_v14 }
 0x82c   :  { %13347 = vmatprep.mubr.msk.f32.mxu0 %vm14304_vm1, %v14305_v8 }
 0x82f   :  { %13348 = vmatmul.mubr.f32.gmra.mrb[50].mxu0 %v10738_v32 }
 0x86a   :  { %v8928_v25 = vpop.f32.mrb[34].mxu0 }
 0x86b   :  { %8944 = vst.msk [vmem:[%s16094_s7 + $0x48] sm:$0xff] %vm72_vm0, %v8928_v25  ;;  %v13031_v9 = vpop.f32.mrb[35].mxu0 }
 0x86e   :  { %v8934_v23 = vpop.f32.mrb[36].mxu0 }
 0x86f   :  { %8945 = vst.msk [vmem:[%s16094_s7 + $0x50] sm:$0xff] %vm72_vm0, %v8934_v23  ;;  %v13034_v30 = vpop.f32.mrb[37].mxu0 }
 0x872   :  { %v8940_v57 = vpop.f32.mrb[38].mxu0 }
 0x873   :  { %8946 = vst.msk [vmem:[%s16094_s7 + $0x58] sm:$0xff] %vm72_vm0, %v8940_v57  ;;  %v13037_v8 = vpop.f32.mrb[39].mxu0 }
 0x8b2   :  { %v10054_v36 = vpop.f32.mrb[40].mxu0 }
 0x8b3   :  { %10070 = vst.msk [vmem:[%s16094_s7 + $0x60] sm:$0xff] %vm72_vm0, %v10054_v36  ;;  %v13187_v39 = vpop.f32.mrb[41].mxu0 }
 0x8b6   :  { %v10060_v46 = vpop.f32.mrb[42].mxu0 }
 0x8b7   :  { %10071 = vst.msk [vmem:[%s16094_s7 + $0x68] sm:$0xff] %vm72_vm0, %v10060_v46  ;;  %v13190_v48 = vpop.f32.mrb[43].mxu0 }
 0x8ba   :  { %v10066_v35 = vpop.f32.mrb[44].mxu0 }
 0x8bb   :  { %10072 = vst.msk [vmem:[%s16094_s7 + $0x70] sm:$0xff] %vm72_vm0, %v10066_v35  ;;  %v13193_v16 = vpop.f32.mrb[45].mxu0 }
 0x8fa   :  { %v11180_v42 = vpop.f32.mrb[46].mxu0 }
 0x8fb   :  { %11196 = vst.msk [vmem:[%s16094_s7 + $0x78] sm:$0xff] %vm72_vm0, %v11180_v42  ;;  %v13343_v15 = vpop.f32.mrb[47].mxu0 }
 0x8fe   :  { %v11186_v54 = vpop.f32.mrb[48].mxu0 }
 0x8ff   :  { %11197 = vst.msk [vmem:[%s16094_s7 + $0x80] sm:$0xff] %vm72_vm0, %v11186_v54  ;;  %v13346_v47 = vpop.f32.mrb[49].mxu0 }
 0x902   :  { %v11192_v52 = vpop.f32.mrb[50].mxu0 }
 0x903   :  { %11198 = vst.msk [vmem:[%s16094_s7 + $0x88] sm:$0xff] %vm72_vm0, %v11192_v52  ;;  %v13349_v38 = vpop.f32.mrb[51].mxu0 }
 0x904   :  { %11203 = vsyncpa [#allocation3], 1 }
 0x905   :  { %11204 = vsyncpa [#allocation5], 1 }

</bundles_post_ra>
